<compile_context>
chip_gen: v7x
topology: tpu7x:2x2x1
jax: 0.10.0
libtpu: 0.0.40
codegen_flags: <defaults>
</compile_context>

<pallas_src>
import math

import jax
import jax.numpy as jnp
from jax.experimental import pallas as pl
from jax.experimental.pallas import tpu as pltpu

H1, H2 = 3000, 2000          # hidden widths of the PyTorch module
H1_P, H2_P = 3072, 2048      # lane-padded (multiples of 128)

# bf16 weight storage halves HBM streaming time (kernel is bandwidth bound).
# Matmuls still run in f32 on f32-upcast weights; only the one-time rounding
# of stored weights differs from the f32 PyTorch module.
WEIGHT_DTYPE = jnp.bfloat16


def _round_up(n, m):
    return ((n + m - 1) // m) * m


def _fused_mlp_kernel(x_ref, w1_ref, b1_ref, w2_ref, b2_ref, w3_ref, b3_ref,
                      o_ref, h1_ref):
    """Fused Linear-ReLU-Linear-ReLU-Linear.

    Grid axis 0 walks column tiles of W2 (and the matching row tiles of W3).
    x, W1, b1, b3 and the output block use constant index maps, so they are
    DMA'd once and stay VMEM-resident; h1 lives in VMEM scratch across steps.
    """
    j = pl.program_id(0)

    # Layer 1 (runs once, first grid step) + init of the layer-3 accumulator.
    @pl.when(j == 0)
    def _():
        h1 = jnp.dot(x_ref[...], w1_ref[...].astype(jnp.float32),
                     preferred_element_type=jnp.float32) + b1_ref[...]
        h1_ref[...] = jnp.maximum(h1, 0.0)
        o_ref[...] = jnp.broadcast_to(b3_ref[...], o_ref.shape)

    # Layer 2: one column tile of W2 per grid step (weight streaming).
    h2 = jnp.dot(h1_ref[...], w2_ref[...].astype(jnp.float32),
                 preferred_element_type=jnp.float32) + b2_ref[...]
    h2 = jnp.maximum(h2, 0.0)

    # Layer 3: accumulate this tile's contribution (matching W3 row block).
    o_ref[...] += jnp.dot(h2, w3_ref[...].astype(jnp.float32),
                          preferred_element_type=jnp.float32)


def fused_mlp(x_p, params, *, tn2=512, vmem_limit_bytes=32 * 1024 * 1024):
    """x_p: (Mp, K1p) f32 padded input; params: pre-padded (W, b) triples."""
    (w1, b1), (w2, b2), (w3, b3) = params
    Mp, K1p = x_p.shape
    K1p_, N1p = w1.shape
    N2p = w2.shape[1]
    N3p = w3.shape[1]
    assert K1p == K1p_ and w2.shape[0] == N1p and w3.shape[0] == N2p
    assert N2p % tn2 == 0 and tn2 % 128 == 0
    nt2 = N2p // tn2

    return pl.pallas_call(
        _fused_mlp_kernel,
        out_shape=jax.ShapeDtypeStruct((Mp, N3p), jnp.float32),
        grid_spec=pltpu.PrefetchScalarGridSpec(
            num_scalar_prefetch=0,
            grid=(nt2,),
            in_specs=[
                pl.BlockSpec((Mp, K1p), lambda j: (0, 0)),     # x        (resident)
                pl.BlockSpec((K1p, N1p), lambda j: (0, 0)),    # W1       (resident)
                pl.BlockSpec((1, N1p), lambda j: (0, 0)),      # b1       (resident)
                pl.BlockSpec((N1p, tn2), lambda j: (0, j)),    # W2 tile  (streamed)
                pl.BlockSpec((1, tn2), lambda j: (0, j)),      # b2 tile  (streamed)
                pl.BlockSpec((tn2, N3p), lambda j: (j, 0)),    # W3 tile  (streamed)
                pl.BlockSpec((1, N3p), lambda j: (0, 0)),      # b3       (resident)
            ],
            out_specs=pl.BlockSpec((Mp, N3p), lambda j: (0, 0)),
            scratch_shapes=[pltpu.VMEM((Mp, N1p), jnp.float32)],  # h1 activations
        ),
        compiler_params=pltpu.CompilerParams(
            dimension_semantics=("arbitrary",),      # carried state (h1, o accumulator)
            vmem_limit_bytes=vmem_limit_bytes,
        ),
    )(x_p, w1, b1, w2, b2, w3, b3)


def init_params(key, num_inputs, num_outputs, weight_dtype=WEIGHT_DTYPE):
    """PyTorch-Linear-style init (uniform +/- 1/sqrt(fan_in)).

    Weights are returned already transposed to (in, out), zero-padded to
    lane-friendly sizes and cast to `weight_dtype` -- done ONCE here so the
    forward pass streams them straight from HBM with no per-call copies.
    Zero padding + ReLU(0)=0 keeps the padded lanes inert.
    """
    dims = [num_inputs, H1, H2, num_outputs]
    dims_p = [_round_up(d, 128) for d in dims]
    params = []
    for i in range(3):
        fan_in, fan_out = dims[i], dims[i + 1]
        key, kw, kb = jax.random.split(key, 3)
        bound = 1.0 / math.sqrt(fan_in)
        w = jax.random.uniform(kw, (fan_in, fan_out), jnp.float32,
                               minval=-bound, maxval=bound)
        b = jax.random.uniform(kb, (fan_out,), jnp.float32,
                               minval=-bound, maxval=bound)
        w_p = jnp.zeros((dims_p[i], dims_p[i + 1]), weight_dtype)
        w_p = w_p.at[:fan_in, :fan_out].set(w.astype(weight_dtype))
        b_p = jnp.zeros((1, dims_p[i + 1]), jnp.float32).at[0, :fan_out].set(b)
        params.append((w_p, b_p))
    return params, dims, dims_p


def neural_network_forward(x, params, num_outputs, *, tn2=512):
    """x: (batch, num_inputs) -> (batch, num_outputs), single fused TPU kernel."""
    batch, num_inputs = x.shape
    w1 = params[0][0]
    Mp = _round_up(batch, 8)
    K1p = w1.shape[0]
    x_p = jnp.zeros((Mp, K1p), jnp.float32).at[:batch, :num_inputs].set(
        x.astype(jnp.float32))
    out_p = fused_mlp(x_p, params, tn2=tn2)
    return out_p[:batch, :num_outputs]


if __name__ == "__main__":
    num_inputs, num_outputs, batch = 32, 8, 2

    key = jax.random.PRNGKey(0)
    key, kx = jax.random.split(key)
    x = jax.random.normal(kx, (batch, num_inputs), jnp.float32)
    params, dims, dims_p = init_params(key, num_inputs, num_outputs)

    out = jax.block_until_ready(neural_network_forward(x, params, num_outputs))

    # Pure-JAX reference of the same forward pass, using the exact stored
    # parameter values (upcast to f32), i.e. the module's math x @ W + b / ReLU.
    h = x
    for li, (w_p, b_p) in enumerate(params):
        w = w_p[:dims[li], :dims[li + 1]].astype(jnp.float32)
        b = b_p[0, :dims[li + 1]]
        h = h @ w + b
        if li < 2:
            h = jnp.maximum(h, 0.0)
    ref = jax.block_until_ready(h)

    assert out.shape == (batch, num_outputs)
    assert jnp.allclose(out, ref, rtol=1e-4, atol=1e-4), "mismatch vs reference"
    print("KERNEL_OK")
</pallas_src>

<mosaic_0001>
module attributes {stable_mosaic.version = 11 : i64} {
  func.func @_fused_mlp_kernel(%arg0: i32, %arg1: memref<8x128xf32, #tpu.memory_space<vmem>>, %arg2: memref<128x3072xbf16, #tpu.memory_space<vmem>>, %arg3: memref<1x3072xf32, #tpu.memory_space<vmem>>, %arg4: memref<3072x512xbf16, #tpu.memory_space<vmem>>, %arg5: memref<1x512xf32, #tpu.memory_space<vmem>>, %arg6: memref<512x128xbf16, #tpu.memory_space<vmem>>, %arg7: memref<1x128xf32, #tpu.memory_space<vmem>>, %arg8: memref<8x128xf32, #tpu.memory_space<vmem>>, %arg9: memref<8x3072xf32, #tpu.memory_space<vmem>>) attributes {dimension_semantics = [#tpu.dimension_semantics<arbitrary>], iteration_bounds = array<i64: 4>, scalar_prefetch = 0 : i64, scratch_operands = 1 : i64, tpu.core_type = #tpu.core_type<tc>, window_params = [{pipeline_mode = #tpu.pipeline_mode<synchronous>, transform_indices = @transform_0, window_bounds = array<i64: 8, 128>}, {pipeline_mode = #tpu.pipeline_mode<synchronous>, transform_indices = @transform_1, window_bounds = array<i64: 128, 3072>}, {pipeline_mode = #tpu.pipeline_mode<synchronous>, transform_indices = @transform_2, window_bounds = array<i64: 1, 3072>}, {transform_indices = @transform_3, window_bounds = array<i64: 3072, 512>}, {transform_indices = @transform_4, window_bounds = array<i64: 1, 512>}, {transform_indices = @transform_5, window_bounds = array<i64: 512, 128>}, {pipeline_mode = #tpu.pipeline_mode<synchronous>, transform_indices = @transform_6, window_bounds = array<i64: 1, 128>}, {pipeline_mode = #tpu.pipeline_mode<synchronous>, transform_indices = @transform_7, window_bounds = array<i64: 8, 128>}]} {
    %c0_i32 = arith.constant 0 : i32
    %0 = arith.cmpi eq, %arg0, %c0_i32 : i32
    %1 = arith.extui %0 : i1 to i32
    %c0_i32_0 = arith.constant 0 : i32
    %2 = arith.cmpi ne, %1, %c0_i32_0 : i32
    scf.if %2 {
      %c0_14 = arith.constant 0 : index
      %c0_15 = arith.constant 0 : index
      %18 = vector.load %arg1[%c0_14, %c0_15] : memref<8x128xf32, #tpu.memory_space<vmem>>, vector<8x128xf32>
      %c0_16 = arith.constant 0 : index
      %c0_17 = arith.constant 0 : index
      %19 = vector.load %arg2[%c0_16, %c0_17] : memref<128x3072xbf16, #tpu.memory_space<vmem>>, vector<128x3072xbf16>
      %20 = arith.extf %19 : vector<128x3072xbf16> to vector<128x3072xf32>
      %cst_18 = arith.constant dense<0.000000e+00> : vector<8x3072xf32>
      %21 = tpu.matmul %18, %20, %cst_18 {dimension_numbers = #tpu.dot_dimension_numbers<[1], [0], [0], [1], [0, 0, 1, 1], [], []>} : vector<8x128xf32>, vector<128x3072xf32>, vector<8x3072xf32> -> vector<8x3072xf32>
      %c0_19 = arith.constant 0 : index
      %c0_20 = arith.constant 0 : index
      %22 = vector.load %arg3[%c0_19, %c0_20] : memref<1x3072xf32, #tpu.memory_space<vmem>>, vector<1x3072xf32>
      %23 = vector.broadcast %22 : vector<1x3072xf32> to vector<8x3072xf32>
      %24 = arith.addf %21, %23 : vector<8x3072xf32>
      %cst_21 = arith.constant 0.000000e+00 : f32
      %25 = vector.broadcast %cst_21 : f32 to vector<8x3072xf32>
      %26 = arith.maximumf %24, %25 : vector<8x3072xf32>
      %c0_22 = arith.constant 0 : index
      %c0_23 = arith.constant 0 : index
      %27 = vector.load %arg9[%c0_22, %c0_23] : memref<8x3072xf32, #tpu.memory_space<vmem>>, vector<8x3072xf32>
      tpu.vector_store %arg9[%c0_22, %c0_23], %26 {strides = array<i32>} : memref<8x3072xf32, #tpu.memory_space<vmem>>, vector<8x3072xf32>,
      %c0_24 = arith.constant 0 : index
      %c0_25 = arith.constant 0 : index
      %28 = vector.load %arg7[%c0_24, %c0_25] : memref<1x128xf32, #tpu.memory_space<vmem>>, vector<1x128xf32>
      %29 = vector.shape_cast %28 : vector<1x128xf32> to vector<1x128xf32>
      %30 = vector.broadcast %29 : vector<1x128xf32> to vector<8x128xf32>
      %c0_26 = arith.constant 0 : index
      %c0_27 = arith.constant 0 : index
      %31 = vector.load %arg8[%c0_26, %c0_27] : memref<8x128xf32, #tpu.memory_space<vmem>>, vector<8x128xf32>
      tpu.vector_store %arg8[%c0_26, %c0_27], %30 {strides = array<i32>} : memref<8x128xf32, #tpu.memory_space<vmem>>, vector<8x128xf32>,
    } else {
    }
    %c0 = arith.constant 0 : index
    %c0_1 = arith.constant 0 : index
    %3 = vector.load %arg9[%c0, %c0_1] : memref<8x3072xf32, #tpu.memory_space<vmem>>, vector<8x3072xf32>
    %c0_2 = arith.constant 0 : index
    %c0_3 = arith.constant 0 : index
    %4 = vector.load %arg4[%c0_2, %c0_3] : memref<3072x512xbf16, #tpu.memory_space<vmem>>, vector<3072x512xbf16>
    %5 = arith.extf %4 : vector<3072x512xbf16> to vector<3072x512xf32>
    %cst = arith.constant dense<0.000000e+00> : vector<8x512xf32>
    %6 = tpu.matmul %3, %5, %cst {dimension_numbers = #tpu.dot_dimension_numbers<[1], [0], [0], [1], [0, 0, 1, 1], [], []>} : vector<8x3072xf32>, vector<3072x512xf32>, vector<8x512xf32> -> vector<8x512xf32>
    %c0_4 = arith.constant 0 : index
    %c0_5 = arith.constant 0 : index
    %7 = vector.load %arg5[%c0_4, %c0_5] : memref<1x512xf32, #tpu.memory_space<vmem>>, vector<1x512xf32>
    %8 = vector.broadcast %7 : vector<1x512xf32> to vector<8x512xf32>
    %9 = arith.addf %6, %8 : vector<8x512xf32>
    %cst_6 = arith.constant 0.000000e+00 : f32
    %10 = vector.broadcast %cst_6 : f32 to vector<8x512xf32>
    %11 = arith.maximumf %9, %10 : vector<8x512xf32>
    %c0_7 = arith.constant 0 : index
    %c0_8 = arith.constant 0 : index
    %12 = vector.load %arg8[%c0_7, %c0_8] : memref<8x128xf32, #tpu.memory_space<vmem>>, vector<8x128xf32>
    %c0_9 = arith.constant 0 : index
    %c0_10 = arith.constant 0 : index
    %13 = vector.load %arg6[%c0_9, %c0_10] : memref<512x128xbf16, #tpu.memory_space<vmem>>, vector<512x128xbf16>
    %14 = arith.extf %13 : vector<512x128xbf16> to vector<512x128xf32>
    %cst_11 = arith.constant dense<0.000000e+00> : vector<8x128xf32>
    %15 = tpu.matmul %11, %14, %cst_11 {dimension_numbers = #tpu.dot_dimension_numbers<[1], [0], [0], [1], [0, 0, 1, 1], [], []>} : vector<8x512xf32>, vector<512x128xf32>, vector<8x128xf32> -> vector<8x128xf32>
    %16 = arith.addf %12, %15 : vector<8x128xf32>
    %c0_12 = arith.constant 0 : index
    %c0_13 = arith.constant 0 : index
    %17 = vector.load %arg8[%c0_12, %c0_13] : memref<8x128xf32, #tpu.memory_space<vmem>>, vector<8x128xf32>
    tpu.vector_store %arg8[%c0_12, %c0_13], %16 {strides = array<i32>} : memref<8x128xf32, #tpu.memory_space<vmem>>, vector<8x128xf32>,
    return
  }
  func.func @transform_0(%arg0: i32) -> (i32, i32) {
    %c0_i32 = arith.constant 0 : i32
    %c0_i32_0 = arith.constant 0 : i32
    %c0_i32_1 = arith.constant 0 : i32
    return %c0_i32, %c0_i32_0 : i32, i32
  }
  func.func @transform_1(%arg0: i32) -> (i32, i32) {
    %c0_i32 = arith.constant 0 : i32
    %c0_i32_0 = arith.constant 0 : i32
    %c0_i32_1 = arith.constant 0 : i32
    return %c0_i32, %c0_i32_0 : i32, i32
  }
  func.func @transform_2(%arg0: i32) -> (i32, i32) {
    %c0_i32 = arith.constant 0 : i32
    %c0_i32_0 = arith.constant 0 : i32
    %c0_i32_1 = arith.constant 0 : i32
    return %c0_i32, %c0_i32_0 : i32, i32
  }
  func.func @transform_3(%arg0: i32) -> (i32, i32) {
    %c0_i32 = arith.constant 0 : i32
    %c0_i32_0 = arith.constant 0 : i32
    return %c0_i32, %arg0 : i32, i32
  }
  func.func @transform_4(%arg0: i32) -> (i32, i32) {
    %c0_i32 = arith.constant 0 : i32
    %c0_i32_0 = arith.constant 0 : i32
    return %c0_i32, %arg0 : i32, i32
  }
  func.func @transform_5(%arg0: i32) -> (i32, i32) {
    %c0_i32 = arith.constant 0 : i32
    %c0_i32_0 = arith.constant 0 : i32
    return %arg0, %c0_i32 : i32, i32
  }
  func.func @transform_6(%arg0: i32) -> (i32, i32) {
    %c0_i32 = arith.constant 0 : i32
    %c0_i32_0 = arith.constant 0 : i32
    %c0_i32_1 = arith.constant 0 : i32
    return %c0_i32, %c0_i32_0 : i32, i32
  }
  func.func @transform_7(%arg0: i32) -> (i32, i32) {
    %c0_i32 = arith.constant 0 : i32
    %c0_i32_0 = arith.constant 0 : i32
    %c0_i32_1 = arith.constant 0 : i32
    return %c0_i32, %c0_i32_0 : i32, i32
  }
}

</mosaic_0001>

<bundles_post_ra>
// kernel: tpu_custom_call.1
= control target key start
LH: loop header
LB: loop body
LE: loop exit
PB: predicated region body
PF: predicated region fallthrough
CT: control target
= control target key end

     0   :  { %s12546_s0 = inlined_call_operand.hbm [shape: f32[8,128], index: 0, kind: input, shape index: {}]   ;;  %s12547_s1 = inlined_call_operand.hbm [shape: bf16[128,3072], index: 1, kind: input, shape index: {}]   ;;  %s12548_s2 = inlined_call_operand.hbm [shape: f32[1,3072], index: 2, kind: input, shape index: {}]   ;;  %s12549_s3 = inlined_call_operand.hbm [shape: bf16[3072,2048], index: 3, kind: input, shape index: {}]   ;;  %s12550_s4 = inlined_call_operand.hbm [shape: f32[1,2048], index: 4, kind: input, shape index: {}]   ;;  %s12551_s5 = inlined_call_operand.hbm [shape: bf16[2048,128], index: 5, kind: input, shape index: {}]   ;;  %s12552_s6 = inlined_call_operand.hbm [shape: f32[1,128], index: 6, kind: input, shape index: {}]   ;;  %s12553_s7 = inlined_call_operand.hbm [shape: f32[8,128], index: 7, kind: output, shape index: {}]  }
   0x1   :  { %12567 = sst [smem:[#allocation25_spill]] %s12547_s1 }
   0x2   :  { %12568 = sst [smem:[#allocation26_spill]] %s12549_s3 }
   0x3   :  { %12569 = sst [smem:[#allocation27_spill]] %s12552_s6 }
   0x4   :  { %12 = vsyncpa [#allocation4], 0 }
   0x5   :  { %13 = vsyncpa [#allocation7], 0 }
   0x6   :  { %14 = vsyncpa [#allocation10], 0 }
   0x7   :  { %16 = vsyncpa [#allocation10 + $0x1], 0 }
   0x8   :  { %17 = vsyncpa [#allocation13], 0 }
   0x9   :  { %19 = vsyncpa [#allocation13 + $0x1], 0 }
   0xa   :  { %20 = vsyncpa [#allocation5], 0  ;;  %s11350_s24 = smov 0   ;;  %s11352_s25 = smov 0  }
   0xb   :  { %s11354_s26 = smov 0   ;;  %s11356_s27 = smov 0  }
   0xc LB: > { %12570 = sst [smem:[#allocation22_spill]] %s11288_s26  ;;  %s11369_s28 = sadd.s32 4294967295, %s11292_s27   ;;  %s11292_s27 = sphi %s11356_s27, %s12595_s27   ;;  %s11288_s26 = sphi %s11354_s26, %s12597_s26   ;;  %s11284_s25 = sphi %s11352_s25, %s12599_s25   ;;  %s11280_s24 = sphi %s11350_s24, %s12598_s24  }
   0xd   : > { %p109_p0 = scmp.ne.s32.totalorder %s11284_s25, %s11280_s24  ;;  %p12554_p1 = scmp.eq.s32.totalorder %s11369_s28, 0 }
   0xe   : > { %p6500_p2 = scmp.ge.s32.totalorder %s11292_s27, 1  ;;  %p214_p3 = scmp.lt.s32.totalorder %s11292_s27, 5 }
   0xf   : > { %p11378_p5 = por %p12554_p1, %p109_p0  ;;  %s11294_s8 = smov [#allocation6]  }
  0x10   : > { %p11382_p6 = pnand %p6500_p2, %p214_p3  ;;  %s237_s9 = sshll.u32 %s11294_s8, 4  ;;  %s238_s9 = int_to_ptr.vmem [resolvable:$true] %s237_s9 }
  0x11   : > { %s12571_s29 = scalar_select %p11378_p5, 1, 0 }
  0x12   : > { %s12572_s30 = scalar_select %p11382_p6, 1, 0 }
  0x13   : > { %p9779_p7 = pneg %p11382_p6  ;;  %s11295_s11 = smov [#allocation14]  }
  0x14   : > { %s262_s12 = sshll.u32 %s11295_s11, 4  ;;  %s12574_s1 = sld [smem:[#allocation25_spill]]  ;;  %s11394_s12 = int_to_ptr.vmem [resolvable:$true] %s262_s12 }
  0x15   : > { %p11390_p8 = pnand %p9779_p7, %p12554_p1 }
  0x17   : > { %s12573_s10 = scalar_select %p11390_p8, 1, 0 }
  0x18   : > { %p11404_p10 = pneg %p11390_p8 }
  0x1a   : > { %s11010_s15 = scalar_lea.hbm %s12574_s1, 24576 }
  0x1b   : > { %p11011_p9 = scmp.ne.s32.totalorder %s12574_s1, %s11010_s15  ;;  %p11017_p13 = scmp.lt.u32.totalorder %s11010_s15, %s12574_s1 }
  0x1c   : > { %s12575_s18 = scalar_select %p11404_p10, 1, 0 }
  0x1d   : > { %p11013_p11 = pnand %p11404_p10, %p11011_p9 }
  0x1f   : > { %p11014_p12 = pneg %p11013_p11 }
  0x21   : > { %p11019_p0 = pnand %p11017_p13, %p11014_p12 }
  0x23   : > { %11022 = shalt.err (!%p11019_p0)
}
  0x24   : > { %s11023_s21 = scalar_lea.vmem %s238_s9, 24576  ;;  %p11031_p4 = scmp.lt.s32.totalorder %s238_s9, %s238_s9 }
  0x25   : > { %p11024_p2 = scmp.ne.s32.totalorder %s238_s9, %s11023_s21  ;;  %p11032_p1 = scmp.lt.s32.totalorder %s11023_s21, %s11023_s21 }
  0x27   : > { %p11026_p3 = pnand %p11024_p2, %p11404_p10  ;;  %p11033_p5 = por %p11032_p1, %p11031_p4 }
  0x29   : > { %p11027_p7 = pneg %p11026_p3 }
  0x2b   : > { %p11034_p6 = pnand %p11033_p5, %p11027_p7 }
  0x2d   : > { %11037 = shalt.err (!%p11034_p6)
}
  0x2e   : > { %s11296_s22 = smov 1536   ;;  %s11297_s23 = smov 96  }
  0x2f   : > { %9785 = dma.hbm_to_vmem [thread:$0]  (!%p11390_p8), %s12574_s1, 24576, %s238_s9, [#allocation7], %s11296_s22, %s11296_s22, %s11297_s23  }
  0x30   : > { %s12576_s6 = sld [smem:[#allocation27_spill]] }
  0x36   : > { %s11038_s14 = scalar_lea.hbm %s12576_s6, 16 }
  0x37   : > { %p11039_p9 = scmp.ne.s32.totalorder %s12576_s6, %s11038_s14  ;;  %p11045_p5 = scmp.lt.u32.totalorder %s11038_s14, %s12576_s6 }
  0x39   : > { %p11041_p1 = pnand %p11039_p9, %p11404_p10 }
  0x3b   : > { %p11042_p4 = pneg %p11041_p1 }
  0x3d   : > { %p11047_p6 = pnand %p11045_p5, %p11042_p4 }
  0x3f   : > { %11050 = shalt.err (!%p11047_p6)
}
  0x40   : > { %s11051_s9 = scalar_lea.vmem %s11394_s12, 16  ;;  %s11058_s20 = scalar_lea.vmem %s11394_s12, 32 }
  0x41   : > { %p11052_p11 = scmp.ne.s32.totalorder %s11394_s12, %s11051_s9  ;;  %p11059_p0 = scmp.lt.s32.totalorder %s11394_s12, %s11394_s12 }
  0x42   : > { %p11060_p2 = scmp.lt.s32.totalorder %s11058_s20, %s11051_s9 }
  0x43   : > { %p11054_p12 = pnand %p11052_p11, %p11404_p10 }
  0x44   : > { %p11061_p3 = por %p11060_p2, %p11059_p0 }
  0x45   : > { %p11055_p13 = pneg %p11054_p12 }
  0x47   : > { %p11062_p7 = pnand %p11061_p3, %p11055_p13 }
  0x49   : > { %11065 = shalt.err (!%p11062_p7)
}
  0x4a   : > { %9791 = dma.hbm_to_vmem [thread:$0]  (!%p11390_p8), %s12576_s6, 16, %s11394_s12, [#allocation13]  }
  0x4b   : > { %s11445_s23 = sadd.s32 1, %s11292_s27   ;;  %s96_s24 = sadd.s32 1, %s11288_s26 }
  0x4c   : > { %12577 = sst [smem:[#allocation23_spill]] %s11445_s23  ;;  %s93_s8 = ssub.s32 %s11292_s27, %s11445_s23 }
  0x4d   : > { %p103_p9 = scmp.ne.s32.totalorder %s11288_s26, %s11284_s25  ;;  %p94_p1 = scmp.eq.s32.totalorder %s93_s8, 0 }
  0x4e   : > { %p104_p4 = scmp.eq.s32.totalorder %s11292_s27, 0  ;;  %p9806_p5 = scmp.lt.s32.totalorder %s11292_s27, 4 }
  0x4f   : > { %s12557_s11 = sand.u32 1, %s11292_s27   ;;  %s11459_s14 = sand.u32 1, %s11288_s26  }
  0x50   : > { %s11456_s13 = scalar_select %p94_p1, %s11288_s26, %s96_s24  }
  0x51   : > { %p105_p6 = por %p104_p4, %p103_p9  ;;  %s6527_s15 = sshll.u32 %s11292_s27, 8 }
  0x52   : > { %12578 = sst [smem:[#allocation24_spill]] %s11456_s13  ;;  %s9751_s16 = smul.u32 6144, %s11459_s14 }
  0x53   : > { %s12579_s3 = sld [smem:[#allocation26_spill]]  ;;  %p11468_p11 = pnand %p9806_p5, %p105_p6 }
  0x54   : > { %s277_s20 = scalar_lea.vmem [#allocation9], %s9751_s16  ;;  %s11476_s22 = scalar_lea.sflag [#allocation10], %s12557_s11 }
  0x55   : > { %s12580_s9 = scalar_select %p11468_p11, 1, 0 }
  0x56   : > { %s284_s21 = sshll.u32 %s277_s20, 4  ;;  %p11482_p13 = pneg %p11468_p11  ;;  %s11472_s21 = int_to_ptr.vmem [resolvable:$true] %s284_s21 }
  0x59   : > { %s11466_s19 = scalar_lea.hbm %s12579_s3, %s6527_s15  ;;  %s11071_s16 = scalar_lea.hbm %s12579_s3, 393216 }
  0x5a   : > { %s11066_s24 = scalar_lea.hbm %s11466_s19, 98304  ;;  %p11072_p3 = scmp.lt.u32.totalorder %s11466_s19, %s12579_s3 }
  0x5b   : > { %p11067_p12 = scmp.ne.s32.totalorder %s11466_s19, %s11066_s24  ;;  %p11073_p7 = scmp.lt.u32.totalorder %s11071_s16, %s11066_s24 }
  0x5c   : > { %p11075_p1 = scmp.lt.u32.totalorder %s11066_s24, %s11466_s19 }
  0x5d   : > { %p11069_p0 = pnand %p11482_p13, %p11067_p12  ;;  %p11074_p9 = por %p11073_p7, %p11072_p3 }
  0x5f   : > { %p11070_p2 = pneg %p11069_p0  ;;  %p11076_p4 = por %p11075_p1, %p11074_p9 }
  0x61   : > { %p11077_p5 = pnand %p11076_p4, %p11070_p2 }
  0x63   : > { %11080 = shalt.err (!%p11077_p5)
}
  0x64   : > { %s11081_s11 = scalar_lea.vmem %s11472_s21, 98304  ;;  %s11298_s15 = smov [#allocation9]  }
  0x65   : > { %p11082_p6 = scmp.ne.s32.totalorder %s11472_s21, %s11081_s11  ;;  %s11086_s12 = sshll.u32 %s11298_s15, 4  ;;  %s11087_s12 = int_to_ptr.vmem [resolvable:$false] %s11086_s12 }
  0x66   : > { %s11088_s17 = scalar_lea.vmem %s11087_s12, 196608  ;;  %p11089_p8 = scmp.lt.s32.totalorder %s11472_s21, %s11087_s12 }
  0x67   : > { %p11084_p12 = pnand %p11082_p6, %p11482_p13  ;;  %p11090_p10 = scmp.lt.s32.totalorder %s11088_s17, %s11081_s11 }
  0x69   : > { %p11085_p0 = pneg %p11084_p12  ;;  %p11091_p3 = por %p11090_p10, %p11089_p8 }
  0x6b   : > { %p11092_p7 = pnand %p11091_p3, %p11085_p0 }
  0x6d   : > { %11095 = shalt.err (!%p11092_p7)
}
  0x6e   : > { %s11299_s24 = smov 1024   ;;  %s11300_s16 = smov 256  }
  0x6f   : > { %s11301_s20 = smov 16   ;;  %s11302_s1 = smov [#allocation3]  }
  0x70   : > { %9795 = dma.hbm_to_vmem [thread:$0]  (!%p11468_p11), %s11466_s19, 98304, %s11472_s21, %s11476_s22, %s11299_s24, %s11300_s16, %s11301_s20  }
  0x71   : > { %s227_s3 = sshll.u32 %s11302_s1, 4  ;;  %s11303_s15 = smov [#allocation8]   ;;  %s228_s3 = int_to_ptr.vmem [resolvable:$true] %s227_s3 }
  0x72   : > { %s251_s6 = sshll.u32 %s11303_s15, 4  ;;  %s11096_s17 = scalar_lea.hbm %s12546_s0, 128  ;;  %s11506_s6 = int_to_ptr.vmem [resolvable:$true] %s251_s6 }
  0x73   : > { %p11097_p8 = scmp.ne.s32.totalorder %s12546_s0, %s11096_s17  ;;  %p12582_p10 = scmp.ne.s32.totalorder %s12575_s18, 0 }
  0x74   : > { %p11103_p1 = scmp.lt.u32.totalorder %s11096_s17, %s12546_s0 }
  0x75   : > { %p11099_p2 = pnand %p11097_p8, %p12582_p10 }
  0x77   : > { %p11100_p9 = pneg %p11099_p2 }
  0x79   : > { %p11105_p4 = pnand %p11103_p1, %p11100_p9 }
  0x7b   : > { %11108 = shalt.err (!%p11105_p4)
}
  0x7c   : > { %s11109_s1 = scalar_lea.vmem %s228_s3, 128  ;;  %p11117_p0 = scmp.lt.s32.totalorder %s228_s3, %s228_s3 }
  0x7d   : > { %p11110_p5 = scmp.ne.s32.totalorder %s228_s3, %s11109_s1  ;;  %p11118_p3 = scmp.lt.s32.totalorder %s11109_s1, %s11109_s1 }
  0x7f   : > { %p11112_p6 = pnand %p11110_p5, %p12582_p10  ;;  %p11119_p7 = por %p11118_p3, %p11117_p0 }
  0x81   : > { %p11113_p12 = pneg %p11112_p6 }
  0x83   : > { %p11120_p11 = pnand %p11119_p7, %p11113_p12 }
  0x85   : > { %11123 = shalt.err (!%p11120_p11)
}
  0x86   : > { %p12583_p8 = scmp.ne.s32.totalorder %s12573_s10, 0  ;;  %s11124_s24 = scalar_lea.hbm %s12548_s2, 384 }
  0x87   : > { %p11125_p2 = scmp.ne.s32.totalorder %s12548_s2, %s11124_s24  ;;  %p11131_p11 = scmp.lt.u32.totalorder %s11124_s24, %s12548_s2 }
  0x88   : > { %9782 = dma.hbm_to_vmem [thread:$0]  (!%p12583_p8), %s12546_s0, 128, %s228_s3, [#allocation4]  }
  0x89   : > { %p11127_p9 = pnand %p11125_p2, %p12582_p10 }
  0x8b   : > { %p11128_p1 = pneg %p11127_p9 }
  0x8d   : > { %p11133_p4 = pnand %p11131_p11, %p11128_p1 }
  0x8f   : > { %11136 = shalt.err (!%p11133_p4)
}
  0x90   : > { %s11137_s3 = scalar_lea.vmem %s11506_s6, 384  ;;  %p11145_p0 = scmp.lt.s32.totalorder %s11506_s6, %s11506_s6 }
  0x91   : > { %p11138_p5 = scmp.ne.s32.totalorder %s11506_s6, %s11137_s3  ;;  %p11146_p3 = scmp.lt.s32.totalorder %s11137_s3, %s11137_s3 }
  0x93   : > { %p11140_p6 = pnand %p11138_p5, %p12582_p10  ;;  %p11147_p7 = por %p11146_p3, %p11145_p0 }
  0x95   : > { %p11141_p12 = pneg %p11140_p6 }
  0x97   : > { %p11148_p2 = pnand %p11147_p7, %p11141_p12 }
  0x99   : > { %11151 = shalt.err (!%p11148_p2)
}
  0x9a   : > { %9788 = dma.hbm_to_vmem [thread:$0]  (!%p12583_p8), %s12548_s2, 384, %s11506_s6, [#allocation7]  }
  0x9b   : > { %s6508_s18 = sshll.u32 %s11459_s14, 2  ;;  %s6528_s19 = sshll.u32 %s11292_s27, 6 }
  0x9c   : > { %s11554_s13 = scalar_lea.hbm %s12550_s4, %s6528_s19  ;;  %s298_s10 = scalar_lea.vmem [#allocation11], %s6508_s18 }
  0x9d   : > { %s306_s23 = sshll.u32 %s298_s10, 4  ;;  %s6511_s21 = sshll.u32 %s11459_s14, 8  ;;  %s307_s23 = int_to_ptr.vmem [resolvable:$true] %s306_s23 }
  0x9e   : > { %s11152_s24 = scalar_lea.hbm %s11554_s13, 64  ;;  %s11157_s20 = scalar_lea.hbm %s12550_s4, 256 }
  0x9f   : > { %p11153_p10 = scmp.ne.s32.totalorder %s11554_s13, %s11152_s24  ;;  %p11158_p1 = scmp.lt.u32.totalorder %s11554_s13, %s12550_s4 }
  0xa0   : > { %p11159_p11 = scmp.lt.u32.totalorder %s11157_s20, %s11152_s24  ;;  %p11161_p5 = scmp.lt.u32.totalorder %s11152_s24, %s11554_s13 }
  0xa1   : > { %p11155_p9 = pnand %p11153_p10, %p11482_p13 }
  0xa2   : > { %p11160_p4 = por %p11159_p11, %p11158_p1 }
  0xa3   : > { %p11156_p8 = pneg %p11155_p9 }
  0xa4   : > { %p11162_p6 = por %p11161_p5, %p11160_p4 }
  0xa6   : > { %p11163_p12 = pnand %p11162_p6, %p11156_p8 }
  0xa8   : > { %11166 = shalt.err (!%p11163_p12)
}
  0xa9   : > { %s11167_s3 = scalar_lea.vmem %s307_s23, 64  ;;  %s11304_s12 = smov [#allocation11]  }
  0xaa   : > { %p11168_p0 = scmp.ne.s32.totalorder %s307_s23, %s11167_s3  ;;  %s11172_s17 = sshll.u32 %s11304_s12, 4  ;;  %s11173_s17 = int_to_ptr.vmem [resolvable:$false] %s11172_s17 }
  0xab   : > { %s11174_s18 = scalar_lea.vmem %s11173_s17, 128  ;;  %p11175_p2 = scmp.lt.s32.totalorder %s307_s23, %s11173_s17 }
  0xac   : > { %p11170_p3 = pnand %p11168_p0, %p11482_p13  ;;  %p11176_p10 = scmp.lt.s32.totalorder %s11174_s18, %s11167_s3 }
  0xae   : > { %p11171_p7 = pneg %p11170_p3  ;;  %p11177_p9 = por %p11176_p10, %p11175_p2 }
  0xb0   : > { %p11178_p1 = pnand %p11177_p9, %p11171_p7 }
  0xb2   : > { %11181 = shalt.err (!%p11178_p1)
}
  0xb3   : > { %p12584_p11 = scmp.ne.s32.totalorder %s12580_s9, 0  ;;  %s6529_s19 = sshll.u32 %s11292_s27, 12 }
  0xb4   : > { %s11579_s10 = scalar_lea.hbm %s12551_s5, %s6529_s19  ;;  %s317_s24 = scalar_lea.vmem [#allocation12], %s6511_s21 }
  0xb5   : > { %9798 = dma.hbm_to_vmem [thread:$0]  (!%p12584_p11), %s11554_s13, 64, %s307_s23, %s11476_s22  }
  0xb6   : > { %s324_s6 = sshll.u32 %s317_s24, 4  ;;  %s12585_s16 = sand.u32 1, %s11292_s27   ;;  %s11583_s6 = int_to_ptr.vmem [resolvable:$true] %s324_s6 }
  0xb7   : > { %s11587_s20 = scalar_lea.sflag [#allocation13], %s12585_s16  ;;  %s11182_s15 = scalar_lea.hbm %s11579_s10, 4096 }
  0xb8   : > { %p11183_p8 = scmp.ne.s32.totalorder %s11579_s10, %s11182_s15  ;;  %s11187_s14 = scalar_lea.hbm %s12551_s5, 16384 }
  0xb9   : > { %p11188_p6 = scmp.lt.u32.totalorder %s11579_s10, %s12551_s5  ;;  %p11189_p12 = scmp.lt.u32.totalorder %s11187_s14, %s11182_s15 }
  0xba   : > { %p11185_p4 = pnand %p11183_p8, %p11482_p13  ;;  %p11191_p3 = scmp.lt.u32.totalorder %s11182_s15, %s11579_s10 }
  0xbb   : > { %p11190_p0 = por %p11189_p12, %p11188_p6 }
  0xbc   : > { %p11186_p5 = pneg %p11185_p4 }
  0xbd   : > { %p11192_p7 = por %p11191_p3, %p11190_p0 }
  0xbf   : > { %p11193_p2 = pnand %p11192_p7, %p11186_p5 }
  0xc1   : > { %11196 = shalt.err (!%p11193_p2)
}
  0xc2   : > { %s11197_s27 = scalar_lea.vmem %s11583_s6, 4096  ;;  %s11305_s21 = smov [#allocation12]  }
  0xc3   : > { %p11198_p10 = scmp.ne.s32.totalorder %s11583_s6, %s11197_s27  ;;  %s11202_s3 = sshll.u32 %s11305_s21, 4  ;;  %s11203_s3 = int_to_ptr.vmem [resolvable:$false] %s11202_s3 }
  0xc4   : > { %s11204_s12 = scalar_lea.vmem %s11203_s3, 8192  ;;  %p11205_p8 = scmp.lt.s32.totalorder %s11583_s6, %s11203_s3 }
  0xc5   : > { %p11200_p9 = pnand %p11198_p10, %p11482_p13  ;;  %p11206_p4 = scmp.lt.s32.totalorder %s11204_s12, %s11197_s27 }
  0xc7   : > { %p11201_p1 = pneg %p11200_p9  ;;  %p11207_p6 = por %p11206_p4, %p11205_p8 }
  0xc9   : > { %p11208_p12 = pnand %p11207_p6, %p11201_p1 }
  0xcb   : > { %11211 = shalt.err (!%p11208_p12)
}
  0xcc   : > { %s11306_s17 = smov 64   ;;  %s11307_s18 = smov 4  }
  0xcd   : > { %9801 = dma.hbm_to_vmem [thread:$0]  (!%p12584_p11), %s11579_s10, 4096, %s11583_s6, %s11587_s20, %s11306_s17, %s11306_s17, %s11307_s18  }
  0xce   : > { %p12586_p13 = scmp.ne.s32.totalorder %s12572_s30, 0 }
  0xcf   : > { %p12587_p5 = scmp.eq.s32.totalorder (!%p12586_p13), %s11369_s28, 0 }
  0xd0   : > { %336 = sbr.rel (%p12586_p13) target bundleno = 1868 (0x74c), region = 48 }
  0xd7   : > { %11255 = dma.done.wait (%p12587_p5), [#allocation4], 128   ;;  %p12588_p0 = pmov %p12587_p5 }
  0xd9   : > { %11257 = vsyncadd (%p12588_p0), [#allocation4], 4294967168  ;;  %p12589_p3 = pmov %p12588_p0 }
  0xda   : > { %p12590_p7 = pmov %p12588_p0 }
  0xdb   : > { %11259 = dma.done.wait (%p12589_p3), [#allocation7], 24960  }
  0xdc   : > { %11261 = vsyncadd (%p12590_p7), [#allocation7], 4294942336  ;;  %s350_s9 = sand.u32 1, %s11369_s28   ;;  %s352_s8 = sand.u32 1, %s11284_s25  }
  0xdd   : > { %s9752_s19 = smul.u32 6144, %s352_s8  ;;  %s351_s30 = scalar_lea.sflag [#allocation10], %s350_s9 }
  0xde   : > { %p12591_p11 = scmp.ne.s32.totalorder %s12571_s29, 0 }
  0xdf   : > { %s11623_s1 = scalar_lea.vmem [#allocation9], %s9752_s19 }
  0xe0   : > { %11263 = dma.done.wait (%p12591_p11), %s351_s30, 98368  }
  0xe1   : > { %11265 = vsyncadd (%p12591_p11), %s351_s30, 4294868928  ;;  %s6518_s26 = sshll.u32 %s352_s8, 2  ;;  %s6519_s10 = sshll.u32 %s352_s8, 8 }
  0xe2   : > { %s11629_s24 = scalar_lea.vmem [#allocation11], %s6518_s26  ;;  %s369_s6 = scalar_lea.sflag [#allocation13], %s350_s9 }
  0xe3   : > { %s11631_s16 = scalar_lea.vmem [#allocation12], %s6519_s10 }
  0xe4   : > { %11267 = dma.done.wait (%p12591_p11), %s369_s6, 4096  }
  0xe5   : > { %11269 = vsyncadd (%p12591_p11), %s369_s6, 4294963200  ;;  %p12592_p2 = pmov %p12588_p0 }
  0xe6   : > { %p12593_p10 = pmov %p12588_p0 }
  0xe7   : > { %11271 = dma.done.wait (%p12592_p2), [#allocation13], 16  }
  0xe8   : > { %11273 = vsyncadd (%p12593_p10), [#allocation13], 4294967280  ;;  %p12594_p9 = scmp.ne.s32.totalorder %s11369_s28, 0 }
  0xe9   : > { %v420_v0 = vld [vmem:[#allocation6] sm:$0xff] (!%p12594_p9)  ;;  %v421_v2 = vld [vmem:[#allocation6 + $0x8] sm:$0xff] (!%p12594_p9)  ;;  %v11308_v8 = vmov (!%p12594_p9), 0.0   ;;  %v422_v63 = vld [vmem:[#allocation6 + $0x10] sm:$0xff] (!%p12594_p9) }
  0xea   : > { %418 = sbr.rel (%p12594_p9) target bundleno = 647 (0x287), region = 80  ;;  %v432_v1 = vld [vmem:[#allocation6 + $0x60] sm:$0xff] (!%p12594_p9)  ;;  %v433_v4 = vld [vmem:[#allocation6 + $0x68] sm:$0xff] (!%p12594_p9)  ;;  %1186 = vmatprep.mubr.f32.mxu0 (!%p12594_p9), %v11308_v8  ;;  %1257 = vmatprep.mubr.f32.mxu1 (!%p12594_p9), %v11308_v8 }
  0xeb   : > { %v8791_v3 = vcombine.high (!%p12594_p9), %v420_v0, %v432_v1  ;;  %v8792_v5 = vcombine.low (!%p12594_p9), %v420_v0, %v432_v1  ;;  %v444_v6 = vld [vmem:[#allocation6 + $0xc0] sm:$0xff] (!%p12594_p9)  ;;  %v8807_v9 = vcombine.high (!%p12594_p9), %v421_v2, %v433_v4  ;;  %v8808_v10 = vcombine.low (!%p12594_p9), %v421_v2, %v433_v4  ;;  %v445_v12 = vld [vmem:[#allocation6 + $0xc8] sm:$0xff] (!%p12594_p9)  ;;  %v434_v0 = vld [vmem:[#allocation6 + $0x70] sm:$0xff] (!%p12594_p9) }
  0xec   : > { %v456_v7 = vld [vmem:[#allocation6 + $0x120] sm:$0xff] (!%p12594_p9)  ;;  %v457_v13 = vld [vmem:[#allocation6 + $0x128] sm:$0xff] (!%p12594_p9)  ;;  %v423_v1 = vld [vmem:[#allocation6 + $0x18] sm:$0xff] (!%p12594_p9) }
  0xed   : > { %v8793_v11 = vcombine.high (!%p12594_p9), %v444_v6, %v456_v7  ;;  %v468_v14 = vld [vmem:[#allocation6 + $0x180] sm:$0xff] (!%p12594_p9)  ;;  %6760 = vmatprep.subr.bf16.mxu0 (!%p12594_p9), %v8791_v3  ;;  %v8809_v15 = vcombine.high (!%p12594_p9), %v445_v12, %v457_v13  ;;  %v469_v17 = vld [vmem:[#allocation6 + $0x188] sm:$0xff] (!%p12594_p9)  ;;  %6792 = vmatprep.subr.bf16.mxu1 (!%p12594_p9), %v8807_v9  ;;  %v8794_v19 = vcombine.low (!%p12594_p9), %v444_v6, %v456_v7  ;;  %v435_v2 = vld [vmem:[#allocation6 + $0x78] sm:$0xff] (!%p12594_p9) }
  0xee   : > { %v480_v16 = vld [vmem:[#allocation6 + $0x1e0] sm:$0xff] (!%p12594_p9)  ;;  %v481_v18 = vld [vmem:[#allocation6 + $0x1e8] sm:$0xff] (!%p12594_p9)  ;;  %6762 = vmatpush1.bf16.msra.mxu0 (!%p12594_p9), %v8792_v5  ;;  %6794 = vmatpush1.bf16.msra.mxu1 (!%p12594_p9), %v8808_v10  ;;  %v8810_v20 = vcombine.low (!%p12594_p9), %v445_v12, %v457_v13  ;;  %v8823_v5 = vcombine.high (!%p12594_p9), %v422_v63, %v434_v0  ;;  %v8839_v6 = vcombine.high (!%p12594_p9), %v423_v1, %v435_v2  ;;  %v446_v7 = vld [vmem:[#allocation6 + $0xd0] sm:$0xff] (!%p12594_p9) }
  0xef   : > { %6764 = vmatprep.subr.bf16.mxu0 (!%p12594_p9), %v8793_v11  ;;  %v8795_v21 = vcombine.high (!%p12594_p9), %v468_v14, %v480_v16  ;;  %6796 = vmatprep.subr.bf16.mxu1 (!%p12594_p9), %v8809_v15  ;;  %v8811_v22 = vcombine.high (!%p12594_p9), %v469_v17, %v481_v18  ;;  %v492_v23 = vld [vmem:[#allocation6 + $0x240] sm:$0xff] (!%p12594_p9)  ;;  %v493_v25 = vld [vmem:[#allocation6 + $0x248] sm:$0xff] (!%p12594_p9)  ;;  %v8796_v27 = vcombine.low (!%p12594_p9), %v468_v14, %v480_v16  ;;  %v458_v9 = vld [vmem:[#allocation6 + $0x130] sm:$0xff] (!%p12594_p9) }
  0xf0   : > { %v504_v24 = vld [vmem:[#allocation6 + $0x2a0] sm:$0xff] (!%p12594_p9)  ;;  %v505_v26 = vld [vmem:[#allocation6 + $0x2a8] sm:$0xff] (!%p12594_p9)  ;;  %v8812_v28 = vcombine.low (!%p12594_p9), %v469_v17, %v481_v18  ;;  %v447_v10 = vld [vmem:[#allocation6 + $0xd8] sm:$0xff] (!%p12594_p9)  ;;  %v8824_v13 = vcombine.low (!%p12594_p9), %v422_v63, %v434_v0  ;;  %v8840_v14 = vcombine.low (!%p12594_p9), %v423_v1, %v435_v2  ;;  %v8825_v15 = vcombine.high (!%p12594_p9), %v446_v7, %v458_v9 }
  0xf1   : > { %v8797_v29 = vcombine.high %v492_v23, %v504_v24  ;;  %v8813_v30 = vcombine.high %v493_v25, %v505_v26  ;;  %v516_v31 = vld [vmem:[#allocation6 + $0x300] sm:$0xff]  ;;  %v517_v33 = vld [vmem:[#allocation6 + $0x308] sm:$0xff]  ;;  %v8798_v35 = vcombine.low %v492_v23, %v504_v24  ;;  %v8814_v36 = vcombine.low %v493_v25, %v505_v26  ;;  %v459_v11 = vld [vmem:[#allocation6 + $0x138] sm:$0xff] }
  0xf2   : > { %6766 = vmatpush1.bf16.msra.mxu0 %v8794_v19  ;;  %6798 = vmatpush1.bf16.msra.mxu1 %v8810_v20  ;;  %v528_v32 = vld [vmem:[#allocation6 + $0x360] sm:$0xff]  ;;  %v529_v34 = vld [vmem:[#allocation6 + $0x368] sm:$0xff]  ;;  %v11645_v12 = vld [vmem:[#allocation3] sm:$0xff]  ;;  %v8841_v16 = vcombine.high %v447_v10, %v459_v11 }
  0xf3   : > { %6768 = vmatprep.subr.bf16.mxu0 %v8795_v21  ;;  %6800 = vmatprep.subr.bf16.mxu1 %v8811_v22  ;;  %v8799_v37 = vcombine.high %v516_v31, %v528_v32  ;;  %v8815_v38 = vcombine.high %v517_v33, %v529_v34  ;;  %v540_v39 = vld [vmem:[#allocation6 + $0x3c0] sm:$0xff]  ;;  %v541_v41 = vld [vmem:[#allocation6 + $0x3c8] sm:$0xff]  ;;  %v8800_v43 = vcombine.low %v516_v31, %v528_v32  ;;  %v470_v17 = vld [vmem:[#allocation6 + $0x190] sm:$0xff] }
  0xf4   : > { %v552_v40 = vld [vmem:[#allocation6 + $0x420] sm:$0xff]  ;;  %v553_v42 = vld [vmem:[#allocation6 + $0x428] sm:$0xff]  ;;  %v8816_v44 = vcombine.low %v517_v33, %v529_v34  ;;  %v482_v18 = vld [vmem:[#allocation6 + $0x1f0] sm:$0xff]  ;;  %v8826_v21 = vcombine.low %v446_v7, %v458_v9  ;;  %v8842_v22 = vcombine.low %v447_v10, %v459_v11 }
  0xf5   : > { %v8801_v45 = vcombine.high %v540_v39, %v552_v40  ;;  %v8817_v46 = vcombine.high %v541_v41, %v553_v42  ;;  %v564_v47 = vld [vmem:[#allocation6 + $0x480] sm:$0xff]  ;;  %v565_v49 = vld [vmem:[#allocation6 + $0x488] sm:$0xff]  ;;  %v8802_v51 = vcombine.low %v540_v39, %v552_v40  ;;  %v8818_v52 = vcombine.low %v541_v41, %v553_v42  ;;  %v471_v19 = vld [vmem:[#allocation6 + $0x198] sm:$0xff] }
  0xf6   : > { %6770 = vmatpush1.bf16.msra.mxu0 %v8796_v27  ;;  %6802 = vmatpush1.bf16.msra.mxu1 %v8812_v28  ;;  %v576_v48 = vld [vmem:[#allocation6 + $0x4e0] sm:$0xff]  ;;  %v577_v50 = vld [vmem:[#allocation6 + $0x4e8] sm:$0xff]  ;;  %v483_v20 = vld [vmem:[#allocation6 + $0x1f8] sm:$0xff]  ;;  %v8827_v23 = vcombine.high %v470_v17, %v482_v18 }
  0xf7   : > { %6772 = vmatprep.subr.bf16.mxu0 %v8797_v29  ;;  %6804 = vmatprep.subr.bf16.mxu1 %v8813_v30  ;;  %v8803_v53 = vcombine.high %v564_v47, %v576_v48  ;;  %v8819_v54 = vcombine.high %v565_v49, %v577_v50  ;;  %v588_v55 = vld [vmem:[#allocation6 + $0x540] sm:$0xff]  ;;  %v589_v57 = vld [vmem:[#allocation6 + $0x548] sm:$0xff]  ;;  %v8804_v59 = vcombine.low %v564_v47, %v576_v48  ;;  %v494_v25 = vld [vmem:[#allocation6 + $0x250] sm:$0xff] }
  0xf8   : > { %v600_v56 = vld [vmem:[#allocation6 + $0x5a0] sm:$0xff]  ;;  %v601_v58 = vld [vmem:[#allocation6 + $0x5a8] sm:$0xff]  ;;  %v8820_v60 = vcombine.low %v565_v49, %v577_v50  ;;  %v8843_v24 = vcombine.high %v471_v19, %v483_v20  ;;  %v506_v26 = vld [vmem:[#allocation6 + $0x2b0] sm:$0xff]  ;;  %v8828_v29 = vcombine.low %v470_v17, %v482_v18  ;;  %v8844_v30 = vcombine.low %v471_v19, %v483_v20 }
  0xf9   : > { %v8805_v61 = vcombine.high %v588_v55, %v600_v56  ;;  %v8821_v62 = vcombine.high %v589_v57, %v601_v58  ;;  %v8806_v3 = vcombine.low %v588_v55, %v600_v56  ;;  %v8822_v4 = vcombine.low %v589_v57, %v601_v58  ;;  %v495_v27 = vld [vmem:[#allocation6 + $0x258] sm:$0xff]  ;;  %v518_v33 = vld [vmem:[#allocation6 + $0x310] sm:$0xff]  ;;  %v424_v1 = vld [vmem:[#allocation6 + $0x20] sm:$0xff] }
  0xfa   : > { %6774 = vmatpush1.bf16.msra.mxu0 %v8798_v35  ;;  %6806 = vmatpush1.bf16.msra.mxu1 %v8814_v36  ;;  %v507_v28 = vld [vmem:[#allocation6 + $0x2b8] sm:$0xff]  ;;  %v8829_v31 = vcombine.high %v494_v25, %v506_v26  ;;  %v530_v34 = vld [vmem:[#allocation6 + $0x370] sm:$0xff]  ;;  %v436_v2 = vld [vmem:[#allocation6 + $0x80] sm:$0xff] }
  0xfb   : > { %6776 = vmatprep.subr.bf16.mxu0 %v8799_v37  ;;  %6808 = vmatprep.subr.bf16.mxu1 %v8815_v38  ;;  %v8845_v32 = vcombine.high %v495_v27, %v507_v28  ;;  %v519_v35 = vld [vmem:[#allocation6 + $0x318] sm:$0xff]  ;;  %v8830_v37 = vcombine.low %v494_v25, %v506_v26  ;;  %v8846_v38 = vcombine.low %v495_v27, %v507_v28  ;;  %v542_v41 = vld [vmem:[#allocation6 + $0x3d0] sm:$0xff]  ;;  %v448_v10 = vld [vmem:[#allocation6 + $0xe0] sm:$0xff] }
  0xfc   : > { %v531_v36 = vld [vmem:[#allocation6 + $0x378] sm:$0xff]  ;;  %v8831_v39 = vcombine.high %v518_v33, %v530_v34  ;;  %v554_v42 = vld [vmem:[#allocation6 + $0x430] sm:$0xff]  ;;  %v8855_v7 = vcombine.high %v424_v1, %v436_v2  ;;  %v460_v11 = vld [vmem:[#allocation6 + $0x140] sm:$0xff] }
  0xfd   : > { %v8847_v40 = vcombine.high %v519_v35, %v531_v36  ;;  %v8833_v47 = vcombine.high %v542_v41, %v554_v42  ;;  %v566_v49 = vld [vmem:[#allocation6 + $0x490] sm:$0xff]  ;;  %v8857_v17 = vcombine.high %v448_v10, %v460_v11  ;;  %v472_v19 = vld [vmem:[#allocation6 + $0x1a0] sm:$0xff] }
  0xfe   : > { %6778 = vmatpush1.bf16.msra.mxu0 %v8800_v43  ;;  %6810 = vmatpush1.bf16.msra.mxu1 %v8816_v44  ;;  %v543_v43 = vld [vmem:[#allocation6 + $0x3d8] sm:$0xff]  ;;  %v578_v50 = vld [vmem:[#allocation6 + $0x4f0] sm:$0xff]  ;;  %v484_v20 = vld [vmem:[#allocation6 + $0x200] sm:$0xff] }
  0xff   : > { %6780 = vmatprep.subr.bf16.mxu0 %v8801_v45  ;;  %6812 = vmatprep.subr.bf16.mxu1 %v8817_v46  ;;  %v555_v44 = vld [vmem:[#allocation6 + $0x438] sm:$0xff]  ;;  %v8832_v45 = vcombine.low %v518_v33, %v530_v34  ;;  %v8848_v46 = vcombine.low %v519_v35, %v531_v36  ;;  %v8835_v55 = vcombine.high %v566_v49, %v578_v50  ;;  %v590_v57 = vld [vmem:[#allocation6 + $0x550] sm:$0xff]  ;;  %v496_v27 = vld [vmem:[#allocation6 + $0x260] sm:$0xff] }
 0x100   : > { %v8849_v48 = vcombine.high %v543_v43, %v555_v44  ;;  %v602_v58 = vld [vmem:[#allocation6 + $0x5b0] sm:$0xff]  ;;  %v8859_v25 = vcombine.high %v472_v19, %v484_v20  ;;  %v508_v28 = vld [vmem:[#allocation6 + $0x2c0] sm:$0xff] }
 0x101   : > { %v8837_v63 = vcombine.high %v590_v57, %v602_v58  ;;  %v8861_v33 = vcombine.high %v496_v27, %v508_v28  ;;  %v520_v35 = vld [vmem:[#allocation6 + $0x320] sm:$0xff] }
 0x102   : > { %6782 = vmatpush1.bf16.msra.mxu0 %v8802_v51  ;;  %6814 = vmatpush1.bf16.msra.mxu1 %v8818_v52  ;;  %v567_v51 = vld [vmem:[#allocation6 + $0x498] sm:$0xff]  ;;  %v532_v36 = vld [vmem:[#allocation6 + $0x380] sm:$0xff] }
 0x103   : > { %6784 = vmatprep.subr.bf16.mxu0 %v8803_v53  ;;  %6816 = vmatprep.subr.bf16.mxu1 %v8819_v54  ;;  %v579_v52 = vld [vmem:[#allocation6 + $0x4f8] sm:$0xff]  ;;  %v8834_v53 = vcombine.low %v542_v41, %v554_v42  ;;  %v8850_v54 = vcombine.low %v543_v43, %v555_v44  ;;  %v8863_v41 = vcombine.high %v520_v35, %v532_v36  ;;  %v544_v43 = vld [vmem:[#allocation6 + $0x3e0] sm:$0xff] }
 0x104   : > { %v8851_v56 = vcombine.high %v567_v51, %v579_v52  ;;  %v556_v44 = vld [vmem:[#allocation6 + $0x440] sm:$0xff] }
 0x106   : > { %6786 = vmatpush1.bf16.msra.mxu0 %v8804_v59  ;;  %6818 = vmatpush1.bf16.msra.mxu1 %v8820_v60  ;;  %v591_v59 = vld [vmem:[#allocation6 + $0x558] sm:$0xff] }
 0x107   : > { %6788 = vmatprep.subr.bf16.mxu0 %v8805_v61  ;;  %6820 = vmatprep.subr.bf16.mxu1 %v8821_v62  ;;  %v603_v60 = vld [vmem:[#allocation6 + $0x5b8] sm:$0xff]  ;;  %v8836_v61 = vcombine.low %v566_v49, %v578_v50  ;;  %v8852_v62 = vcombine.low %v567_v51, %v579_v52  ;;  %v8865_v49 = vcombine.high %v544_v43, %v556_v44  ;;  %v568_v51 = vld [vmem:[#allocation6 + $0x4a0] sm:$0xff] }
 0x108   : > { %v8853_v0 = vcombine.high %v591_v59, %v603_v60  ;;  %v580_v52 = vld [vmem:[#allocation6 + $0x500] sm:$0xff] }
 0x10a   : > { %6790 = vmatpush1.bf16.msra.mxu0 %v8806_v3  ;;  %6822 = vmatpush1.bf16.msra.mxu1 %v8822_v4  ;;  %v425_v3 = vld [vmem:[#allocation6 + $0x28] sm:$0xff] }
 0x10b   : > { %6824 = vmatprep.subr.bf16.mxu0 %v8823_v5  ;;  %6856 = vmatprep.subr.bf16.mxu1 %v8839_v6  ;;  %v437_v4 = vld [vmem:[#allocation6 + $0x88] sm:$0xff]  ;;  %v8838_v5 = vcombine.low %v590_v57, %v602_v58  ;;  %v8854_v6 = vcombine.low %v591_v59, %v603_v60  ;;  %v8867_v57 = vcombine.high %v568_v51, %v580_v52  ;;  %v592_v59 = vld [vmem:[#allocation6 + $0x560] sm:$0xff] }
 0x10c   : > { %v8871_v9 = vcombine.high %v425_v3, %v437_v4  ;;  %v604_v60 = vld [vmem:[#allocation6 + $0x5c0] sm:$0xff] }
 0x10d   : > { %1187 = vmatmul.mubr.f32.vlgmr.msra.gmra.mrb[0].mxu0 %v11645_v12  ;;  %1258 = vmatmul.mubr.f32.vlgmr.msra.gmra.mrb[0].mxu1 %v11645_v12 }
 0x10e   : > { %6826 = vmatpush1.bf16.msra.mxu0 %v8824_v13  ;;  %6858 = vmatpush1.bf16.msra.mxu1 %v8840_v14  ;;  %v449_v13 = vld [vmem:[#allocation6 + $0xe8] sm:$0xff] }
 0x10f   : > { %6828 = vmatprep.subr.bf16.mxu0 %v8825_v15  ;;  %6860 = vmatprep.subr.bf16.mxu1 %v8841_v16  ;;  %v461_v14 = vld [vmem:[#allocation6 + $0x148] sm:$0xff]  ;;  %v8856_v15 = vcombine.low %v424_v1, %v436_v2  ;;  %v8872_v16 = vcombine.low %v425_v3, %v437_v4  ;;  %v8869_v1 = vcombine.high %v592_v59, %v604_v60  ;;  %v426_v3 = vld [vmem:[#allocation6 + $0x30] sm:$0xff] }
 0x110   : > { %1328 = vmatprep.mubr.f32.mxu0 %v11308_v8  ;;  %1399 = vmatprep.mubr.f32.mxu1 %v11308_v8  ;;  %v8873_v18 = vcombine.high %v449_v13, %v461_v14  ;;  %v438_v4 = vld [vmem:[#allocation6 + $0x90] sm:$0xff] }
 0x112   : > { %6830 = vmatpush1.bf16.msra.mxu0 %v8826_v21  ;;  %6862 = vmatpush1.bf16.msra.mxu1 %v8842_v22  ;;  %v473_v21 = vld [vmem:[#allocation6 + $0x1a8] sm:$0xff] }
 0x113   : > { %6832 = vmatprep.subr.bf16.mxu0 %v8827_v23  ;;  %6864 = vmatprep.subr.bf16.mxu1 %v8843_v24  ;;  %v485_v22 = vld [vmem:[#allocation6 + $0x208] sm:$0xff]  ;;  %v8858_v23 = vcombine.low %v448_v10, %v460_v11  ;;  %v8874_v24 = vcombine.low %v449_v13, %v461_v14  ;;  %v8887_v10 = vcombine.high %v426_v3, %v438_v4  ;;  %v450_v13 = vld [vmem:[#allocation6 + $0xf0] sm:$0xff] }
 0x114   : > { %v8875_v26 = vcombine.high %v473_v21, %v485_v22  ;;  %v462_v14 = vld [vmem:[#allocation6 + $0x150] sm:$0xff] }
 0x116   : > { %6834 = vmatpush1.bf16.msra.mxu0 %v8828_v29  ;;  %6866 = vmatpush1.bf16.msra.mxu1 %v8844_v30  ;;  %v497_v29 = vld [vmem:[#allocation6 + $0x268] sm:$0xff] }
 0x117   : > { %6836 = vmatprep.subr.bf16.mxu0 %v8829_v31  ;;  %6868 = vmatprep.subr.bf16.mxu1 %v8845_v32  ;;  %v509_v30 = vld [vmem:[#allocation6 + $0x2c8] sm:$0xff]  ;;  %v8860_v31 = vcombine.low %v472_v19, %v484_v20  ;;  %v8876_v32 = vcombine.low %v473_v21, %v485_v22  ;;  %v8889_v19 = vcombine.high %v450_v13, %v462_v14  ;;  %v474_v21 = vld [vmem:[#allocation6 + $0x1b0] sm:$0xff] }
 0x118   : > { %v8877_v34 = vcombine.high %v497_v29, %v509_v30  ;;  %v486_v22 = vld [vmem:[#allocation6 + $0x210] sm:$0xff] }
 0x11a   : > { %6838 = vmatpush1.bf16.msra.mxu0 %v8830_v37  ;;  %6870 = vmatpush1.bf16.msra.mxu1 %v8846_v38  ;;  %v521_v37 = vld [vmem:[#allocation6 + $0x328] sm:$0xff] }
 0x11b   : > { %6840 = vmatprep.subr.bf16.mxu0 %v8831_v39  ;;  %6872 = vmatprep.subr.bf16.mxu1 %v8847_v40  ;;  %v533_v38 = vld [vmem:[#allocation6 + $0x388] sm:$0xff]  ;;  %v8862_v39 = vcombine.low %v496_v27, %v508_v28  ;;  %v8878_v40 = vcombine.low %v497_v29, %v509_v30  ;;  %v8891_v27 = vcombine.high %v474_v21, %v486_v22  ;;  %v498_v29 = vld [vmem:[#allocation6 + $0x270] sm:$0xff] }
 0x11c   : > { %v8879_v42 = vcombine.high %v521_v37, %v533_v38  ;;  %v510_v30 = vld [vmem:[#allocation6 + $0x2d0] sm:$0xff] }
 0x11e   : > { %6842 = vmatpush1.bf16.msra.mxu0 %v8832_v45  ;;  %6874 = vmatpush1.bf16.msra.mxu1 %v8848_v46  ;;  %v545_v45 = vld [vmem:[#allocation6 + $0x3e8] sm:$0xff] }
 0x11f   : > { %6844 = vmatprep.subr.bf16.mxu0 %v8833_v47  ;;  %6876 = vmatprep.subr.bf16.mxu1 %v8849_v48  ;;  %v557_v46 = vld [vmem:[#allocation6 + $0x448] sm:$0xff]  ;;  %v8864_v47 = vcombine.low %v520_v35, %v532_v36  ;;  %v8880_v48 = vcombine.low %v521_v37, %v533_v38  ;;  %v8893_v35 = vcombine.high %v498_v29, %v510_v30  ;;  %v522_v37 = vld [vmem:[#allocation6 + $0x330] sm:$0xff] }
 0x120   : > { %v8881_v50 = vcombine.high %v545_v45, %v557_v46  ;;  %v534_v38 = vld [vmem:[#allocation6 + $0x390] sm:$0xff] }
 0x122   : > { %6846 = vmatpush1.bf16.msra.mxu0 %v8834_v53  ;;  %6878 = vmatpush1.bf16.msra.mxu1 %v8850_v54  ;;  %v569_v53 = vld [vmem:[#allocation6 + $0x4a8] sm:$0xff] }
 0x123   : > { %6848 = vmatprep.subr.bf16.mxu0 %v8835_v55  ;;  %6880 = vmatprep.subr.bf16.mxu1 %v8851_v56  ;;  %v581_v54 = vld [vmem:[#allocation6 + $0x508] sm:$0xff]  ;;  %v8866_v55 = vcombine.low %v544_v43, %v556_v44  ;;  %v8882_v56 = vcombine.low %v545_v45, %v557_v46  ;;  %v8895_v43 = vcombine.high %v522_v37, %v534_v38  ;;  %v546_v45 = vld [vmem:[#allocation6 + $0x3f0] sm:$0xff] }
 0x124   : > { %v8883_v58 = vcombine.high %v569_v53, %v581_v54  ;;  %v558_v46 = vld [vmem:[#allocation6 + $0x450] sm:$0xff] }
 0x126   : > { %6850 = vmatpush1.bf16.msra.mxu0 %v8836_v61  ;;  %6882 = vmatpush1.bf16.msra.mxu1 %v8852_v62  ;;  %v593_v61 = vld [vmem:[#allocation6 + $0x568] sm:$0xff] }
 0x127   : > { %6852 = vmatprep.subr.bf16.mxu0 %v8837_v63  ;;  %6884 = vmatprep.subr.bf16.mxu1 %v8853_v0  ;;  %v605_v62 = vld [vmem:[#allocation6 + $0x5c8] sm:$0xff]  ;;  %v8868_v63 = vcombine.low %v568_v51, %v580_v52  ;;  %v8884_v0 = vcombine.low %v569_v53, %v581_v54  ;;  %v8897_v51 = vcombine.high %v546_v45, %v558_v46  ;;  %v570_v53 = vld [vmem:[#allocation6 + $0x4b0] sm:$0xff] }
 0x128   : > { %v8885_v2 = vcombine.high %v593_v61, %v605_v62  ;;  %v582_v54 = vld [vmem:[#allocation6 + $0x510] sm:$0xff] }
 0x12a   : > { %6854 = vmatpush1.bf16.msra.mxu0 %v8838_v5  ;;  %6886 = vmatpush1.bf16.msra.mxu1 %v8854_v6  ;;  %v427_v5 = vld [vmem:[#allocation6 + $0x38] sm:$0xff] }
 0x12b   : > { %6888 = vmatprep.subr.bf16.mxu0 %v8855_v7  ;;  %6920 = vmatprep.subr.bf16.mxu1 %v8871_v9  ;;  %v439_v6 = vld [vmem:[#allocation6 + $0x98] sm:$0xff]  ;;  %v8870_v7 = vcombine.low %v592_v59, %v604_v60  ;;  %v8886_v9 = vcombine.low %v593_v61, %v605_v62  ;;  %v8899_v59 = vcombine.high %v570_v53, %v582_v54  ;;  %v594_v61 = vld [vmem:[#allocation6 + $0x570] sm:$0xff] }
 0x12c   : > { %v8903_v11 = vcombine.high %v427_v5, %v439_v6  ;;  %v606_v62 = vld [vmem:[#allocation6 + $0x5d0] sm:$0xff] }
 0x12d   : > { %1329 = vmatmul.mubr.f32.vlgmr.msra.gmra.mrb[2].mxu0 %v11645_v12  ;;  %1400 = vmatmul.mubr.f32.vlgmr.msra.gmra.mrb[2].mxu1 %v11645_v12 }
 0x12e   : > { %6890 = vmatpush1.bf16.msra.mxu0 %v8856_v15  ;;  %6922 = vmatpush1.bf16.msra.mxu1 %v8872_v16  ;;  %v451_v15 = vld [vmem:[#allocation6 + $0xf8] sm:$0xff] }
 0x12f   : > { %6892 = vmatprep.subr.bf16.mxu0 %v8857_v17  ;;  %6924 = vmatprep.subr.bf16.mxu1 %v8873_v18  ;;  %v463_v16 = vld [vmem:[#allocation6 + $0x158] sm:$0xff]  ;;  %v8888_v17 = vcombine.low %v426_v3, %v438_v4  ;;  %v8904_v18 = vcombine.low %v427_v5, %v439_v6  ;;  %v8901_v3 = vcombine.high %v594_v61, %v606_v62  ;;  %v428_v5 = vld [vmem:[#allocation6 + $0x40] sm:$0xff] }
 0x130   : > { %1470 = vmatprep.mubr.f32.mxu0 %v11308_v8  ;;  %1541 = vmatprep.mubr.f32.mxu1 %v11308_v8  ;;  %v8905_v20 = vcombine.high %v451_v15, %v463_v16  ;;  %v440_v6 = vld [vmem:[#allocation6 + $0xa0] sm:$0xff] }
 0x132   : > { %6894 = vmatpush1.bf16.msra.mxu0 %v8858_v23  ;;  %6926 = vmatpush1.bf16.msra.mxu1 %v8874_v24  ;;  %v475_v23 = vld [vmem:[#allocation6 + $0x1b8] sm:$0xff] }
 0x133   : > { %6896 = vmatprep.subr.bf16.mxu0 %v8859_v25  ;;  %6928 = vmatprep.subr.bf16.mxu1 %v8875_v26  ;;  %v487_v24 = vld [vmem:[#allocation6 + $0x218] sm:$0xff]  ;;  %v8890_v25 = vcombine.low %v450_v13, %v462_v14  ;;  %v8906_v26 = vcombine.low %v451_v15, %v463_v16  ;;  %v8919_v13 = vcombine.high %v428_v5, %v440_v6  ;;  %v452_v15 = vld [vmem:[#allocation6 + $0x100] sm:$0xff] }
 0x134   : > { %v8907_v28 = vcombine.high %v475_v23, %v487_v24  ;;  %v464_v16 = vld [vmem:[#allocation6 + $0x160] sm:$0xff] }
 0x136   : > { %6898 = vmatpush1.bf16.msra.mxu0 %v8860_v31  ;;  %6930 = vmatpush1.bf16.msra.mxu1 %v8876_v32  ;;  %v499_v31 = vld [vmem:[#allocation6 + $0x278] sm:$0xff] }
 0x137   : > { %6900 = vmatprep.subr.bf16.mxu0 %v8861_v33  ;;  %6932 = vmatprep.subr.bf16.mxu1 %v8877_v34  ;;  %v511_v32 = vld [vmem:[#allocation6 + $0x2d8] sm:$0xff]  ;;  %v8892_v33 = vcombine.low %v474_v21, %v486_v22  ;;  %v8908_v34 = vcombine.low %v475_v23, %v487_v24  ;;  %v8921_v21 = vcombine.high %v452_v15, %v464_v16  ;;  %v476_v23 = vld [vmem:[#allocation6 + $0x1c0] sm:$0xff] }
 0x138   : > { %v8909_v36 = vcombine.high %v499_v31, %v511_v32  ;;  %v488_v24 = vld [vmem:[#allocation6 + $0x220] sm:$0xff] }
 0x13a   : > { %6902 = vmatpush1.bf16.msra.mxu0 %v8862_v39  ;;  %6934 = vmatpush1.bf16.msra.mxu1 %v8878_v40  ;;  %v523_v39 = vld [vmem:[#allocation6 + $0x338] sm:$0xff] }
 0x13b   : > { %6904 = vmatprep.subr.bf16.mxu0 %v8863_v41  ;;  %6936 = vmatprep.subr.bf16.mxu1 %v8879_v42  ;;  %v535_v40 = vld [vmem:[#allocation6 + $0x398] sm:$0xff]  ;;  %v8894_v41 = vcombine.low %v498_v29, %v510_v30  ;;  %v8910_v42 = vcombine.low %v499_v31, %v511_v32  ;;  %v8923_v29 = vcombine.high %v476_v23, %v488_v24  ;;  %v500_v31 = vld [vmem:[#allocation6 + $0x280] sm:$0xff] }
 0x13c   : > { %v8911_v44 = vcombine.high %v523_v39, %v535_v40  ;;  %v512_v32 = vld [vmem:[#allocation6 + $0x2e0] sm:$0xff] }
 0x13e   : > { %6906 = vmatpush1.bf16.msra.mxu0 %v8864_v47  ;;  %6938 = vmatpush1.bf16.msra.mxu1 %v8880_v48  ;;  %v547_v47 = vld [vmem:[#allocation6 + $0x3f8] sm:$0xff] }
 0x13f   : > { %6908 = vmatprep.subr.bf16.mxu0 %v8865_v49  ;;  %6940 = vmatprep.subr.bf16.mxu1 %v8881_v50  ;;  %v559_v48 = vld [vmem:[#allocation6 + $0x458] sm:$0xff]  ;;  %v8896_v49 = vcombine.low %v522_v37, %v534_v38  ;;  %v8912_v50 = vcombine.low %v523_v39, %v535_v40  ;;  %v8925_v37 = vcombine.high %v500_v31, %v512_v32  ;;  %v524_v39 = vld [vmem:[#allocation6 + $0x340] sm:$0xff] }
 0x140   : > { %v8913_v52 = vcombine.high %v547_v47, %v559_v48  ;;  %v536_v40 = vld [vmem:[#allocation6 + $0x3a0] sm:$0xff] }
 0x142   : > { %6910 = vmatpush1.bf16.msra.mxu0 %v8866_v55  ;;  %6942 = vmatpush1.bf16.msra.mxu1 %v8882_v56  ;;  %v571_v55 = vld [vmem:[#allocation6 + $0x4b8] sm:$0xff] }
 0x143   : > { %6912 = vmatprep.subr.bf16.mxu0 %v8867_v57  ;;  %6944 = vmatprep.subr.bf16.mxu1 %v8883_v58  ;;  %v583_v56 = vld [vmem:[#allocation6 + $0x518] sm:$0xff]  ;;  %v8898_v57 = vcombine.low %v546_v45, %v558_v46  ;;  %v8914_v58 = vcombine.low %v547_v47, %v559_v48  ;;  %v8927_v45 = vcombine.high %v524_v39, %v536_v40  ;;  %v548_v47 = vld [vmem:[#allocation6 + $0x400] sm:$0xff] }
 0x144   : > { %v8915_v60 = vcombine.high %v571_v55, %v583_v56  ;;  %v560_v48 = vld [vmem:[#allocation6 + $0x460] sm:$0xff] }
 0x146   : > { %6914 = vmatpush1.bf16.msra.mxu0 %v8868_v63  ;;  %6946 = vmatpush1.bf16.msra.mxu1 %v8884_v0  ;;  %v595_v63 = vld [vmem:[#allocation6 + $0x578] sm:$0xff] }
 0x147   : > { %6916 = vmatprep.subr.bf16.mxu0 %v8869_v1  ;;  %6948 = vmatprep.subr.bf16.mxu1 %v8885_v2  ;;  %v607_v0 = vld [vmem:[#allocation6 + $0x5d8] sm:$0xff]  ;;  %v8900_v1 = vcombine.low %v570_v53, %v582_v54  ;;  %v8916_v2 = vcombine.low %v571_v55, %v583_v56  ;;  %v8929_v53 = vcombine.high %v548_v47, %v560_v48  ;;  %v572_v55 = vld [vmem:[#allocation6 + $0x4c0] sm:$0xff] }
 0x148   : > { %v8917_v4 = vcombine.high %v595_v63, %v607_v0  ;;  %v584_v56 = vld [vmem:[#allocation6 + $0x520] sm:$0xff] }
 0x14a   : > { %6918 = vmatpush1.bf16.msra.mxu0 %v8870_v7  ;;  %6950 = vmatpush1.bf16.msra.mxu1 %v8886_v9  ;;  %v429_v7 = vld [vmem:[#allocation6 + $0x48] sm:$0xff] }
 0x14b   : > { %6952 = vmatprep.subr.bf16.mxu0 %v8887_v10  ;;  %6984 = vmatprep.subr.bf16.mxu1 %v8903_v11  ;;  %v441_v9 = vld [vmem:[#allocation6 + $0xa8] sm:$0xff]  ;;  %v8902_v10 = vcombine.low %v594_v61, %v606_v62  ;;  %v8918_v11 = vcombine.low %v595_v63, %v607_v0  ;;  %v8931_v61 = vcombine.high %v572_v55, %v584_v56  ;;  %v596_v63 = vld [vmem:[#allocation6 + $0x580] sm:$0xff] }
 0x14c   : > { %v8935_v14 = vcombine.high %v429_v7, %v441_v9  ;;  %v608_v0 = vld [vmem:[#allocation6 + $0x5e0] sm:$0xff] }
 0x14d   : > { %1471 = vmatmul.mubr.f32.vlgmr.msra.gmra.mrb[4].mxu0 %v11645_v12  ;;  %1542 = vmatmul.mubr.f32.vlgmr.msra.gmra.mrb[4].mxu1 %v11645_v12 }
 0x14e   : > { %6954 = vmatpush1.bf16.msra.mxu0 %v8888_v17  ;;  %6986 = vmatpush1.bf16.msra.mxu1 %v8904_v18  ;;  %v453_v17 = vld [vmem:[#allocation6 + $0x108] sm:$0xff] }
 0x14f   : > { %6956 = vmatprep.subr.bf16.mxu0 %v8889_v19  ;;  %6988 = vmatprep.subr.bf16.mxu1 %v8905_v20  ;;  %v465_v18 = vld [vmem:[#allocation6 + $0x168] sm:$0xff]  ;;  %v8920_v19 = vcombine.low %v428_v5, %v440_v6  ;;  %v8936_v20 = vcombine.low %v429_v7, %v441_v9  ;;  %v8933_v5 = vcombine.high %v596_v63, %v608_v0  ;;  %v430_v7 = vld [vmem:[#allocation6 + $0x50] sm:$0xff] }
 0x150   : > { %1612 = vmatprep.mubr.f32.mxu0 %v11308_v8  ;;  %1683 = vmatprep.mubr.f32.mxu1 %v11308_v8  ;;  %v8937_v22 = vcombine.high %v453_v17, %v465_v18  ;;  %v442_v9 = vld [vmem:[#allocation6 + $0xb0] sm:$0xff] }
 0x152   : > { %6958 = vmatpush1.bf16.msra.mxu0 %v8890_v25  ;;  %6990 = vmatpush1.bf16.msra.mxu1 %v8906_v26  ;;  %v477_v25 = vld [vmem:[#allocation6 + $0x1c8] sm:$0xff] }
 0x153   : > { %6960 = vmatprep.subr.bf16.mxu0 %v8891_v27  ;;  %6992 = vmatprep.subr.bf16.mxu1 %v8907_v28  ;;  %v489_v26 = vld [vmem:[#allocation6 + $0x228] sm:$0xff]  ;;  %v8922_v27 = vcombine.low %v452_v15, %v464_v16  ;;  %v8938_v28 = vcombine.low %v453_v17, %v465_v18  ;;  %v8951_v15 = vcombine.high %v430_v7, %v442_v9  ;;  %v454_v17 = vld [vmem:[#allocation6 + $0x110] sm:$0xff] }
 0x154   : > { %v8939_v30 = vcombine.high %v477_v25, %v489_v26  ;;  %v466_v18 = vld [vmem:[#allocation6 + $0x170] sm:$0xff] }
 0x156   : > { %6962 = vmatpush1.bf16.msra.mxu0 %v8892_v33  ;;  %6994 = vmatpush1.bf16.msra.mxu1 %v8908_v34  ;;  %v501_v33 = vld [vmem:[#allocation6 + $0x288] sm:$0xff] }
 0x157   : > { %6964 = vmatprep.subr.bf16.mxu0 %v8893_v35  ;;  %6996 = vmatprep.subr.bf16.mxu1 %v8909_v36  ;;  %v513_v34 = vld [vmem:[#allocation6 + $0x2e8] sm:$0xff]  ;;  %v8924_v35 = vcombine.low %v476_v23, %v488_v24  ;;  %v8940_v36 = vcombine.low %v477_v25, %v489_v26  ;;  %v8953_v23 = vcombine.high %v454_v17, %v466_v18  ;;  %v478_v25 = vld [vmem:[#allocation6 + $0x1d0] sm:$0xff] }
 0x158   : > { %v8941_v38 = vcombine.high %v501_v33, %v513_v34  ;;  %v490_v26 = vld [vmem:[#allocation6 + $0x230] sm:$0xff] }
 0x15a   : > { %6966 = vmatpush1.bf16.msra.mxu0 %v8894_v41  ;;  %6998 = vmatpush1.bf16.msra.mxu1 %v8910_v42  ;;  %v525_v41 = vld [vmem:[#allocation6 + $0x348] sm:$0xff] }
 0x15b   : > { %6968 = vmatprep.subr.bf16.mxu0 %v8895_v43  ;;  %7000 = vmatprep.subr.bf16.mxu1 %v8911_v44  ;;  %v537_v42 = vld [vmem:[#allocation6 + $0x3a8] sm:$0xff]  ;;  %v8926_v43 = vcombine.low %v500_v31, %v512_v32  ;;  %v8942_v44 = vcombine.low %v501_v33, %v513_v34  ;;  %v8955_v31 = vcombine.high %v478_v25, %v490_v26  ;;  %v502_v33 = vld [vmem:[#allocation6 + $0x290] sm:$0xff] }
 0x15c   : > { %v8943_v46 = vcombine.high %v525_v41, %v537_v42  ;;  %v514_v34 = vld [vmem:[#allocation6 + $0x2f0] sm:$0xff] }
 0x15e   : > { %6970 = vmatpush1.bf16.msra.mxu0 %v8896_v49  ;;  %7002 = vmatpush1.bf16.msra.mxu1 %v8912_v50  ;;  %v549_v49 = vld [vmem:[#allocation6 + $0x408] sm:$0xff] }
 0x15f   : > { %6972 = vmatprep.subr.bf16.mxu0 %v8897_v51  ;;  %7004 = vmatprep.subr.bf16.mxu1 %v8913_v52  ;;  %v561_v50 = vld [vmem:[#allocation6 + $0x468] sm:$0xff]  ;;  %v8928_v51 = vcombine.low %v524_v39, %v536_v40  ;;  %v8944_v52 = vcombine.low %v525_v41, %v537_v42  ;;  %v8957_v39 = vcombine.high %v502_v33, %v514_v34  ;;  %v526_v41 = vld [vmem:[#allocation6 + $0x350] sm:$0xff] }
 0x160   : > { %v8945_v54 = vcombine.high %v549_v49, %v561_v50  ;;  %v538_v42 = vld [vmem:[#allocation6 + $0x3b0] sm:$0xff] }
 0x162   : > { %6974 = vmatpush1.bf16.msra.mxu0 %v8898_v57  ;;  %7006 = vmatpush1.bf16.msra.mxu1 %v8914_v58  ;;  %v573_v57 = vld [vmem:[#allocation6 + $0x4c8] sm:$0xff] }
 0x163   : > { %6976 = vmatprep.subr.bf16.mxu0 %v8899_v59  ;;  %7008 = vmatprep.subr.bf16.mxu1 %v8915_v60  ;;  %v585_v58 = vld [vmem:[#allocation6 + $0x528] sm:$0xff]  ;;  %v8930_v59 = vcombine.low %v548_v47, %v560_v48  ;;  %v8946_v60 = vcombine.low %v549_v49, %v561_v50  ;;  %v8959_v47 = vcombine.high %v526_v41, %v538_v42  ;;  %v550_v48 = vld [vmem:[#allocation6 + $0x410] sm:$0xff]  ;;  %v551_v50 = vld [vmem:[#allocation6 + $0x418] sm:$0xff] }
 0x164   : > { %v8947_v62 = vcombine.high %v573_v57, %v585_v58  ;;  %v562_v49 = vld [vmem:[#allocation6 + $0x470] sm:$0xff] }
 0x166   : > { %6978 = vmatpush1.bf16.msra.mxu0 %v8900_v1  ;;  %7010 = vmatpush1.bf16.msra.mxu1 %v8916_v2  ;;  %v597_v1 = vld [vmem:[#allocation6 + $0x588] sm:$0xff] }
 0x167   : > { %6980 = vmatprep.subr.bf16.mxu0 %v8901_v3  ;;  %7012 = vmatprep.subr.bf16.mxu1 %v8917_v4  ;;  %v609_v2 = vld [vmem:[#allocation6 + $0x5e8] sm:$0xff]  ;;  %v8932_v3 = vcombine.low %v572_v55, %v584_v56  ;;  %v8948_v4 = vcombine.low %v573_v57, %v585_v58  ;;  %v574_v56 = vld [vmem:[#allocation6 + $0x4d0] sm:$0xff]  ;;  %v575_v58 = vld [vmem:[#allocation6 + $0x4d8] sm:$0xff] }
 0x168   : > { %v8949_v6 = vcombine.high %v597_v1, %v609_v2  ;;  %v586_v57 = vld [vmem:[#allocation6 + $0x530] sm:$0xff] }
 0x16a   : > { %6982 = vmatpush1.bf16.msra.mxu0 %v8902_v10  ;;  %7014 = vmatpush1.bf16.msra.mxu1 %v8918_v11  ;;  %v431_v10 = vld [vmem:[#allocation6 + $0x58] sm:$0xff] }
 0x16b   : > { %7016 = vmatprep.subr.bf16.mxu0 %v8919_v13  ;;  %7048 = vmatprep.subr.bf16.mxu1 %v8935_v14  ;;  %v443_v11 = vld [vmem:[#allocation6 + $0xb8] sm:$0xff]  ;;  %v8934_v13 = vcombine.low %v596_v63, %v608_v0  ;;  %v8950_v14 = vcombine.low %v597_v1, %v609_v2  ;;  %v598_v0 = vld [vmem:[#allocation6 + $0x590] sm:$0xff] }
 0x16c   : > { %v8967_v16 = vcombine.high %v431_v10, %v443_v11  ;;  %v610_v1 = vld [vmem:[#allocation6 + $0x5f0] sm:$0xff]  ;;  %v599_v2 = vld [vmem:[#allocation6 + $0x598] sm:$0xff] }
 0x16d   : > { %1613 = vmatmul.mubr.f32.vlgmr.msra.gmra.mrb[6].mxu0 %v11645_v12  ;;  %1684 = vmatmul.mubr.f32.vlgmr.msra.gmra.mrb[6].mxu1 %v11645_v12 }
 0x16e   : > { %7018 = vmatpush1.bf16.msra.mxu0 %v8920_v19  ;;  %7050 = vmatpush1.bf16.msra.mxu1 %v8936_v20  ;;  %v455_v19 = vld [vmem:[#allocation6 + $0x118] sm:$0xff] }
 0x16f   : > { %7020 = vmatprep.subr.bf16.mxu0 %v8921_v21  ;;  %7052 = vmatprep.subr.bf16.mxu1 %v8937_v22  ;;  %v467_v20 = vld [vmem:[#allocation6 + $0x178] sm:$0xff]  ;;  %v8952_v21 = vcombine.low %v430_v7, %v442_v9  ;;  %v8968_v22 = vcombine.low %v431_v10, %v443_v11  ;;  %v8966_v9 = vcombine.low %v598_v0, %v610_v1  ;;  %v1002_v11 = vlaneseq }
 0x170   : > { %1754 = vmatprep.mubr.f32.mxu0 %v11308_v8  ;;  %1825 = vmatprep.mubr.f32.mxu1 %v11308_v8  ;;  %v8969_v24 = vcombine.high %v455_v19, %v467_v20 }
 0x172   : > { %7022 = vmatpush1.bf16.msra.mxu0 %v8922_v27  ;;  %7054 = vmatpush1.bf16.msra.mxu1 %v8938_v28  ;;  %v479_v27 = vld [vmem:[#allocation6 + $0x1d8] sm:$0xff] }
 0x173   : > { %7024 = vmatprep.subr.bf16.mxu0 %v8923_v29  ;;  %7056 = vmatprep.subr.bf16.mxu1 %v8939_v30  ;;  %v491_v28 = vld [vmem:[#allocation6 + $0x238] sm:$0xff]  ;;  %v8954_v29 = vcombine.low %v454_v17, %v466_v18  ;;  %v8970_v30 = vcombine.low %v455_v19, %v467_v20 }
 0x174   : > { %v8971_v32 = vcombine.high %v479_v27, %v491_v28 }
 0x176   : > { %7026 = vmatpush1.bf16.msra.mxu0 %v8924_v35  ;;  %7058 = vmatpush1.bf16.msra.mxu1 %v8940_v36  ;;  %v503_v35 = vld [vmem:[#allocation6 + $0x298] sm:$0xff] }
 0x177   : > { %7028 = vmatprep.subr.bf16.mxu0 %v8925_v37  ;;  %7060 = vmatprep.subr.bf16.mxu1 %v8941_v38  ;;  %v515_v36 = vld [vmem:[#allocation6 + $0x2f8] sm:$0xff]  ;;  %v8956_v37 = vcombine.low %v478_v25, %v490_v26  ;;  %v8972_v38 = vcombine.low %v479_v27, %v491_v28 }
 0x178   : > { %v8973_v40 = vcombine.high %v503_v35, %v515_v36 }
 0x17a   : > { %7030 = vmatpush1.bf16.msra.mxu0 %v8926_v43  ;;  %7062 = vmatpush1.bf16.msra.mxu1 %v8942_v44  ;;  %v527_v43 = vld [vmem:[#allocation6 + $0x358] sm:$0xff] }
 0x17b   : > { %7032 = vmatprep.subr.bf16.mxu0 %v8927_v45  ;;  %7064 = vmatprep.subr.bf16.mxu1 %v8943_v46  ;;  %v539_v44 = vld [vmem:[#allocation6 + $0x3b8] sm:$0xff]  ;;  %v8958_v45 = vcombine.low %v502_v33, %v514_v34  ;;  %v8974_v46 = vcombine.low %v503_v35, %v515_v36 }
 0x17e   : > { %7034 = vmatpush1.bf16.msra.mxu0 %v8928_v51  ;;  %7066 = vmatpush1.bf16.msra.mxu1 %v8944_v52  ;;  %v563_v51 = vld [vmem:[#allocation6 + $0x478] sm:$0xff]  ;;  %v8960_v52 = vcombine.low %v526_v41, %v538_v42 }
 0x17f   : > { %7036 = vmatprep.subr.bf16.mxu0 %v8929_v53  ;;  %7068 = vmatprep.subr.bf16.mxu1 %v8945_v54  ;;  %v8976_v53 = vcombine.low %v527_v43, %v539_v44  ;;  %v8961_v54 = vcombine.high %v550_v48, %v562_v49  ;;  %v8977_v55 = vcombine.high %v551_v50, %v563_v51 }
 0x182   : > { %7038 = vmatpush1.bf16.msra.mxu0 %v8930_v59  ;;  %7070 = vmatpush1.bf16.msra.mxu1 %v8946_v60  ;;  %v587_v59 = vld [vmem:[#allocation6 + $0x538] sm:$0xff]  ;;  %v8962_v60 = vcombine.low %v550_v48, %v562_v49 }
 0x183   : > { %7040 = vmatprep.subr.bf16.mxu0 %v8931_v61  ;;  %7072 = vmatprep.subr.bf16.mxu1 %v8947_v62  ;;  %v8978_v61 = vcombine.low %v551_v50, %v563_v51  ;;  %v8963_v62 = vcombine.high %v574_v56, %v586_v57  ;;  %v8979_v63 = vcombine.high %v575_v58, %v587_v59 }
 0x186   : > { %7042 = vmatpush1.bf16.msra.mxu0 %v8932_v3  ;;  %7074 = vmatpush1.bf16.msra.mxu1 %v8948_v4  ;;  %v611_v3 = vld [vmem:[#allocation6 + $0x5f8] sm:$0xff]  ;;  %v8964_v4 = vcombine.low %v574_v56, %v586_v57 }
 0x187   : > { %7044 = vmatprep.subr.bf16.mxu0 %v8933_v5  ;;  %7076 = vmatprep.subr.bf16.mxu1 %v8949_v6  ;;  %v8980_v5 = vcombine.low %v575_v58, %v587_v59  ;;  %v8965_v6 = vcombine.high %v598_v0, %v610_v1  ;;  %v8981_v7 = vcombine.high %v599_v2, %v611_v3 }
 0x188   : > { %v8982_v10 = vcombine.low %v599_v2, %v611_v3 }
 0x18a   : > { %7046 = vmatpush1.bf16.msra.mxu0 %v8934_v13  ;;  %7078 = vmatpush1.bf16.msra.mxu1 %v8950_v14  ;;  %v1003_v13 = vshrl.u32 %v1002_v11, 7 }
 0x18b   : > { %7080 = vmatprep.subr.bf16.mxu0 %v8951_v15  ;;  %7112 = vmatprep.subr.bf16.mxu1 %v8967_v16  ;;  %v996_v15 = vld [vmem:[#allocation8] sm:$0xff] }
 0x18c   : > { %v11669_v14 = vsub.s32 0, %v1003_v13  ;;  %v11671_v16 = vsub.s32 2, %v1003_v13  ;;  %v11673_v17 = vsub.s32 1, %v1003_v13  ;;  %v11675_v18 = vsub.s32 3, %v1003_v13 }
 0x18d   : > { %1755 = vmatmul.mubr.f32.vlgmr.msra.gmra.mrb[8].mxu0 %v11645_v12  ;;  %1826 = vmatmul.mubr.f32.vlgmr.msra.gmra.mrb[8].mxu1 %v11645_v12  ;;  %v11681_v34 = vsub.s32 4, %v1003_v13  ;;  %v11683_v35 = vsub.s32 6, %v1003_v13  ;;  %v11685_v36 = vsub.s32 5, %v1003_v13 }
 0x18e   : > { %7082 = vmatpush1.bf16.msra.mxu0 %v8952_v21  ;;  %7114 = vmatpush1.bf16.msra.mxu1 %v8968_v22  ;;  %v1005_v19 = vrot.slane %v996_v15, %v11669_v14  ;;  %v1013_v20 = vrot.slane %v996_v15, %v11671_v16  ;;  %v1009_v21 = vrot.slane %v996_v15, %v11673_v17 }
 0x18f   : > { %7084 = vmatprep.subr.bf16.mxu0 %v8953_v23  ;;  %7116 = vmatprep.subr.bf16.mxu1 %v8969_v24  ;;  %v1017_v22 = vrot.slane %v996_v15, %v11675_v18 }
 0x190   : > { %1896 = vmatprep.mubr.f32.mxu0 %v11308_v8  ;;  %1967 = vmatprep.mubr.f32.mxu1 %v11308_v8  ;;  %v8975_v8 = vcombine.high %v527_v43, %v539_v44 }
 0x192   : > { %7086 = vmatpush1.bf16.msra.mxu0 %v8954_v29  ;;  %7118 = vmatpush1.bf16.msra.mxu1 %v8970_v30 }
 0x193   : > { %7088 = vmatprep.subr.bf16.mxu0 %v8955_v31  ;;  %7120 = vmatprep.subr.bf16.mxu1 %v8971_v32 }
 0x196   : > { %7090 = vmatpush1.bf16.msra.mxu0 %v8956_v37  ;;  %7122 = vmatpush1.bf16.msra.mxu1 %v8972_v38  ;;  %v11687_v37 = vsub.s32 7, %v1003_v13  ;;  %v1021_v38 = vrot.slane %v996_v15, %v11681_v34 }
 0x197   : > { %7092 = vmatprep.subr.bf16.mxu0 %v8957_v39  ;;  %7124 = vmatprep.subr.bf16.mxu1 %v8973_v40  ;;  %v1029_v39 = vrot.slane %v996_v15, %v11683_v35  ;;  %v1025_v40 = vrot.slane %v996_v15, %v11685_v36 }
 0x198   : > { %v1033_v41 = vrot.slane %v996_v15, %v11687_v37 }
 0x19a   : > { %7094 = vmatpush1.bf16.msra.mxu0 %v8958_v45  ;;  %7126 = vmatpush1.bf16.msra.mxu1 %v8974_v46 }
 0x19b   : > { %7096 = vmatprep.subr.bf16.mxu0 %v8959_v47  ;;  %7128 = vmatprep.subr.bf16.mxu1 %v8975_v8 }
 0x19e   : > { %7098 = vmatpush1.bf16.msra.mxu0 %v8960_v52  ;;  %7130 = vmatpush1.bf16.msra.mxu1 %v8976_v53  ;;  %v6522_v53 = vld [vmem:[#allocation14] ss:$0 sm:$0xff] }
 0x19f   : > { %7100 = vmatprep.subr.bf16.mxu0 %v8961_v54  ;;  %7132 = vmatprep.subr.bf16.mxu1 %v8977_v55  ;;  %2029 = vst [vmem:[#allocation15] sm:$0xff] %v6522_v53  ;;  %v997_v54 = vld [vmem:[#allocation8 + $0x8] sm:$0xff] }
 0x1a0   : > { %v1037_v55 = vrot.slane %v997_v54, %v11669_v14  ;;  %v1045_v56 = vrot.slane %v997_v54, %v11671_v16  ;;  %v1041_v57 = vrot.slane %v997_v54, %v11673_v17  ;;  %v1049_v58 = vrot.slane %v997_v54, %v11675_v18 }
 0x1a1   : > { %v1065_v11 = vrot.slane %v997_v54, %v11687_v37 }
 0x1a2   : > { %7102 = vmatpush1.bf16.msra.mxu0 %v8962_v60  ;;  %7134 = vmatpush1.bf16.msra.mxu1 %v8978_v61 }
 0x1a3   : > { %7104 = vmatprep.subr.bf16.mxu0 %v8963_v62  ;;  %7136 = vmatprep.subr.bf16.mxu1 %v8979_v63 }
 0x1a6   : > { %7106 = vmatpush1.bf16.msra.mxu0 %v8964_v4  ;;  %7138 = vmatpush1.bf16.msra.mxu1 %v8980_v5 }
 0x1a7   : > { %7108 = vmatprep.subr.bf16.mxu0 %v8965_v6  ;;  %7140 = vmatprep.subr.bf16.mxu1 %v8981_v7  ;;  %v1053_v7 = vrot.slane %v997_v54, %v11681_v34 }
 0x1aa   : > { %7110 = vmatpush1.bf16.msra.mxu0 %v8966_v9  ;;  %7142 = vmatpush1.bf16.msra.mxu1 %v8982_v10  ;;  %v1061_v9 = vrot.slane %v997_v54, %v11683_v35  ;;  %v1057_v10 = vrot.slane %v997_v54, %v11685_v36 }
 0x1ad   : > { %1897 = vmatmul.mubr.f32.vlgmr.msra.gmra.mrb[10].mxu0 %v11645_v12  ;;  %1968 = vmatmul.mubr.f32.vlgmr.msra.gmra.mrb[10].mxu1 %v11645_v12 }
 0x1e0   : > { %v1188_v12 = vpop.f32.mrb[0].mxu0  ;;  %v1259_v24 = vpop.f32.mrb[0].mxu1 }
 0x1e1   : > { %v1189_v23 = vadd.f32 %v1188_v12, %v1005_v19  ;;  %v1190_v25 = vpop.f32.mrb[1].mxu0  ;;  %v1260_v26 = vadd.f32 %v1259_v24, %v1013_v20  ;;  %v1261_v28 = vpop.f32.mrb[1].mxu1 }
 0x1e2   : > { %v1191_v27 = vadd.f32 %v1190_v25, %v1009_v21  ;;  %v1262_v30 = vadd.f32 %v1261_v28, %v1017_v22  ;;  %v998_v28 = vld [vmem:[#allocation8 + $0x10] sm:$0xff] }
 0x1e3   : > { %v1974_v29 = vmax.f32 %v1189_v23, 0.0  ;;  %v1976_v31 = vmax.f32 %v1260_v26, 0.0 }
 0x1e4   : > { %v1975_v32 = vmax.f32 %v1191_v27, 0.0  ;;  %v1977_v33 = vmax.f32 %v1262_v30, 0.0  ;;  %v1077_v30 = vrot.slane %v998_v28, %v11671_v16  ;;  %v1093_v16 = vrot.slane %v998_v28, %v11683_v35 }
 0x1e5   : > { %1998 = vst [vmem:[#allocation2] sm:$0xff] %v1974_v29  ;;  %2000 = vst [vmem:[#allocation2 + $0x10] sm:$0xff] %v1976_v31  ;;  %v1069_v29 = vrot.slane %v998_v28, %v11669_v14  ;;  %v1073_v31 = vrot.slane %v998_v28, %v11673_v17  ;;  %v1085_v14 = vrot.slane %v998_v28, %v11681_v34 }
 0x1e6   : > { %1999 = vst [vmem:[#allocation2 + $0x8] sm:$0xff] %v1975_v32  ;;  %2001 = vst [vmem:[#allocation2 + $0x18] sm:$0xff] %v1977_v33  ;;  %v1081_v32 = vrot.slane %v998_v28, %v11675_v18  ;;  %v1089_v17 = vrot.slane %v998_v28, %v11685_v36  ;;  %v1097_v18 = vrot.slane %v998_v28, %v11687_v37 }
 0x200   : > { %v1330_v42 = vpop.f32.mrb[2].mxu0  ;;  %v1401_v44 = vpop.f32.mrb[2].mxu1 }
 0x201   : > { %v1331_v43 = vadd.f32 %v1330_v42, %v1021_v38  ;;  %v1332_v45 = vpop.f32.mrb[3].mxu0  ;;  %v1402_v46 = vadd.f32 %v1401_v44, %v1029_v39  ;;  %v1403_v8 = vpop.f32.mrb[3].mxu1 }
 0x202   : > { %v1333_v47 = vadd.f32 %v1332_v45, %v1025_v40  ;;  %v1404_v49 = vadd.f32 %v1403_v8, %v1033_v41 }
 0x203   : > { %v1978_v48 = vmax.f32 %v1331_v43, 0.0  ;;  %v1980_v50 = vmax.f32 %v1402_v46, 0.0 }
 0x204   : > { %v1979_v51 = vmax.f32 %v1333_v47, 0.0  ;;  %v1981_v52 = vmax.f32 %v1404_v49, 0.0 }
 0x205   : > { %2002 = vst [vmem:[#allocation2 + $0x20] sm:$0xff] %v1978_v48  ;;  %2004 = vst [vmem:[#allocation2 + $0x30] sm:$0xff] %v1980_v50 }
 0x206   : > { %2003 = vst [vmem:[#allocation2 + $0x28] sm:$0xff] %v1979_v51  ;;  %2005 = vst [vmem:[#allocation2 + $0x38] sm:$0xff] %v1981_v52 }
 0x220   : > { %v1472_v59 = vpop.f32.mrb[4].mxu0  ;;  %v1543_v61 = vpop.f32.mrb[4].mxu1 }
 0x221   : > { %v1473_v60 = vadd.f32 %v1472_v59, %v1037_v55  ;;  %v1474_v62 = vpop.f32.mrb[5].mxu0  ;;  %v1544_v63 = vadd.f32 %v1543_v61, %v1045_v56  ;;  %v1545_v1 = vpop.f32.mrb[5].mxu1 }
 0x222   : > { %v1475_v0 = vadd.f32 %v1474_v62, %v1041_v57  ;;  %v1546_v3 = vadd.f32 %v1545_v1, %v1049_v58 }
 0x223   : > { %v1982_v2 = vmax.f32 %v1473_v60, 0.0  ;;  %v1984_v4 = vmax.f32 %v1544_v63, 0.0 }
 0x224   : > { %v1983_v5 = vmax.f32 %v1475_v0, 0.0  ;;  %v1985_v6 = vmax.f32 %v1546_v3, 0.0 }
 0x225   : > { %2006 = vst [vmem:[#allocation2 + $0x40] sm:$0xff] %v1982_v2  ;;  %2008 = vst [vmem:[#allocation2 + $0x50] sm:$0xff] %v1984_v4 }
 0x226   : > { %2007 = vst [vmem:[#allocation2 + $0x48] sm:$0xff] %v1983_v5  ;;  %2009 = vst [vmem:[#allocation2 + $0x58] sm:$0xff] %v1985_v6 }
 0x240   : > { %v1614_v13 = vpop.f32.mrb[6].mxu0  ;;  %v1685_v19 = vpop.f32.mrb[6].mxu1 }
 0x241   : > { %v1615_v15 = vadd.f32 %v1614_v13, %v1053_v7  ;;  %v1616_v20 = vpop.f32.mrb[7].mxu0  ;;  %v1686_v21 = vadd.f32 %v1685_v19, %v1061_v9  ;;  %v1687_v12 = vpop.f32.mrb[7].mxu1 }
 0x242   : > { %v1617_v22 = vadd.f32 %v1616_v20, %v1057_v10  ;;  %v1688_v24 = vadd.f32 %v1687_v12, %v1065_v11 }
 0x243   : > { %v1986_v23 = vmax.f32 %v1615_v15, 0.0  ;;  %v1988_v25 = vmax.f32 %v1686_v21, 0.0 }
 0x244   : > { %v1987_v26 = vmax.f32 %v1617_v22, 0.0  ;;  %v1989_v27 = vmax.f32 %v1688_v24, 0.0 }
 0x245   : > { %2010 = vst [vmem:[#allocation2 + $0x60] sm:$0xff] %v1986_v23  ;;  %2012 = vst [vmem:[#allocation2 + $0x70] sm:$0xff] %v1988_v25 }
 0x246   : > { %2011 = vst [vmem:[#allocation2 + $0x68] sm:$0xff] %v1987_v26  ;;  %2013 = vst [vmem:[#allocation2 + $0x78] sm:$0xff] %v1989_v27 }
 0x260   : > { %v1756_v33 = vpop.f32.mrb[8].mxu0  ;;  %v1827_v39 = vpop.f32.mrb[8].mxu1 }
 0x261   : > { %v1757_v38 = vadd.f32 %v1756_v33, %v1069_v29  ;;  %v1758_v40 = vpop.f32.mrb[9].mxu0  ;;  %v1828_v41 = vadd.f32 %v1827_v39, %v1077_v30  ;;  %v1829_v43 = vpop.f32.mrb[9].mxu1 }
 0x262   : > { %v1759_v42 = vadd.f32 %v1758_v40, %v1073_v31  ;;  %v1830_v45 = vadd.f32 %v1829_v43, %v1081_v32 }
 0x263   : > { %v1990_v44 = vmax.f32 %v1757_v38, 0.0  ;;  %v1992_v46 = vmax.f32 %v1828_v41, 0.0 }
 0x264   : > { %v1991_v47 = vmax.f32 %v1759_v42, 0.0  ;;  %v1993_v8 = vmax.f32 %v1830_v45, 0.0 }
 0x265   : > { %2014 = vst [vmem:[#allocation2 + $0x80] sm:$0xff] %v1990_v44  ;;  %2016 = vst [vmem:[#allocation2 + $0x90] sm:$0xff] %v1992_v46 }
 0x266   : > { %2015 = vst [vmem:[#allocation2 + $0x88] sm:$0xff] %v1991_v47  ;;  %2017 = vst [vmem:[#allocation2 + $0x98] sm:$0xff] %v1993_v8 }
 0x280   : > { %v1898_v48 = vpop.f32.mrb[10].mxu0  ;;  %v1969_v50 = vpop.f32.mrb[10].mxu1 }
 0x281   : > { %v1899_v49 = vadd.f32 %v1898_v48, %v1085_v14  ;;  %v1900_v51 = vpop.f32.mrb[11].mxu0  ;;  %v1970_v52 = vadd.f32 %v1969_v50, %v1093_v16  ;;  %v1971_v54 = vpop.f32.mrb[11].mxu1 }
 0x282   : > { %v1901_v53 = vadd.f32 %v1900_v51, %v1089_v17  ;;  %v1972_v56 = vadd.f32 %v1971_v54, %v1097_v18 }
 0x283   : > { %v1994_v55 = vmax.f32 %v1899_v49, 0.0  ;;  %v1996_v57 = vmax.f32 %v1970_v52, 0.0 }
 0x284   : > { %v1995_v58 = vmax.f32 %v1901_v53, 0.0  ;;  %v1997_v59 = vmax.f32 %v1972_v56, 0.0 }
 0x285   : > { %2018 = vst [vmem:[#allocation2 + $0xa0] sm:$0xff] %v1994_v55  ;;  %2020 = vst [vmem:[#allocation2 + $0xb0] sm:$0xff] %v1996_v57 }
 0x286   : > { %2019 = vst [vmem:[#allocation2 + $0xa8] sm:$0xff] %v1995_v58  ;;  %2021 = vst [vmem:[#allocation2 + $0xb8] sm:$0xff] %v1997_v59 }
 0x287 PF: > { %v9858_v34 = vld [vmem:[%s11623_s1 + $0x4] ss:$16 sps:$4 sm:$0xff]   ;;  %v9860_v35 = vld [vmem:[%s11623_s1 + $0xc] ss:$16 sps:$4 sm:$0xff]   ;;  %v9862_v36 = vld [vmem:[%s11623_s1] ss:$16 sps:$4 sm:$0xff]  }
 0x288   : > { %7144 = vmatprep.subr.bf16.mxu0 %v9858_v34  ;;  %v9863_v37 = vld [vmem:[%s11623_s1 + $0x8] ss:$16 sps:$4 sm:$0xff]   ;;  %7912 = vmatprep.subr.bf16.mxu1 %v9860_v35  ;;  %v9864_v60 = vld [vmem:[%s11623_s1 + $0x24] ss:$16 sps:$4 sm:$0xff]   ;;  %v9866_v61 = vld [vmem:[%s11623_s1 + $0x2c] ss:$16 sps:$4 sm:$0xff]  }
 0x289   : > { %7146 = vmatpush1.bf16.msra.mxu0 %v9862_v36  ;;  %7914 = vmatpush1.bf16.msra.mxu1 %v9863_v37  ;;  %v9868_v62 = vld [vmem:[%s11623_s1 + $0x20] ss:$16 sps:$4 sm:$0xff]   ;;  %v9869_v63 = vld [vmem:[%s11623_s1 + $0x28] ss:$16 sps:$4 sm:$0xff]   ;;  %v9870_v0 = vld [vmem:[%s11623_s1 + $0x44] ss:$16 sps:$4 sm:$0xff]  }
 0x28a   : > { %7148 = vmatprep.subr.bf16.mxu0 %v9864_v60  ;;  %7916 = vmatprep.subr.bf16.mxu1 %v9866_v61  ;;  %v9872_v1 = vld [vmem:[%s11623_s1 + $0x4c] ss:$16 sps:$4 sm:$0xff]   ;;  %v9874_v2 = vld [vmem:[%s11623_s1 + $0x40] ss:$16 sps:$4 sm:$0xff]   ;;  %v9875_v3 = vld [vmem:[%s11623_s1 + $0x48] ss:$16 sps:$4 sm:$0xff]  }
 0x28b   : > { %v9876_v4 = vld [vmem:[%s11623_s1 + $0x64] ss:$16 sps:$4 sm:$0xff]   ;;  %v9878_v5 = vld [vmem:[%s11623_s1 + $0x6c] ss:$16 sps:$4 sm:$0xff]   ;;  %v9880_v6 = vld [vmem:[%s11623_s1 + $0x60] ss:$16 sps:$4 sm:$0xff]  }
 0x28c   : > { %v9881_v7 = vld [vmem:[%s11623_s1 + $0x68] ss:$16 sps:$4 sm:$0xff]   ;;  %v9882_v9 = vld [vmem:[%s11623_s1 + $0x84] ss:$16 sps:$4 sm:$0xff]   ;;  %v9884_v10 = vld [vmem:[%s11623_s1 + $0x8c] ss:$16 sps:$4 sm:$0xff]  }
 0x28d   : > { %7150 = vmatpush1.bf16.msra.mxu0 %v9868_v62  ;;  %7918 = vmatpush1.bf16.msra.mxu1 %v9869_v63  ;;  %v9886_v11 = vld [vmem:[%s11623_s1 + $0x80] ss:$16 sps:$4 sm:$0xff]   ;;  %v9887_v13 = vld [vmem:[%s11623_s1 + $0x88] ss:$16 sps:$4 sm:$0xff]   ;;  %v9888_v15 = vld [vmem:[%s11623_s1 + $0xa4] ss:$16 sps:$4 sm:$0xff]  }
 0x28e   : > { %7152 = vmatprep.subr.bf16.mxu0 %v9870_v0  ;;  %7920 = vmatprep.subr.bf16.mxu1 %v9872_v1  ;;  %v9890_v19 = vld [vmem:[%s11623_s1 + $0xac] ss:$16 sps:$4 sm:$0xff]   ;;  %v9892_v20 = vld [vmem:[%s11623_s1 + $0xa0] ss:$16 sps:$4 sm:$0xff]   ;;  %v9893_v21 = vld [vmem:[%s11623_s1 + $0xa8] ss:$16 sps:$4 sm:$0xff]  }
 0x28f   : > { %v9894_v22 = vld [vmem:[%s11623_s1 + $0xc4] ss:$16 sps:$4 sm:$0xff]   ;;  %v9896_v12 = vld [vmem:[%s11623_s1 + $0xcc] ss:$16 sps:$4 sm:$0xff]   ;;  %v9898_v23 = vld [vmem:[%s11623_s1 + $0xc0] ss:$16 sps:$4 sm:$0xff]  }
 0x290   : > { %v9899_v24 = vld [vmem:[%s11623_s1 + $0xc8] ss:$16 sps:$4 sm:$0xff]   ;;  %v9900_v25 = vld [vmem:[%s11623_s1 + $0xe4] ss:$16 sps:$4 sm:$0xff]   ;;  %v9902_v26 = vld [vmem:[%s11623_s1 + $0xec] ss:$16 sps:$4 sm:$0xff]  }
 0x291   : > { %7154 = vmatpush1.bf16.msra.mxu0 %v9874_v2  ;;  %7922 = vmatpush1.bf16.msra.mxu1 %v9875_v3  ;;  %v9904_v27 = vld [vmem:[%s11623_s1 + $0xe0] ss:$16 sps:$4 sm:$0xff]   ;;  %v9905_v28 = vld [vmem:[%s11623_s1 + $0xe8] ss:$16 sps:$4 sm:$0xff]   ;;  %v9906_v29 = vld [vmem:[%s11623_s1 + $0x104] ss:$16 sps:$4 sm:$0xff]  }
 0x292   : > { %7156 = vmatprep.subr.bf16.mxu0 %v9876_v4  ;;  %7924 = vmatprep.subr.bf16.mxu1 %v9878_v5  ;;  %v9908_v30 = vld [vmem:[%s11623_s1 + $0x10c] ss:$16 sps:$4 sm:$0xff]   ;;  %v9910_v31 = vld [vmem:[%s11623_s1 + $0x100] ss:$16 sps:$4 sm:$0xff]   ;;  %v9911_v32 = vld [vmem:[%s11623_s1 + $0x108] ss:$16 sps:$4 sm:$0xff]  }
 0x293   : > { %v9912_v33 = vld [vmem:[%s11623_s1 + $0x124] ss:$16 sps:$4 sm:$0xff]   ;;  %v9914_v38 = vld [vmem:[%s11623_s1 + $0x12c] ss:$16 sps:$4 sm:$0xff]   ;;  %v9916_v39 = vld [vmem:[%s11623_s1 + $0x120] ss:$16 sps:$4 sm:$0xff]  }
 0x294   : > { %v9917_v40 = vld [vmem:[%s11623_s1 + $0x128] ss:$16 sps:$4 sm:$0xff]   ;;  %v9918_v41 = vld [vmem:[%s11623_s1 + $0x144] ss:$16 sps:$4 sm:$0xff]   ;;  %v9920_v42 = vld [vmem:[%s11623_s1 + $0x14c] ss:$16 sps:$4 sm:$0xff]  }
 0x295   : > { %7158 = vmatpush1.bf16.msra.mxu0 %v9880_v6  ;;  %7926 = vmatpush1.bf16.msra.mxu1 %v9881_v7  ;;  %v9922_v43 = vld [vmem:[%s11623_s1 + $0x140] ss:$16 sps:$4 sm:$0xff]   ;;  %v9923_v44 = vld [vmem:[%s11623_s1 + $0x148] ss:$16 sps:$4 sm:$0xff]   ;;  %v9924_v45 = vld [vmem:[%s11623_s1 + $0x164] ss:$16 sps:$4 sm:$0xff]  }
 0x296   : > { %7160 = vmatprep.subr.bf16.mxu0 %v9882_v9  ;;  %7928 = vmatprep.subr.bf16.mxu1 %v9884_v10  ;;  %v9926_v46 = vld [vmem:[%s11623_s1 + $0x16c] ss:$16 sps:$4 sm:$0xff]   ;;  %v9928_v8 = vld [vmem:[%s11623_s1 + $0x160] ss:$16 sps:$4 sm:$0xff]   ;;  %v9929_v14 = vld [vmem:[%s11623_s1 + $0x168] ss:$16 sps:$4 sm:$0xff]  }
 0x297   : > { %v2031_v47 = vld [vmem:[#allocation2 + $0x8] sm:$0xff]  ;;  %v9930_v16 = vld [vmem:[%s11623_s1 + $0x184] ss:$16 sps:$4 sm:$0xff]   ;;  %v9934_v18 = vld [vmem:[%s11623_s1 + $0x180] ss:$16 sps:$4 sm:$0xff]   ;;  %s11309_s29 = smov [#allocation15]  }
 0x298   : > { %4444 = vmatprep.mubr.f32.mxu0 %v2031_v47  ;;  %5296 = vmatprep.mubr.f32.mxu1 %v2031_v47  ;;  %v9932_v17 = vld [vmem:[%s11623_s1 + $0x18c] ss:$16 sps:$4 sm:$0xff]   ;;  %v9935_v48 = vld [vmem:[%s11623_s1 + $0x188] ss:$16 sps:$4 sm:$0xff]   ;;  %v9936_v49 = vld [vmem:[%s11623_s1 + $0x1a4] ss:$16 sps:$4 sm:$0xff]  }
 0x299   : > { %7162 = vmatpush1.bf16.msra.mxu0 %v9886_v11  ;;  %7930 = vmatpush1.bf16.msra.mxu1 %v9887_v13  ;;  %v9938_v50 = vld [vmem:[%s11623_s1 + $0x1ac] ss:$16 sps:$4 sm:$0xff]   ;;  %v9940_v51 = vld [vmem:[%s11623_s1 + $0x1a0] ss:$16 sps:$4 sm:$0xff]   ;;  %v9941_v52 = vld [vmem:[%s11623_s1 + $0x1a8] ss:$16 sps:$4 sm:$0xff]  }
 0x29a   : > { %7164 = vmatprep.subr.bf16.mxu0 %v9888_v15  ;;  %7932 = vmatprep.subr.bf16.mxu1 %v9890_v19  ;;  %v9942_v53 = vld [vmem:[%s11623_s1 + $0x1c4] ss:$16 sps:$4 sm:$0xff]   ;;  %v9944_v54 = vld [vmem:[%s11623_s1 + $0x1cc] ss:$16 sps:$4 sm:$0xff]   ;;  %v9946_v55 = vld [vmem:[%s11623_s1 + $0x1c0] ss:$16 sps:$4 sm:$0xff]  }
 0x29b   : > { %v9947_v56 = vld [vmem:[%s11623_s1 + $0x1c8] ss:$16 sps:$4 sm:$0xff]   ;;  %v9948_v57 = vld [vmem:[%s11623_s1 + $0x1e4] ss:$16 sps:$4 sm:$0xff]   ;;  %v9950_v58 = vld [vmem:[%s11623_s1 + $0x1ec] ss:$16 sps:$4 sm:$0xff]  }
 0x29c   : > { %v9952_v59 = vld [vmem:[%s11623_s1 + $0x1e0] ss:$16 sps:$4 sm:$0xff]   ;;  %v9953_v34 = vld [vmem:[%s11623_s1 + $0x1e8] ss:$16 sps:$4 sm:$0xff]   ;;  %v9954_v35 = vld [vmem:[%s11623_s1 + $0x204] ss:$16 sps:$4 sm:$0xff]  }
 0x29d   : > { %7166 = vmatpush1.bf16.msra.mxu0 %v9892_v20  ;;  %7934 = vmatpush1.bf16.msra.mxu1 %v9893_v21  ;;  %v9957_v36 = vld [vmem:[%s11623_s1 + $0x20c] ss:$16 sps:$4 sm:$0xff]   ;;  %v9956_v37 = vld [vmem:[%s11623_s1 + $0x200] ss:$16 sps:$4 sm:$0xff]   ;;  %v9959_v60 = vld [vmem:[%s11623_s1 + $0x208] ss:$16 sps:$4 sm:$0xff]  }
 0x29e   : > { %7168 = vmatprep.subr.bf16.mxu0 %v9894_v22  ;;  %7936 = vmatprep.subr.bf16.mxu1 %v9896_v12  ;;  %v2030_v61 = vld [vmem:[#allocation2] sm:$0xff]  ;;  %v9963_v63 = vld [vmem:[%s11623_s1 + $0x22c] ss:$16 sps:$4 sm:$0xff]   ;;  %v9965_v1 = vld [vmem:[%s11623_s1 + $0x228] ss:$16 sps:$4 sm:$0xff]   ;;  %s6366_s20 = sshll.u32 %s11309_s29, 4  ;;  %s6367_s20 = int_to_ptr.vmem [resolvable:$true] %s6366_s20 }
 0x29f   : > { %v9960_v62 = vld [vmem:[%s11623_s1 + $0x224] ss:$16 sps:$4 sm:$0xff]   ;;  %v9962_v0 = vld [vmem:[%s11623_s1 + $0x220] ss:$16 sps:$4 sm:$0xff]   ;;  %v9969_v3 = vld [vmem:[%s11623_s1 + $0x24c] ss:$16 sps:$4 sm:$0xff]   ;;  %p11219_p12 = scmp.lt.s32.totalorder %s6367_s20, %s6367_s20 }
 0x2a0   : > { %v9966_v2 = vld [vmem:[%s11623_s1 + $0x244] ss:$16 sps:$4 sm:$0xff]   ;;  %v9968_v4 = vld [vmem:[%s11623_s1 + $0x240] ss:$16 sps:$4 sm:$0xff]   ;;  %v9971_v5 = vld [vmem:[%s11623_s1 + $0x248] ss:$16 sps:$4 sm:$0xff]  }
 0x2a1   : > { %7170 = vmatpush1.bf16.msra.mxu0 %v9898_v23  ;;  %7938 = vmatpush1.bf16.msra.mxu1 %v9899_v24  ;;  %v9972_v6 = vld [vmem:[%s11623_s1 + $0x264] ss:$16 sps:$4 sm:$0xff]   ;;  %v9975_v7 = vld [vmem:[%s11623_s1 + $0x26c] ss:$16 sps:$4 sm:$0xff]   ;;  %v9974_v9 = vld [vmem:[%s11623_s1 + $0x260] ss:$16 sps:$4 sm:$0xff]  }
 0x2a2   : > { %7172 = vmatprep.subr.bf16.mxu0 %v9900_v25  ;;  %7940 = vmatprep.subr.bf16.mxu1 %v9902_v26  ;;  %v9977_v10 = vld [vmem:[%s11623_s1 + $0x268] ss:$16 sps:$4 sm:$0xff]   ;;  %v9978_v11 = vld [vmem:[%s11623_s1 + $0x284] ss:$16 sps:$4 sm:$0xff]   ;;  %v9981_v13 = vld [vmem:[%s11623_s1 + $0x28c] ss:$16 sps:$4 sm:$0xff]  }
 0x2a3   : > { %v9980_v15 = vld [vmem:[%s11623_s1 + $0x280] ss:$16 sps:$4 sm:$0xff]   ;;  %v9983_v19 = vld [vmem:[%s11623_s1 + $0x288] ss:$16 sps:$4 sm:$0xff]   ;;  %v9984_v20 = vld [vmem:[%s11623_s1 + $0x2a4] ss:$16 sps:$4 sm:$0xff]  }
 0x2a4   : > { %v9987_v21 = vld [vmem:[%s11623_s1 + $0x2ac] ss:$16 sps:$4 sm:$0xff]   ;;  %v9986_v22 = vld [vmem:[%s11623_s1 + $0x2a0] ss:$16 sps:$4 sm:$0xff]   ;;  %v9989_v12 = vld [vmem:[%s11623_s1 + $0x2a8] ss:$16 sps:$4 sm:$0xff]  }
 0x2a5   : > { %7174 = vmatpush1.bf16.msra.mxu0 %v9904_v27  ;;  %7942 = vmatpush1.bf16.msra.mxu1 %v9905_v28  ;;  %v9990_v23 = vld [vmem:[%s11623_s1 + $0x2c4] ss:$16 sps:$4 sm:$0xff]   ;;  %v9993_v24 = vld [vmem:[%s11623_s1 + $0x2cc] ss:$16 sps:$4 sm:$0xff]   ;;  %v9992_v26 = vld [vmem:[%s11623_s1 + $0x2c0] ss:$16 sps:$4 sm:$0xff]  }
 0x2a6   : > { %7176 = vmatprep.subr.bf16.mxu0 %v9906_v29  ;;  %7944 = vmatprep.subr.bf16.mxu1 %v9908_v30  ;;  %v2033_v25 = vld [vmem:[#allocation2 + $0x18] sm:$0xff]  ;;  %v9996_v28 = vld [vmem:[%s11623_s1 + $0x2e4] ss:$16 sps:$4 sm:$0xff]   ;;  %v9998_v30 = vld [vmem:[%s11623_s1 + $0x2e0] ss:$16 sps:$4 sm:$0xff]   ;;  %p9811_p1 = scmp.eq.s32.totalorder %s11369_s28, 3 }
 0x2a7   : > { %v9995_v27 = vld [vmem:[%s11623_s1 + $0x2c8] ss:$16 sps:$4 sm:$0xff]   ;;  %v9999_v29 = vld [vmem:[%s11623_s1 + $0x2ec] ss:$16 sps:$4 sm:$0xff]   ;;  %s11212_s15 = scalar_lea.vmem %s6367_s20, 128 }
 0x2a8   : > { %v10019_v47 = vld [vmem:[%s11623_s1 + $0x348] ss:$16 sps:$4 sm:$0xff]   ;;  %p11213_p8 = scmp.ne.s32.totalorder %s6367_s20, %s11212_s15  ;;  %p11220_p13 = scmp.lt.s32.totalorder %s11212_s15, %s11212_s15 }
 0x2a9   : > { %7178 = vmatpush1.bf16.msra.mxu0 %v9910_v31  ;;  %7946 = vmatpush1.bf16.msra.mxu1 %v9911_v32  ;;  %v10001_v31 = vld [vmem:[%s11623_s1 + $0x2e8] ss:$16 sps:$4 sm:$0xff]   ;;  %v10002_v32 = vld [vmem:[%s11623_s1 + $0x304] ss:$16 sps:$4 sm:$0xff]  }
 0x2aa   : > { %7180 = vmatprep.subr.bf16.mxu0 %v9912_v33  ;;  %7948 = vmatprep.subr.bf16.mxu1 %v9914_v38  ;;  %v10005_v33 = vld [vmem:[%s11623_s1 + $0x30c] ss:$16 sps:$4 sm:$0xff]   ;;  %v10004_v38 = vld [vmem:[%s11623_s1 + $0x300] ss:$16 sps:$4 sm:$0xff]   ;;  %p11214_p4 = pnand %p11213_p8, %p9811_p1  ;;  %p11221_p5 = por %p11220_p13, %p11219_p12 }
 0x2ac   : > { %p11215_p6 = pneg %p11214_p4 }
 0x2ad   : > { %7182 = vmatpush1.bf16.msra.mxu0 %v9916_v39  ;;  %7950 = vmatpush1.bf16.msra.mxu1 %v9917_v40  ;;  %v10007_v39 = vld [vmem:[%s11623_s1 + $0x308] ss:$16 sps:$4 sm:$0xff]   ;;  %v10008_v40 = vld [vmem:[%s11623_s1 + $0x324] ss:$16 sps:$4 sm:$0xff]  }
 0x2ae   : > { %7184 = vmatprep.subr.bf16.mxu0 %v9918_v41  ;;  %7952 = vmatprep.subr.bf16.mxu1 %v9920_v42  ;;  %v10011_v41 = vld [vmem:[%s11623_s1 + $0x32c] ss:$16 sps:$4 sm:$0xff]   ;;  %v10010_v42 = vld [vmem:[%s11623_s1 + $0x320] ss:$16 sps:$4 sm:$0xff]   ;;  %p11222_p0 = pnand %p11221_p5, %p11215_p6 }
 0x2b1   : > { %7186 = vmatpush1.bf16.msra.mxu0 %v9922_v43  ;;  %7954 = vmatpush1.bf16.msra.mxu1 %v9923_v44  ;;  %v10013_v43 = vld [vmem:[%s11623_s1 + $0x328] ss:$16 sps:$4 sm:$0xff]   ;;  %v10014_v44 = vld [vmem:[%s11623_s1 + $0x344] ss:$16 sps:$4 sm:$0xff]  }
 0x2b2   : > { %7188 = vmatprep.subr.bf16.mxu0 %v9924_v45  ;;  %7956 = vmatprep.subr.bf16.mxu1 %v9926_v46  ;;  %v10017_v45 = vld [vmem:[%s11623_s1 + $0x34c] ss:$16 sps:$4 sm:$0xff]   ;;  %v10016_v46 = vld [vmem:[%s11623_s1 + $0x340] ss:$16 sps:$4 sm:$0xff]  }
 0x2b5   : > { %7190 = vmatpush1.bf16.msra.mxu0 %v9928_v8  ;;  %7958 = vmatpush1.bf16.msra.mxu1 %v9929_v14  ;;  %v10020_v8 = vld [vmem:[%s11623_s1 + $0x364] ss:$16 sps:$4 sm:$0xff]   ;;  %v10023_v14 = vld [vmem:[%s11623_s1 + $0x36c] ss:$16 sps:$4 sm:$0xff]  }
 0x2b6   : > { %7192 = vmatprep.subr.bf16.mxu0 %v9930_v16  ;;  %7960 = vmatprep.subr.bf16.mxu1 %v9932_v17  ;;  %v10022_v16 = vld [vmem:[%s11623_s1 + $0x360] ss:$16 sps:$4 sm:$0xff]   ;;  %v10025_v17 = vld [vmem:[%s11623_s1 + $0x368] ss:$16 sps:$4 sm:$0xff]  }
 0x2b9   : > { %7194 = vmatpush1.bf16.msra.mxu0 %v9934_v18  ;;  %7962 = vmatpush1.bf16.msra.mxu1 %v9935_v48  ;;  %v10026_v18 = vld [vmem:[%s11623_s1 + $0x384] ss:$16 sps:$4 sm:$0xff]   ;;  %v10029_v48 = vld [vmem:[%s11623_s1 + $0x38c] ss:$16 sps:$4 sm:$0xff]  }
 0x2ba   : > { %7196 = vmatprep.subr.bf16.mxu0 %v9936_v49  ;;  %7964 = vmatprep.subr.bf16.mxu1 %v9938_v50  ;;  %v10028_v49 = vld [vmem:[%s11623_s1 + $0x380] ss:$16 sps:$4 sm:$0xff]   ;;  %v10031_v50 = vld [vmem:[%s11623_s1 + $0x388] ss:$16 sps:$4 sm:$0xff]  }
 0x2bd   : > { %7198 = vmatpush1.bf16.msra.mxu0 %v9940_v51  ;;  %7966 = vmatpush1.bf16.msra.mxu1 %v9941_v52  ;;  %v10032_v51 = vld [vmem:[%s11623_s1 + $0x3a4] ss:$16 sps:$4 sm:$0xff]   ;;  %v10035_v52 = vld [vmem:[%s11623_s1 + $0x3ac] ss:$16 sps:$4 sm:$0xff]  }
 0x2be   : > { %7200 = vmatprep.subr.bf16.mxu0 %v9942_v53  ;;  %7968 = vmatprep.subr.bf16.mxu1 %v9944_v54  ;;  %v10034_v53 = vld [vmem:[%s11623_s1 + $0x3a0] ss:$16 sps:$4 sm:$0xff]   ;;  %v10037_v54 = vld [vmem:[%s11623_s1 + $0x3a8] ss:$16 sps:$4 sm:$0xff]  }
 0x2c1   : > { %7202 = vmatpush1.bf16.msra.mxu0 %v9946_v55  ;;  %7970 = vmatpush1.bf16.msra.mxu1 %v9947_v56  ;;  %v10038_v55 = vld [vmem:[%s11623_s1 + $0x3c4] ss:$16 sps:$4 sm:$0xff]   ;;  %v10041_v56 = vld [vmem:[%s11623_s1 + $0x3cc] ss:$16 sps:$4 sm:$0xff]  }
 0x2c2   : > { %7204 = vmatprep.subr.bf16.mxu0 %v9948_v57  ;;  %7972 = vmatprep.subr.bf16.mxu1 %v9950_v58  ;;  %v10040_v57 = vld [vmem:[%s11623_s1 + $0x3c0] ss:$16 sps:$4 sm:$0xff]   ;;  %v10043_v58 = vld [vmem:[%s11623_s1 + $0x3c8] ss:$16 sps:$4 sm:$0xff]  }
 0x2c5   : > { %7206 = vmatpush1.bf16.msra.mxu0 %v9952_v59  ;;  %7974 = vmatpush1.bf16.msra.mxu1 %v9953_v34  ;;  %v10044_v59 = vld [vmem:[%s11623_s1 + $0x3e4] ss:$16 sps:$4 sm:$0xff]   ;;  %v10047_v34 = vld [vmem:[%s11623_s1 + $0x3ec] ss:$16 sps:$4 sm:$0xff]  }
 0x2c6   : > { %7208 = vmatprep.subr.bf16.mxu0 %v9954_v35  ;;  %7976 = vmatprep.subr.bf16.mxu1 %v9957_v36  ;;  %v10046_v35 = vld [vmem:[%s11623_s1 + $0x3e0] ss:$16 sps:$4 sm:$0xff]   ;;  %v10049_v36 = vld [vmem:[%s11623_s1 + $0x3e8] ss:$16 sps:$4 sm:$0xff]  }
 0x2c8   : > { %4445 = vmatmul.mubr.f32.vlgmr.msra.gmra.mrb[0].mxu0 %v2030_v61  ;;  %5297 = vmatmul.mubr.f32.vlgmr.msra.gmra.mrb[0].mxu1 %v2030_v61  ;;  %v10052_v61 = vld [vmem:[%s11623_s1 + $0x400] ss:$16 sps:$4 sm:$0xff]  }
 0x2c9   : > { %7210 = vmatpush1.bf16.msra.mxu0 %v9956_v37  ;;  %7978 = vmatpush1.bf16.msra.mxu1 %v9959_v60  ;;  %v10050_v37 = vld [vmem:[%s11623_s1 + $0x404] ss:$16 sps:$4 sm:$0xff]   ;;  %v10053_v60 = vld [vmem:[%s11623_s1 + $0x40c] ss:$16 sps:$4 sm:$0xff]  }
 0x2ca   : > { %7212 = vmatprep.subr.bf16.mxu0 %v9960_v62  ;;  %7980 = vmatprep.subr.bf16.mxu1 %v9963_v63  ;;  %v10055_v62 = vld [vmem:[%s11623_s1 + $0x408] ss:$16 sps:$4 sm:$0xff]   ;;  %v2032_v63 = vld [vmem:[#allocation2 + $0x10] sm:$0xff] }
 0x2cb   : > { %4515 = vmatprep.mubr.f32.mxu0 %v2033_v25  ;;  %5367 = vmatprep.mubr.f32.mxu1 %v2033_v25  ;;  %v10085_v25 = vld [vmem:[%s11623_s1 + $0x4a8] ss:$16 sps:$4 sm:$0xff]  }
 0x2cd   : > { %7214 = vmatpush1.bf16.msra.mxu0 %v9962_v0  ;;  %7982 = vmatpush1.bf16.msra.mxu1 %v9965_v1  ;;  %v10056_v0 = vld [vmem:[%s11623_s1 + $0x424] ss:$16 sps:$4 sm:$0xff]   ;;  %v10059_v1 = vld [vmem:[%s11623_s1 + $0x42c] ss:$16 sps:$4 sm:$0xff]  }
 0x2ce   : > { %7216 = vmatprep.subr.bf16.mxu0 %v9966_v2  ;;  %7984 = vmatprep.subr.bf16.mxu1 %v9969_v3  ;;  %v2035_v2 = vld [vmem:[#allocation2 + $0x28] sm:$0xff]  ;;  %v10058_v3 = vld [vmem:[%s11623_s1 + $0x420] ss:$16 sps:$4 sm:$0xff]  }
 0x2d1   : > { %7218 = vmatpush1.bf16.msra.mxu0 %v9968_v4  ;;  %7986 = vmatpush1.bf16.msra.mxu1 %v9971_v5  ;;  %v10061_v4 = vld [vmem:[%s11623_s1 + $0x428] ss:$16 sps:$4 sm:$0xff]   ;;  %v10062_v5 = vld [vmem:[%s11623_s1 + $0x444] ss:$16 sps:$4 sm:$0xff]  }
 0x2d2   : > { %7220 = vmatprep.subr.bf16.mxu0 %v9972_v6  ;;  %7988 = vmatprep.subr.bf16.mxu1 %v9975_v7  ;;  %v10065_v6 = vld [vmem:[%s11623_s1 + $0x44c] ss:$16 sps:$4 sm:$0xff]   ;;  %v10064_v7 = vld [vmem:[%s11623_s1 + $0x440] ss:$16 sps:$4 sm:$0xff]  }
 0x2d5   : > { %7222 = vmatpush1.bf16.msra.mxu0 %v9974_v9  ;;  %7990 = vmatpush1.bf16.msra.mxu1 %v9977_v10  ;;  %v10067_v9 = vld [vmem:[%s11623_s1 + $0x448] ss:$16 sps:$4 sm:$0xff]   ;;  %v10068_v10 = vld [vmem:[%s11623_s1 + $0x464] ss:$16 sps:$4 sm:$0xff]  }
 0x2d6   : > { %7224 = vmatprep.subr.bf16.mxu0 %v9978_v11  ;;  %7992 = vmatprep.subr.bf16.mxu1 %v9981_v13  ;;  %v10071_v11 = vld [vmem:[%s11623_s1 + $0x46c] ss:$16 sps:$4 sm:$0xff]   ;;  %v10070_v13 = vld [vmem:[%s11623_s1 + $0x460] ss:$16 sps:$4 sm:$0xff]  }
 0x2d9   : > { %7226 = vmatpush1.bf16.msra.mxu0 %v9980_v15  ;;  %7994 = vmatpush1.bf16.msra.mxu1 %v9983_v19  ;;  %v10073_v15 = vld [vmem:[%s11623_s1 + $0x468] ss:$16 sps:$4 sm:$0xff]   ;;  %v10074_v19 = vld [vmem:[%s11623_s1 + $0x484] ss:$16 sps:$4 sm:$0xff]  }
 0x2da   : > { %7228 = vmatprep.subr.bf16.mxu0 %v9984_v20  ;;  %7996 = vmatprep.subr.bf16.mxu1 %v9987_v21  ;;  %v10077_v20 = vld [vmem:[%s11623_s1 + $0x48c] ss:$16 sps:$4 sm:$0xff]   ;;  %v10076_v21 = vld [vmem:[%s11623_s1 + $0x480] ss:$16 sps:$4 sm:$0xff]  }
 0x2dd   : > { %7230 = vmatpush1.bf16.msra.mxu0 %v9986_v22  ;;  %7998 = vmatpush1.bf16.msra.mxu1 %v9989_v12  ;;  %v10079_v22 = vld [vmem:[%s11623_s1 + $0x488] ss:$16 sps:$4 sm:$0xff]   ;;  %v10080_v12 = vld [vmem:[%s11623_s1 + $0x4a4] ss:$16 sps:$4 sm:$0xff]  }
 0x2de   : > { %7232 = vmatprep.subr.bf16.mxu0 %v9990_v23  ;;  %8000 = vmatprep.subr.bf16.mxu1 %v9993_v24  ;;  %v10083_v23 = vld [vmem:[%s11623_s1 + $0x4ac] ss:$16 sps:$4 sm:$0xff]   ;;  %v10082_v24 = vld [vmem:[%s11623_s1 + $0x4a0] ss:$16 sps:$4 sm:$0xff]  }
 0x2e1   : > { %7234 = vmatpush1.bf16.msra.mxu0 %v9992_v26  ;;  %8002 = vmatpush1.bf16.msra.mxu1 %v9995_v27  ;;  %v10086_v26 = vld [vmem:[%s11623_s1 + $0x4c4] ss:$16 sps:$4 sm:$0xff]   ;;  %v10089_v27 = vld [vmem:[%s11623_s1 + $0x4cc] ss:$16 sps:$4 sm:$0xff]  }
 0x2e2   : > { %7236 = vmatprep.subr.bf16.mxu0 %v9996_v28  ;;  %8004 = vmatprep.subr.bf16.mxu1 %v9999_v29  ;;  %v10088_v28 = vld [vmem:[%s11623_s1 + $0x4c0] ss:$16 sps:$4 sm:$0xff]   ;;  %v10091_v29 = vld [vmem:[%s11623_s1 + $0x4c8] ss:$16 sps:$4 sm:$0xff]  }
 0x2e5   : > { %7238 = vmatpush1.bf16.msra.mxu0 %v9998_v30  ;;  %8006 = vmatpush1.bf16.msra.mxu1 %v10001_v31  ;;  %v10092_v30 = vld [vmem:[%s11623_s1 + $0x4e4] ss:$16 sps:$4 sm:$0xff]   ;;  %v10095_v31 = vld [vmem:[%s11623_s1 + $0x4ec] ss:$16 sps:$4 sm:$0xff]  }
 0x2e6   : > { %7240 = vmatprep.subr.bf16.mxu0 %v10002_v32  ;;  %8008 = vmatprep.subr.bf16.mxu1 %v10005_v33  ;;  %v10094_v32 = vld [vmem:[%s11623_s1 + $0x4e0] ss:$16 sps:$4 sm:$0xff]   ;;  %v10097_v33 = vld [vmem:[%s11623_s1 + $0x4e8] ss:$16 sps:$4 sm:$0xff]  }
 0x2e9   : > { %7242 = vmatpush1.bf16.msra.mxu0 %v10004_v38  ;;  %8010 = vmatpush1.bf16.msra.mxu1 %v10007_v39  ;;  %v10098_v38 = vld [vmem:[%s11623_s1 + $0x504] ss:$16 sps:$4 sm:$0xff]   ;;  %v10101_v39 = vld [vmem:[%s11623_s1 + $0x50c] ss:$16 sps:$4 sm:$0xff]  }
 0x2ea   : > { %7244 = vmatprep.subr.bf16.mxu0 %v10008_v40  ;;  %8012 = vmatprep.subr.bf16.mxu1 %v10011_v41  ;;  %v10100_v40 = vld [vmem:[%s11623_s1 + $0x500] ss:$16 sps:$4 sm:$0xff]   ;;  %v10103_v41 = vld [vmem:[%s11623_s1 + $0x508] ss:$16 sps:$4 sm:$0xff]  }
 0x2ed   : > { %7246 = vmatpush1.bf16.msra.mxu0 %v10010_v42  ;;  %8014 = vmatpush1.bf16.msra.mxu1 %v10013_v43  ;;  %v10104_v42 = vld [vmem:[%s11623_s1 + $0x524] ss:$16 sps:$4 sm:$0xff]   ;;  %v10107_v43 = vld [vmem:[%s11623_s1 + $0x52c] ss:$16 sps:$4 sm:$0xff]  }
 0x2ee   : > { %7248 = vmatprep.subr.bf16.mxu0 %v10014_v44  ;;  %8016 = vmatprep.subr.bf16.mxu1 %v10017_v45  ;;  %v10106_v44 = vld [vmem:[%s11623_s1 + $0x520] ss:$16 sps:$4 sm:$0xff]   ;;  %v10109_v45 = vld [vmem:[%s11623_s1 + $0x528] ss:$16 sps:$4 sm:$0xff]  }
 0x2f1   : > { %7250 = vmatpush1.bf16.msra.mxu0 %v10016_v46  ;;  %8018 = vmatpush1.bf16.msra.mxu1 %v10019_v47  ;;  %v10110_v46 = vld [vmem:[%s11623_s1 + $0x544] ss:$16 sps:$4 sm:$0xff]   ;;  %v10113_v47 = vld [vmem:[%s11623_s1 + $0x54c] ss:$16 sps:$4 sm:$0xff]  }
 0x2f2   : > { %7252 = vmatprep.subr.bf16.mxu0 %v10020_v8  ;;  %8020 = vmatprep.subr.bf16.mxu1 %v10023_v14  ;;  %v10112_v8 = vld [vmem:[%s11623_s1 + $0x540] ss:$16 sps:$4 sm:$0xff]   ;;  %v10115_v14 = vld [vmem:[%s11623_s1 + $0x548] ss:$16 sps:$4 sm:$0xff]  }
 0x2f5   : > { %7254 = vmatpush1.bf16.msra.mxu0 %v10022_v16  ;;  %8022 = vmatpush1.bf16.msra.mxu1 %v10025_v17  ;;  %v10116_v16 = vld [vmem:[%s11623_s1 + $0x564] ss:$16 sps:$4 sm:$0xff]   ;;  %v10119_v17 = vld [vmem:[%s11623_s1 + $0x56c] ss:$16 sps:$4 sm:$0xff]  }
 0x2f6   : > { %7256 = vmatprep.subr.bf16.mxu0 %v10026_v18  ;;  %8024 = vmatprep.subr.bf16.mxu1 %v10029_v48  ;;  %v10118_v18 = vld [vmem:[%s11623_s1 + $0x560] ss:$16 sps:$4 sm:$0xff]   ;;  %v10121_v48 = vld [vmem:[%s11623_s1 + $0x568] ss:$16 sps:$4 sm:$0xff]  }
 0x2f9   : > { %7258 = vmatpush1.bf16.msra.mxu0 %v10028_v49  ;;  %8026 = vmatpush1.bf16.msra.mxu1 %v10031_v50  ;;  %v10122_v49 = vld [vmem:[%s11623_s1 + $0x584] ss:$16 sps:$4 sm:$0xff]   ;;  %v10125_v50 = vld [vmem:[%s11623_s1 + $0x58c] ss:$16 sps:$4 sm:$0xff]  }
 0x2fa   : > { %7260 = vmatprep.subr.bf16.mxu0 %v10032_v51  ;;  %8028 = vmatprep.subr.bf16.mxu1 %v10035_v52  ;;  %v10124_v51 = vld [vmem:[%s11623_s1 + $0x580] ss:$16 sps:$4 sm:$0xff]   ;;  %v10127_v52 = vld [vmem:[%s11623_s1 + $0x588] ss:$16 sps:$4 sm:$0xff]  }
 0x2fd   : > { %7262 = vmatpush1.bf16.msra.mxu0 %v10034_v53  ;;  %8030 = vmatpush1.bf16.msra.mxu1 %v10037_v54  ;;  %v10128_v53 = vld [vmem:[%s11623_s1 + $0x5a4] ss:$16 sps:$4 sm:$0xff]   ;;  %v10131_v54 = vld [vmem:[%s11623_s1 + $0x5ac] ss:$16 sps:$4 sm:$0xff]  }
 0x2fe   : > { %7264 = vmatprep.subr.bf16.mxu0 %v10038_v55  ;;  %8032 = vmatprep.subr.bf16.mxu1 %v10041_v56  ;;  %v10130_v55 = vld [vmem:[%s11623_s1 + $0x5a0] ss:$16 sps:$4 sm:$0xff]   ;;  %v10133_v56 = vld [vmem:[%s11623_s1 + $0x5a8] ss:$16 sps:$4 sm:$0xff]  }
 0x301   : > { %7266 = vmatpush1.bf16.msra.mxu0 %v10040_v57  ;;  %8034 = vmatpush1.bf16.msra.mxu1 %v10043_v58  ;;  %v10134_v57 = vld [vmem:[%s11623_s1 + $0x5c4] ss:$16 sps:$4 sm:$0xff]   ;;  %v10137_v58 = vld [vmem:[%s11623_s1 + $0x5cc] ss:$16 sps:$4 sm:$0xff]  }
 0x302   : > { %7268 = vmatprep.subr.bf16.mxu0 %v10044_v59  ;;  %8036 = vmatprep.subr.bf16.mxu1 %v10047_v34  ;;  %v10136_v59 = vld [vmem:[%s11623_s1 + $0x5c0] ss:$16 sps:$4 sm:$0xff]   ;;  %v10139_v34 = vld [vmem:[%s11623_s1 + $0x5c8] ss:$16 sps:$4 sm:$0xff]  }
 0x305   : > { %7270 = vmatpush1.bf16.msra.mxu0 %v10046_v35  ;;  %8038 = vmatpush1.bf16.msra.mxu1 %v10049_v36  ;;  %v10140_v35 = vld [vmem:[%s11623_s1 + $0x5e4] ss:$16 sps:$4 sm:$0xff]   ;;  %v10143_v36 = vld [vmem:[%s11623_s1 + $0x5ec] ss:$16 sps:$4 sm:$0xff]  }
 0x306   : > { %7272 = vmatprep.subr.bf16.mxu0 %v10050_v37  ;;  %8040 = vmatprep.subr.bf16.mxu1 %v10053_v60  ;;  %v10142_v37 = vld [vmem:[%s11623_s1 + $0x5e0] ss:$16 sps:$4 sm:$0xff]   ;;  %v10145_v60 = vld [vmem:[%s11623_s1 + $0x5e8] ss:$16 sps:$4 sm:$0xff]  }
 0x308   : > { %4516 = vmatmul.mubr.f32.vlgmr.msra.gmra.mrb[0].mxu0 %v2032_v63  ;;  %5368 = vmatmul.mubr.f32.vlgmr.msra.gmra.mrb[0].mxu1 %v2032_v63  ;;  %v10148_v63 = vld [vmem:[%s11623_s1 + $0x600] ss:$16 sps:$4 sm:$0xff]  }
 0x309   : > { %7274 = vmatpush1.bf16.msra.mxu0 %v10052_v61  ;;  %8042 = vmatpush1.bf16.msra.mxu1 %v10055_v62  ;;  %v10146_v61 = vld [vmem:[%s11623_s1 + $0x604] ss:$16 sps:$4 sm:$0xff]   ;;  %v10149_v62 = vld [vmem:[%s11623_s1 + $0x60c] ss:$16 sps:$4 sm:$0xff]  }
 0x30a   : > { %7276 = vmatprep.subr.bf16.mxu0 %v10056_v0  ;;  %8044 = vmatprep.subr.bf16.mxu1 %v10059_v1  ;;  %v10151_v0 = vld [vmem:[%s11623_s1 + $0x608] ss:$16 sps:$4 sm:$0xff]   ;;  %v2034_v1 = vld [vmem:[#allocation2 + $0x20] sm:$0xff] }
 0x30b   : > { %4586 = vmatprep.mubr.f32.mxu0 %v2035_v2  ;;  %5438 = vmatprep.mubr.f32.mxu1 %v2035_v2  ;;  %v10152_v2 = vld [vmem:[%s11623_s1 + $0x624] ss:$16 sps:$4 sm:$0xff]  }
 0x30d   : > { %7278 = vmatpush1.bf16.msra.mxu0 %v10058_v3  ;;  %8046 = vmatpush1.bf16.msra.mxu1 %v10061_v4  ;;  %v10155_v3 = vld [vmem:[%s11623_s1 + $0x62c] ss:$16 sps:$4 sm:$0xff]   ;;  %v10154_v4 = vld [vmem:[%s11623_s1 + $0x620] ss:$16 sps:$4 sm:$0xff]  }
 0x30e   : > { %7280 = vmatprep.subr.bf16.mxu0 %v10062_v5  ;;  %8048 = vmatprep.subr.bf16.mxu1 %v10065_v6  ;;  %v10157_v5 = vld [vmem:[%s11623_s1 + $0x628] ss:$16 sps:$4 sm:$0xff]  }
 0x30f   : > { %v2037_v6 = vld [vmem:[#allocation2 + $0x38] sm:$0xff] }
 0x311   : > { %7282 = vmatpush1.bf16.msra.mxu0 %v10064_v7  ;;  %8050 = vmatpush1.bf16.msra.mxu1 %v10067_v9  ;;  %v10158_v7 = vld [vmem:[%s11623_s1 + $0x644] ss:$16 sps:$4 sm:$0xff]   ;;  %v10161_v9 = vld [vmem:[%s11623_s1 + $0x64c] ss:$16 sps:$4 sm:$0xff]  }
 0x312   : > { %7284 = vmatprep.subr.bf16.mxu0 %v10068_v10  ;;  %8052 = vmatprep.subr.bf16.mxu1 %v10071_v11  ;;  %v10160_v10 = vld [vmem:[%s11623_s1 + $0x640] ss:$16 sps:$4 sm:$0xff]   ;;  %v10163_v11 = vld [vmem:[%s11623_s1 + $0x648] ss:$16 sps:$4 sm:$0xff]  }
 0x315   : > { %7286 = vmatpush1.bf16.msra.mxu0 %v10070_v13  ;;  %8054 = vmatpush1.bf16.msra.mxu1 %v10073_v15  ;;  %v10164_v13 = vld [vmem:[%s11623_s1 + $0x664] ss:$16 sps:$4 sm:$0xff]   ;;  %v10167_v15 = vld [vmem:[%s11623_s1 + $0x66c] ss:$16 sps:$4 sm:$0xff]  }
 0x316   : > { %7288 = vmatprep.subr.bf16.mxu0 %v10074_v19  ;;  %8056 = vmatprep.subr.bf16.mxu1 %v10077_v20  ;;  %v10166_v19 = vld [vmem:[%s11623_s1 + $0x660] ss:$16 sps:$4 sm:$0xff]   ;;  %v10169_v20 = vld [vmem:[%s11623_s1 + $0x668] ss:$16 sps:$4 sm:$0xff]  }
 0x319   : > { %7290 = vmatpush1.bf16.msra.mxu0 %v10076_v21  ;;  %8058 = vmatpush1.bf16.msra.mxu1 %v10079_v22  ;;  %v10170_v21 = vld [vmem:[%s11623_s1 + $0x684] ss:$16 sps:$4 sm:$0xff]   ;;  %v10173_v22 = vld [vmem:[%s11623_s1 + $0x68c] ss:$16 sps:$4 sm:$0xff]  }
 0x31a   : > { %7292 = vmatprep.subr.bf16.mxu0 %v10080_v12  ;;  %8060 = vmatprep.subr.bf16.mxu1 %v10083_v23  ;;  %v10172_v12 = vld [vmem:[%s11623_s1 + $0x680] ss:$16 sps:$4 sm:$0xff]   ;;  %v10175_v23 = vld [vmem:[%s11623_s1 + $0x688] ss:$16 sps:$4 sm:$0xff]  }
 0x31d   : > { %7294 = vmatpush1.bf16.msra.mxu0 %v10082_v24  ;;  %8062 = vmatpush1.bf16.msra.mxu1 %v10085_v25  ;;  %v10176_v24 = vld [vmem:[%s11623_s1 + $0x6a4] ss:$16 sps:$4 sm:$0xff]   ;;  %v10179_v25 = vld [vmem:[%s11623_s1 + $0x6ac] ss:$16 sps:$4 sm:$0xff]  }
 0x31e   : > { %7296 = vmatprep.subr.bf16.mxu0 %v10086_v26  ;;  %8064 = vmatprep.subr.bf16.mxu1 %v10089_v27  ;;  %v10178_v26 = vld [vmem:[%s11623_s1 + $0x6a0] ss:$16 sps:$4 sm:$0xff]   ;;  %v10181_v27 = vld [vmem:[%s11623_s1 + $0x6a8] ss:$16 sps:$4 sm:$0xff]  }
 0x321   : > { %7298 = vmatpush1.bf16.msra.mxu0 %v10088_v28  ;;  %8066 = vmatpush1.bf16.msra.mxu1 %v10091_v29  ;;  %v10182_v28 = vld [vmem:[%s11623_s1 + $0x6c4] ss:$16 sps:$4 sm:$0xff]   ;;  %v10185_v29 = vld [vmem:[%s11623_s1 + $0x6cc] ss:$16 sps:$4 sm:$0xff]  }
 0x322   : > { %7300 = vmatprep.subr.bf16.mxu0 %v10092_v30  ;;  %8068 = vmatprep.subr.bf16.mxu1 %v10095_v31  ;;  %v10184_v30 = vld [vmem:[%s11623_s1 + $0x6c0] ss:$16 sps:$4 sm:$0xff]   ;;  %v10187_v31 = vld [vmem:[%s11623_s1 + $0x6c8] ss:$16 sps:$4 sm:$0xff]  }
 0x325   : > { %7302 = vmatpush1.bf16.msra.mxu0 %v10094_v32  ;;  %8070 = vmatpush1.bf16.msra.mxu1 %v10097_v33  ;;  %v10188_v32 = vld [vmem:[%s11623_s1 + $0x6e4] ss:$16 sps:$4 sm:$0xff]   ;;  %v10191_v33 = vld [vmem:[%s11623_s1 + $0x6ec] ss:$16 sps:$4 sm:$0xff]  }
 0x326   : > { %7304 = vmatprep.subr.bf16.mxu0 %v10098_v38  ;;  %8072 = vmatprep.subr.bf16.mxu1 %v10101_v39  ;;  %v10190_v38 = vld [vmem:[%s11623_s1 + $0x6e0] ss:$16 sps:$4 sm:$0xff]   ;;  %v10193_v39 = vld [vmem:[%s11623_s1 + $0x6e8] ss:$16 sps:$4 sm:$0xff]  }
 0x329   : > { %7306 = vmatpush1.bf16.msra.mxu0 %v10100_v40  ;;  %8074 = vmatpush1.bf16.msra.mxu1 %v10103_v41  ;;  %v10194_v40 = vld [vmem:[%s11623_s1 + $0x704] ss:$16 sps:$4 sm:$0xff]   ;;  %v10197_v41 = vld [vmem:[%s11623_s1 + $0x70c] ss:$16 sps:$4 sm:$0xff]  }
 0x32a   : > { %7308 = vmatprep.subr.bf16.mxu0 %v10104_v42  ;;  %8076 = vmatprep.subr.bf16.mxu1 %v10107_v43  ;;  %v10196_v42 = vld [vmem:[%s11623_s1 + $0x700] ss:$16 sps:$4 sm:$0xff]   ;;  %v10199_v43 = vld [vmem:[%s11623_s1 + $0x708] ss:$16 sps:$4 sm:$0xff]  }
 0x32d   : > { %7310 = vmatpush1.bf16.msra.mxu0 %v10106_v44  ;;  %8078 = vmatpush1.bf16.msra.mxu1 %v10109_v45  ;;  %v10200_v44 = vld [vmem:[%s11623_s1 + $0x724] ss:$16 sps:$4 sm:$0xff]   ;;  %v10203_v45 = vld [vmem:[%s11623_s1 + $0x72c] ss:$16 sps:$4 sm:$0xff]  }
 0x32e   : > { %7312 = vmatprep.subr.bf16.mxu0 %v10110_v46  ;;  %8080 = vmatprep.subr.bf16.mxu1 %v10113_v47  ;;  %v10202_v46 = vld [vmem:[%s11623_s1 + $0x720] ss:$16 sps:$4 sm:$0xff]   ;;  %v10205_v47 = vld [vmem:[%s11623_s1 + $0x728] ss:$16 sps:$4 sm:$0xff]  }
 0x331   : > { %7314 = vmatpush1.bf16.msra.mxu0 %v10112_v8  ;;  %8082 = vmatpush1.bf16.msra.mxu1 %v10115_v14  ;;  %v10206_v8 = vld [vmem:[%s11623_s1 + $0x744] ss:$16 sps:$4 sm:$0xff]   ;;  %v10209_v14 = vld [vmem:[%s11623_s1 + $0x74c] ss:$16 sps:$4 sm:$0xff]  }
 0x332   : > { %7316 = vmatprep.subr.bf16.mxu0 %v10116_v16  ;;  %8084 = vmatprep.subr.bf16.mxu1 %v10119_v17  ;;  %v10208_v16 = vld [vmem:[%s11623_s1 + $0x740] ss:$16 sps:$4 sm:$0xff]   ;;  %v10211_v17 = vld [vmem:[%s11623_s1 + $0x748] ss:$16 sps:$4 sm:$0xff]  }
 0x335   : > { %7318 = vmatpush1.bf16.msra.mxu0 %v10118_v18  ;;  %8086 = vmatpush1.bf16.msra.mxu1 %v10121_v48  ;;  %v10212_v18 = vld [vmem:[%s11623_s1 + $0x764] ss:$16 sps:$4 sm:$0xff]   ;;  %v10215_v48 = vld [vmem:[%s11623_s1 + $0x76c] ss:$16 sps:$4 sm:$0xff]  }
 0x336   : > { %7320 = vmatprep.subr.bf16.mxu0 %v10122_v49  ;;  %8088 = vmatprep.subr.bf16.mxu1 %v10125_v50  ;;  %v10214_v49 = vld [vmem:[%s11623_s1 + $0x760] ss:$16 sps:$4 sm:$0xff]   ;;  %v10217_v50 = vld [vmem:[%s11623_s1 + $0x768] ss:$16 sps:$4 sm:$0xff]  }
 0x339   : > { %7322 = vmatpush1.bf16.msra.mxu0 %v10124_v51  ;;  %8090 = vmatpush1.bf16.msra.mxu1 %v10127_v52  ;;  %v10218_v51 = vld [vmem:[%s11623_s1 + $0x784] ss:$16 sps:$4 sm:$0xff]   ;;  %v10221_v52 = vld [vmem:[%s11623_s1 + $0x78c] ss:$16 sps:$4 sm:$0xff]  }
 0x33a   : > { %7324 = vmatprep.subr.bf16.mxu0 %v10128_v53  ;;  %8092 = vmatprep.subr.bf16.mxu1 %v10131_v54  ;;  %v10220_v53 = vld [vmem:[%s11623_s1 + $0x780] ss:$16 sps:$4 sm:$0xff]   ;;  %v10223_v54 = vld [vmem:[%s11623_s1 + $0x788] ss:$16 sps:$4 sm:$0xff]  }
 0x33d   : > { %7326 = vmatpush1.bf16.msra.mxu0 %v10130_v55  ;;  %8094 = vmatpush1.bf16.msra.mxu1 %v10133_v56  ;;  %v10224_v55 = vld [vmem:[%s11623_s1 + $0x7a4] ss:$16 sps:$4 sm:$0xff]   ;;  %v10227_v56 = vld [vmem:[%s11623_s1 + $0x7ac] ss:$16 sps:$4 sm:$0xff]  }
 0x33e   : > { %7328 = vmatprep.subr.bf16.mxu0 %v10134_v57  ;;  %8096 = vmatprep.subr.bf16.mxu1 %v10137_v58  ;;  %v10226_v57 = vld [vmem:[%s11623_s1 + $0x7a0] ss:$16 sps:$4 sm:$0xff]   ;;  %v10229_v58 = vld [vmem:[%s11623_s1 + $0x7a8] ss:$16 sps:$4 sm:$0xff]  }
 0x341   : > { %7330 = vmatpush1.bf16.msra.mxu0 %v10136_v59  ;;  %8098 = vmatpush1.bf16.msra.mxu1 %v10139_v34  ;;  %v10230_v59 = vld [vmem:[%s11623_s1 + $0x7c4] ss:$16 sps:$4 sm:$0xff]   ;;  %v10233_v34 = vld [vmem:[%s11623_s1 + $0x7cc] ss:$16 sps:$4 sm:$0xff]  }
 0x342   : > { %7332 = vmatprep.subr.bf16.mxu0 %v10140_v35  ;;  %8100 = vmatprep.subr.bf16.mxu1 %v10143_v36  ;;  %v10232_v35 = vld [vmem:[%s11623_s1 + $0x7c0] ss:$16 sps:$4 sm:$0xff]   ;;  %v10235_v36 = vld [vmem:[%s11623_s1 + $0x7c8] ss:$16 sps:$4 sm:$0xff]  }
 0x345   : > { %7334 = vmatpush1.bf16.msra.mxu0 %v10142_v37  ;;  %8102 = vmatpush1.bf16.msra.mxu1 %v10145_v60  ;;  %v10236_v37 = vld [vmem:[%s11623_s1 + $0x7e4] ss:$16 sps:$4 sm:$0xff]   ;;  %v10239_v60 = vld [vmem:[%s11623_s1 + $0x7ec] ss:$16 sps:$4 sm:$0xff]  }
 0x346   : > { %7336 = vmatprep.subr.bf16.mxu0 %v10146_v61  ;;  %8104 = vmatprep.subr.bf16.mxu1 %v10149_v62  ;;  %v10238_v61 = vld [vmem:[%s11623_s1 + $0x7e0] ss:$16 sps:$4 sm:$0xff]   ;;  %v10241_v62 = vld [vmem:[%s11623_s1 + $0x7e8] ss:$16 sps:$4 sm:$0xff]  }
 0x348   : > { %4587 = vmatmul.mubr.f32.vlgmr.msra.gmra.mrb[0].mxu0 %v2034_v1  ;;  %5439 = vmatmul.mubr.f32.vlgmr.msra.gmra.mrb[0].mxu1 %v2034_v1  ;;  %v10244_v1 = vld [vmem:[%s11623_s1 + $0x800] ss:$16 sps:$4 sm:$0xff]  }
 0x349   : > { %7338 = vmatpush1.bf16.msra.mxu0 %v10148_v63  ;;  %8106 = vmatpush1.bf16.msra.mxu1 %v10151_v0  ;;  %v10242_v63 = vld [vmem:[%s11623_s1 + $0x804] ss:$16 sps:$4 sm:$0xff]   ;;  %v10245_v0 = vld [vmem:[%s11623_s1 + $0x80c] ss:$16 sps:$4 sm:$0xff]  }
 0x34a   : > { %7340 = vmatprep.subr.bf16.mxu0 %v10152_v2  ;;  %8108 = vmatprep.subr.bf16.mxu1 %v10155_v3  ;;  %v10247_v2 = vld [vmem:[%s11623_s1 + $0x808] ss:$16 sps:$4 sm:$0xff]   ;;  %v2036_v3 = vld [vmem:[#allocation2 + $0x30] sm:$0xff] }
 0x34b   : > { %4657 = vmatprep.mubr.f32.mxu0 %v2037_v6  ;;  %5509 = vmatprep.mubr.f32.mxu1 %v2037_v6  ;;  %v10250_v6 = vld [vmem:[%s11623_s1 + $0x820] ss:$16 sps:$4 sm:$0xff]  }
 0x34d   : > { %7342 = vmatpush1.bf16.msra.mxu0 %v10154_v4  ;;  %8110 = vmatpush1.bf16.msra.mxu1 %v10157_v5  ;;  %v10248_v4 = vld [vmem:[%s11623_s1 + $0x824] ss:$16 sps:$4 sm:$0xff]   ;;  %v10251_v5 = vld [vmem:[%s11623_s1 + $0x82c] ss:$16 sps:$4 sm:$0xff]  }
 0x34e   : > { %7344 = vmatprep.subr.bf16.mxu0 %v10158_v7  ;;  %8112 = vmatprep.subr.bf16.mxu1 %v10161_v9  ;;  %v2039_v7 = vld [vmem:[#allocation2 + $0x48] sm:$0xff] }
 0x34f   : > { %v10253_v9 = vld [vmem:[%s11623_s1 + $0x828] ss:$16 sps:$4 sm:$0xff]  }
 0x351   : > { %7346 = vmatpush1.bf16.msra.mxu0 %v10160_v10  ;;  %8114 = vmatpush1.bf16.msra.mxu1 %v10163_v11  ;;  %v10254_v10 = vld [vmem:[%s11623_s1 + $0x844] ss:$16 sps:$4 sm:$0xff]   ;;  %v10257_v11 = vld [vmem:[%s11623_s1 + $0x84c] ss:$16 sps:$4 sm:$0xff]  }
 0x352   : > { %7348 = vmatprep.subr.bf16.mxu0 %v10164_v13  ;;  %8116 = vmatprep.subr.bf16.mxu1 %v10167_v15  ;;  %v10256_v13 = vld [vmem:[%s11623_s1 + $0x840] ss:$16 sps:$4 sm:$0xff]   ;;  %v10259_v15 = vld [vmem:[%s11623_s1 + $0x848] ss:$16 sps:$4 sm:$0xff]  }
 0x355   : > { %7350 = vmatpush1.bf16.msra.mxu0 %v10166_v19  ;;  %8118 = vmatpush1.bf16.msra.mxu1 %v10169_v20  ;;  %v10260_v19 = vld [vmem:[%s11623_s1 + $0x864] ss:$16 sps:$4 sm:$0xff]   ;;  %v10263_v20 = vld [vmem:[%s11623_s1 + $0x86c] ss:$16 sps:$4 sm:$0xff]  }
 0x356   : > { %7352 = vmatprep.subr.bf16.mxu0 %v10170_v21  ;;  %8120 = vmatprep.subr.bf16.mxu1 %v10173_v22  ;;  %v10262_v21 = vld [vmem:[%s11623_s1 + $0x860] ss:$16 sps:$4 sm:$0xff]   ;;  %v10265_v22 = vld [vmem:[%s11623_s1 + $0x868] ss:$16 sps:$4 sm:$0xff]  }
 0x359   : > { %7354 = vmatpush1.bf16.msra.mxu0 %v10172_v12  ;;  %8122 = vmatpush1.bf16.msra.mxu1 %v10175_v23  ;;  %v10266_v12 = vld [vmem:[%s11623_s1 + $0x884] ss:$16 sps:$4 sm:$0xff]   ;;  %v10269_v23 = vld [vmem:[%s11623_s1 + $0x88c] ss:$16 sps:$4 sm:$0xff]  }
 0x35a   : > { %7356 = vmatprep.subr.bf16.mxu0 %v10176_v24  ;;  %8124 = vmatprep.subr.bf16.mxu1 %v10179_v25  ;;  %v10268_v24 = vld [vmem:[%s11623_s1 + $0x880] ss:$16 sps:$4 sm:$0xff]   ;;  %v10271_v25 = vld [vmem:[%s11623_s1 + $0x888] ss:$16 sps:$4 sm:$0xff]  }
 0x35d   : > { %7358 = vmatpush1.bf16.msra.mxu0 %v10178_v26  ;;  %8126 = vmatpush1.bf16.msra.mxu1 %v10181_v27  ;;  %v10272_v26 = vld [vmem:[%s11623_s1 + $0x8a4] ss:$16 sps:$4 sm:$0xff]   ;;  %v10275_v27 = vld [vmem:[%s11623_s1 + $0x8ac] ss:$16 sps:$4 sm:$0xff]  }
 0x35e   : > { %7360 = vmatprep.subr.bf16.mxu0 %v10182_v28  ;;  %8128 = vmatprep.subr.bf16.mxu1 %v10185_v29  ;;  %v10274_v28 = vld [vmem:[%s11623_s1 + $0x8a0] ss:$16 sps:$4 sm:$0xff]   ;;  %v10277_v29 = vld [vmem:[%s11623_s1 + $0x8a8] ss:$16 sps:$4 sm:$0xff]  }
 0x361   : > { %7362 = vmatpush1.bf16.msra.mxu0 %v10184_v30  ;;  %8130 = vmatpush1.bf16.msra.mxu1 %v10187_v31  ;;  %v10278_v30 = vld [vmem:[%s11623_s1 + $0x8c4] ss:$16 sps:$4 sm:$0xff]   ;;  %v10281_v31 = vld [vmem:[%s11623_s1 + $0x8cc] ss:$16 sps:$4 sm:$0xff]  }
 0x362   : > { %7364 = vmatprep.subr.bf16.mxu0 %v10188_v32  ;;  %8132 = vmatprep.subr.bf16.mxu1 %v10191_v33  ;;  %v10280_v32 = vld [vmem:[%s11623_s1 + $0x8c0] ss:$16 sps:$4 sm:$0xff]   ;;  %v10283_v33 = vld [vmem:[%s11623_s1 + $0x8c8] ss:$16 sps:$4 sm:$0xff]  }
 0x365   : > { %7366 = vmatpush1.bf16.msra.mxu0 %v10190_v38  ;;  %8134 = vmatpush1.bf16.msra.mxu1 %v10193_v39  ;;  %v10284_v38 = vld [vmem:[%s11623_s1 + $0x8e4] ss:$16 sps:$4 sm:$0xff]   ;;  %v10287_v39 = vld [vmem:[%s11623_s1 + $0x8ec] ss:$16 sps:$4 sm:$0xff]  }
 0x366   : > { %7368 = vmatprep.subr.bf16.mxu0 %v10194_v40  ;;  %8136 = vmatprep.subr.bf16.mxu1 %v10197_v41  ;;  %v10286_v40 = vld [vmem:[%s11623_s1 + $0x8e0] ss:$16 sps:$4 sm:$0xff]   ;;  %v10289_v41 = vld [vmem:[%s11623_s1 + $0x8e8] ss:$16 sps:$4 sm:$0xff]  }
 0x369   : > { %7370 = vmatpush1.bf16.msra.mxu0 %v10196_v42  ;;  %8138 = vmatpush1.bf16.msra.mxu1 %v10199_v43  ;;  %v10290_v42 = vld [vmem:[%s11623_s1 + $0x904] ss:$16 sps:$4 sm:$0xff]   ;;  %v10293_v43 = vld [vmem:[%s11623_s1 + $0x90c] ss:$16 sps:$4 sm:$0xff]  }
 0x36a   : > { %7372 = vmatprep.subr.bf16.mxu0 %v10200_v44  ;;  %8140 = vmatprep.subr.bf16.mxu1 %v10203_v45  ;;  %v10292_v44 = vld [vmem:[%s11623_s1 + $0x900] ss:$16 sps:$4 sm:$0xff]   ;;  %v10295_v45 = vld [vmem:[%s11623_s1 + $0x908] ss:$16 sps:$4 sm:$0xff]  }
 0x36d   : > { %7374 = vmatpush1.bf16.msra.mxu0 %v10202_v46  ;;  %8142 = vmatpush1.bf16.msra.mxu1 %v10205_v47  ;;  %v10296_v46 = vld [vmem:[%s11623_s1 + $0x924] ss:$16 sps:$4 sm:$0xff]   ;;  %v10299_v47 = vld [vmem:[%s11623_s1 + $0x92c] ss:$16 sps:$4 sm:$0xff]  }
 0x36e   : > { %7376 = vmatprep.subr.bf16.mxu0 %v10206_v8  ;;  %8144 = vmatprep.subr.bf16.mxu1 %v10209_v14  ;;  %v10298_v8 = vld [vmem:[%s11623_s1 + $0x920] ss:$16 sps:$4 sm:$0xff]   ;;  %v10301_v14 = vld [vmem:[%s11623_s1 + $0x928] ss:$16 sps:$4 sm:$0xff]  }
 0x371   : > { %7378 = vmatpush1.bf16.msra.mxu0 %v10208_v16  ;;  %8146 = vmatpush1.bf16.msra.mxu1 %v10211_v17  ;;  %v10302_v16 = vld [vmem:[%s11623_s1 + $0x944] ss:$16 sps:$4 sm:$0xff]   ;;  %v10305_v17 = vld [vmem:[%s11623_s1 + $0x94c] ss:$16 sps:$4 sm:$0xff]  }
 0x372   : > { %7380 = vmatprep.subr.bf16.mxu0 %v10212_v18  ;;  %8148 = vmatprep.subr.bf16.mxu1 %v10215_v48  ;;  %v10304_v18 = vld [vmem:[%s11623_s1 + $0x940] ss:$16 sps:$4 sm:$0xff]   ;;  %v10307_v48 = vld [vmem:[%s11623_s1 + $0x948] ss:$16 sps:$4 sm:$0xff]  }
 0x375   : > { %7382 = vmatpush1.bf16.msra.mxu0 %v10214_v49  ;;  %8150 = vmatpush1.bf16.msra.mxu1 %v10217_v50  ;;  %v10308_v49 = vld [vmem:[%s11623_s1 + $0x964] ss:$16 sps:$4 sm:$0xff]   ;;  %v10311_v50 = vld [vmem:[%s11623_s1 + $0x96c] ss:$16 sps:$4 sm:$0xff]  }
 0x376   : > { %7384 = vmatprep.subr.bf16.mxu0 %v10218_v51  ;;  %8152 = vmatprep.subr.bf16.mxu1 %v10221_v52  ;;  %v10310_v51 = vld [vmem:[%s11623_s1 + $0x960] ss:$16 sps:$4 sm:$0xff]   ;;  %v10313_v52 = vld [vmem:[%s11623_s1 + $0x968] ss:$16 sps:$4 sm:$0xff]  }
 0x379   : > { %7386 = vmatpush1.bf16.msra.mxu0 %v10220_v53  ;;  %8154 = vmatpush1.bf16.msra.mxu1 %v10223_v54  ;;  %v10314_v53 = vld [vmem:[%s11623_s1 + $0x984] ss:$16 sps:$4 sm:$0xff]   ;;  %v10317_v54 = vld [vmem:[%s11623_s1 + $0x98c] ss:$16 sps:$4 sm:$0xff]  }
 0x37a   : > { %7388 = vmatprep.subr.bf16.mxu0 %v10224_v55  ;;  %8156 = vmatprep.subr.bf16.mxu1 %v10227_v56  ;;  %v10316_v55 = vld [vmem:[%s11623_s1 + $0x980] ss:$16 sps:$4 sm:$0xff]   ;;  %v10319_v56 = vld [vmem:[%s11623_s1 + $0x988] ss:$16 sps:$4 sm:$0xff]  }
 0x37d   : > { %7390 = vmatpush1.bf16.msra.mxu0 %v10226_v57  ;;  %8158 = vmatpush1.bf16.msra.mxu1 %v10229_v58  ;;  %v10320_v57 = vld [vmem:[%s11623_s1 + $0x9a4] ss:$16 sps:$4 sm:$0xff]   ;;  %v10323_v58 = vld [vmem:[%s11623_s1 + $0x9ac] ss:$16 sps:$4 sm:$0xff]  }
 0x37e   : > { %7392 = vmatprep.subr.bf16.mxu0 %v10230_v59  ;;  %8160 = vmatprep.subr.bf16.mxu1 %v10233_v34  ;;  %v10322_v59 = vld [vmem:[%s11623_s1 + $0x9a0] ss:$16 sps:$4 sm:$0xff]   ;;  %v10325_v34 = vld [vmem:[%s11623_s1 + $0x9a8] ss:$16 sps:$4 sm:$0xff]  }
 0x381   : > { %7394 = vmatpush1.bf16.msra.mxu0 %v10232_v35  ;;  %8162 = vmatpush1.bf16.msra.mxu1 %v10235_v36  ;;  %v10326_v35 = vld [vmem:[%s11623_s1 + $0x9c4] ss:$16 sps:$4 sm:$0xff]   ;;  %v10329_v36 = vld [vmem:[%s11623_s1 + $0x9cc] ss:$16 sps:$4 sm:$0xff]  }
 0x382   : > { %7396 = vmatprep.subr.bf16.mxu0 %v10236_v37  ;;  %8164 = vmatprep.subr.bf16.mxu1 %v10239_v60  ;;  %v10328_v37 = vld [vmem:[%s11623_s1 + $0x9c0] ss:$16 sps:$4 sm:$0xff]   ;;  %v10331_v60 = vld [vmem:[%s11623_s1 + $0x9c8] ss:$16 sps:$4 sm:$0xff]  }
 0x385   : > { %7398 = vmatpush1.bf16.msra.mxu0 %v10238_v61  ;;  %8166 = vmatpush1.bf16.msra.mxu1 %v10241_v62  ;;  %v10332_v61 = vld [vmem:[%s11623_s1 + $0x9e4] ss:$16 sps:$4 sm:$0xff]   ;;  %v10335_v62 = vld [vmem:[%s11623_s1 + $0x9ec] ss:$16 sps:$4 sm:$0xff]  }
 0x386   : > { %7400 = vmatprep.subr.bf16.mxu0 %v10242_v63  ;;  %8168 = vmatprep.subr.bf16.mxu1 %v10245_v0  ;;  %v10334_v63 = vld [vmem:[%s11623_s1 + $0x9e0] ss:$16 sps:$4 sm:$0xff]   ;;  %v10337_v0 = vld [vmem:[%s11623_s1 + $0x9e8] ss:$16 sps:$4 sm:$0xff]  }
 0x388   : > { %4658 = vmatmul.mubr.f32.vlgmr.msra.gmra.mrb[0].mxu0 %v2036_v3  ;;  %5510 = vmatmul.mubr.f32.vlgmr.msra.gmra.mrb[0].mxu1 %v2036_v3  ;;  %v10340_v3 = vld [vmem:[%s11623_s1 + $0xa00] ss:$16 sps:$4 sm:$0xff]  }
 0x389   : > { %7402 = vmatpush1.bf16.msra.mxu0 %v10244_v1  ;;  %8170 = vmatpush1.bf16.msra.mxu1 %v10247_v2  ;;  %v10338_v1 = vld [vmem:[%s11623_s1 + $0xa04] ss:$16 sps:$4 sm:$0xff]   ;;  %v10341_v2 = vld [vmem:[%s11623_s1 + $0xa0c] ss:$16 sps:$4 sm:$0xff]  }
 0x38a   : > { %7404 = vmatprep.subr.bf16.mxu0 %v10248_v4  ;;  %8172 = vmatprep.subr.bf16.mxu1 %v10251_v5  ;;  %v10343_v4 = vld [vmem:[%s11623_s1 + $0xa08] ss:$16 sps:$4 sm:$0xff]   ;;  %v2038_v5 = vld [vmem:[#allocation2 + $0x40] sm:$0xff] }
 0x38b   : > { %4728 = vmatprep.mubr.f32.mxu0 %v2039_v7  ;;  %5580 = vmatprep.mubr.f32.mxu1 %v2039_v7  ;;  %v10347_v7 = vld [vmem:[%s11623_s1 + $0xa2c] ss:$16 sps:$4 sm:$0xff]  }
 0x38d   : > { %7406 = vmatpush1.bf16.msra.mxu0 %v10250_v6  ;;  %8174 = vmatpush1.bf16.msra.mxu1 %v10253_v9  ;;  %v10344_v6 = vld [vmem:[%s11623_s1 + $0xa24] ss:$16 sps:$4 sm:$0xff]   ;;  %v10346_v9 = vld [vmem:[%s11623_s1 + $0xa20] ss:$16 sps:$4 sm:$0xff]  }
 0x38e   : > { %7408 = vmatprep.subr.bf16.mxu0 %v10254_v10  ;;  %8176 = vmatprep.subr.bf16.mxu1 %v10257_v11  ;;  %v2041_v10 = vld [vmem:[#allocation2 + $0x58] sm:$0xff] }
 0x38f   : > { %v10349_v11 = vld [vmem:[%s11623_s1 + $0xa28] ss:$16 sps:$4 sm:$0xff]  }
 0x391   : > { %7410 = vmatpush1.bf16.msra.mxu0 %v10256_v13  ;;  %8178 = vmatpush1.bf16.msra.mxu1 %v10259_v15  ;;  %v10350_v13 = vld [vmem:[%s11623_s1 + $0xa44] ss:$16 sps:$4 sm:$0xff]   ;;  %v10353_v15 = vld [vmem:[%s11623_s1 + $0xa4c] ss:$16 sps:$4 sm:$0xff]  }
 0x392   : > { %7412 = vmatprep.subr.bf16.mxu0 %v10260_v19  ;;  %8180 = vmatprep.subr.bf16.mxu1 %v10263_v20  ;;  %v10352_v19 = vld [vmem:[%s11623_s1 + $0xa40] ss:$16 sps:$4 sm:$0xff]   ;;  %v10355_v20 = vld [vmem:[%s11623_s1 + $0xa48] ss:$16 sps:$4 sm:$0xff]  }
 0x395   : > { %7414 = vmatpush1.bf16.msra.mxu0 %v10262_v21  ;;  %8182 = vmatpush1.bf16.msra.mxu1 %v10265_v22  ;;  %v10356_v21 = vld [vmem:[%s11623_s1 + $0xa64] ss:$16 sps:$4 sm:$0xff]   ;;  %v10359_v22 = vld [vmem:[%s11623_s1 + $0xa6c] ss:$16 sps:$4 sm:$0xff]  }
 0x396   : > { %7416 = vmatprep.subr.bf16.mxu0 %v10266_v12  ;;  %8184 = vmatprep.subr.bf16.mxu1 %v10269_v23  ;;  %v10358_v12 = vld [vmem:[%s11623_s1 + $0xa60] ss:$16 sps:$4 sm:$0xff]   ;;  %v10361_v23 = vld [vmem:[%s11623_s1 + $0xa68] ss:$16 sps:$4 sm:$0xff]  }
 0x399   : > { %7418 = vmatpush1.bf16.msra.mxu0 %v10268_v24  ;;  %8186 = vmatpush1.bf16.msra.mxu1 %v10271_v25  ;;  %v10362_v24 = vld [vmem:[%s11623_s1 + $0xa84] ss:$16 sps:$4 sm:$0xff]   ;;  %v10365_v25 = vld [vmem:[%s11623_s1 + $0xa8c] ss:$16 sps:$4 sm:$0xff]  }
 0x39a   : > { %7420 = vmatprep.subr.bf16.mxu0 %v10272_v26  ;;  %8188 = vmatprep.subr.bf16.mxu1 %v10275_v27  ;;  %v10364_v26 = vld [vmem:[%s11623_s1 + $0xa80] ss:$16 sps:$4 sm:$0xff]   ;;  %v10367_v27 = vld [vmem:[%s11623_s1 + $0xa88] ss:$16 sps:$4 sm:$0xff]  }
 0x39d   : > { %7422 = vmatpush1.bf16.msra.mxu0 %v10274_v28  ;;  %8190 = vmatpush1.bf16.msra.mxu1 %v10277_v29  ;;  %v10368_v28 = vld [vmem:[%s11623_s1 + $0xaa4] ss:$16 sps:$4 sm:$0xff]   ;;  %v10371_v29 = vld [vmem:[%s11623_s1 + $0xaac] ss:$16 sps:$4 sm:$0xff]  }
 0x39e   : > { %7424 = vmatprep.subr.bf16.mxu0 %v10278_v30  ;;  %8192 = vmatprep.subr.bf16.mxu1 %v10281_v31  ;;  %v10370_v30 = vld [vmem:[%s11623_s1 + $0xaa0] ss:$16 sps:$4 sm:$0xff]   ;;  %v10373_v31 = vld [vmem:[%s11623_s1 + $0xaa8] ss:$16 sps:$4 sm:$0xff]  }
 0x3a1   : > { %7426 = vmatpush1.bf16.msra.mxu0 %v10280_v32  ;;  %8194 = vmatpush1.bf16.msra.mxu1 %v10283_v33  ;;  %v10374_v32 = vld [vmem:[%s11623_s1 + $0xac4] ss:$16 sps:$4 sm:$0xff]   ;;  %v10377_v33 = vld [vmem:[%s11623_s1 + $0xacc] ss:$16 sps:$4 sm:$0xff]  }
 0x3a2   : > { %7428 = vmatprep.subr.bf16.mxu0 %v10284_v38  ;;  %8196 = vmatprep.subr.bf16.mxu1 %v10287_v39  ;;  %v10376_v38 = vld [vmem:[%s11623_s1 + $0xac0] ss:$16 sps:$4 sm:$0xff]   ;;  %v10379_v39 = vld [vmem:[%s11623_s1 + $0xac8] ss:$16 sps:$4 sm:$0xff]  }
 0x3a5   : > { %7430 = vmatpush1.bf16.msra.mxu0 %v10286_v40  ;;  %8198 = vmatpush1.bf16.msra.mxu1 %v10289_v41  ;;  %v10380_v40 = vld [vmem:[%s11623_s1 + $0xae4] ss:$16 sps:$4 sm:$0xff]   ;;  %v10383_v41 = vld [vmem:[%s11623_s1 + $0xaec] ss:$16 sps:$4 sm:$0xff]  }
 0x3a6   : > { %7432 = vmatprep.subr.bf16.mxu0 %v10290_v42  ;;  %8200 = vmatprep.subr.bf16.mxu1 %v10293_v43  ;;  %v10382_v42 = vld [vmem:[%s11623_s1 + $0xae0] ss:$16 sps:$4 sm:$0xff]   ;;  %v10385_v43 = vld [vmem:[%s11623_s1 + $0xae8] ss:$16 sps:$4 sm:$0xff]  }
 0x3a9   : > { %7434 = vmatpush1.bf16.msra.mxu0 %v10292_v44  ;;  %8202 = vmatpush1.bf16.msra.mxu1 %v10295_v45  ;;  %v10386_v44 = vld [vmem:[%s11623_s1 + $0xb04] ss:$16 sps:$4 sm:$0xff]   ;;  %v10389_v45 = vld [vmem:[%s11623_s1 + $0xb0c] ss:$16 sps:$4 sm:$0xff]  }
 0x3aa   : > { %7436 = vmatprep.subr.bf16.mxu0 %v10296_v46  ;;  %8204 = vmatprep.subr.bf16.mxu1 %v10299_v47  ;;  %v10388_v46 = vld [vmem:[%s11623_s1 + $0xb00] ss:$16 sps:$4 sm:$0xff]   ;;  %v10391_v47 = vld [vmem:[%s11623_s1 + $0xb08] ss:$16 sps:$4 sm:$0xff]  }
 0x3ad   : > { %7438 = vmatpush1.bf16.msra.mxu0 %v10298_v8  ;;  %8206 = vmatpush1.bf16.msra.mxu1 %v10301_v14  ;;  %v10392_v8 = vld [vmem:[%s11623_s1 + $0xb24] ss:$16 sps:$4 sm:$0xff]   ;;  %v10395_v14 = vld [vmem:[%s11623_s1 + $0xb2c] ss:$16 sps:$4 sm:$0xff]  }
 0x3ae   : > { %7440 = vmatprep.subr.bf16.mxu0 %v10302_v16  ;;  %8208 = vmatprep.subr.bf16.mxu1 %v10305_v17  ;;  %v10394_v16 = vld [vmem:[%s11623_s1 + $0xb20] ss:$16 sps:$4 sm:$0xff]   ;;  %v10397_v17 = vld [vmem:[%s11623_s1 + $0xb28] ss:$16 sps:$4 sm:$0xff]  }
 0x3b1   : > { %7442 = vmatpush1.bf16.msra.mxu0 %v10304_v18  ;;  %8210 = vmatpush1.bf16.msra.mxu1 %v10307_v48  ;;  %v10398_v18 = vld [vmem:[%s11623_s1 + $0xb44] ss:$16 sps:$4 sm:$0xff]   ;;  %v10401_v48 = vld [vmem:[%s11623_s1 + $0xb4c] ss:$16 sps:$4 sm:$0xff]  }
 0x3b2   : > { %7444 = vmatprep.subr.bf16.mxu0 %v10308_v49  ;;  %8212 = vmatprep.subr.bf16.mxu1 %v10311_v50  ;;  %v10400_v49 = vld [vmem:[%s11623_s1 + $0xb40] ss:$16 sps:$4 sm:$0xff]   ;;  %v10403_v50 = vld [vmem:[%s11623_s1 + $0xb48] ss:$16 sps:$4 sm:$0xff]  }
 0x3b5   : > { %7446 = vmatpush1.bf16.msra.mxu0 %v10310_v51  ;;  %8214 = vmatpush1.bf16.msra.mxu1 %v10313_v52  ;;  %v10404_v51 = vld [vmem:[%s11623_s1 + $0xb64] ss:$16 sps:$4 sm:$0xff]   ;;  %v10407_v52 = vld [vmem:[%s11623_s1 + $0xb6c] ss:$16 sps:$4 sm:$0xff]  }
 0x3b6   : > { %7448 = vmatprep.subr.bf16.mxu0 %v10314_v53  ;;  %8216 = vmatprep.subr.bf16.mxu1 %v10317_v54  ;;  %v10406_v53 = vld [vmem:[%s11623_s1 + $0xb60] ss:$16 sps:$4 sm:$0xff]   ;;  %v10409_v54 = vld [vmem:[%s11623_s1 + $0xb68] ss:$16 sps:$4 sm:$0xff]  }
 0x3b9   : > { %7450 = vmatpush1.bf16.msra.mxu0 %v10316_v55  ;;  %8218 = vmatpush1.bf16.msra.mxu1 %v10319_v56  ;;  %v10410_v55 = vld [vmem:[%s11623_s1 + $0xb84] ss:$16 sps:$4 sm:$0xff]   ;;  %v10413_v56 = vld [vmem:[%s11623_s1 + $0xb8c] ss:$16 sps:$4 sm:$0xff]  }
 0x3ba   : > { %7452 = vmatprep.subr.bf16.mxu0 %v10320_v57  ;;  %8220 = vmatprep.subr.bf16.mxu1 %v10323_v58  ;;  %v10412_v57 = vld [vmem:[%s11623_s1 + $0xb80] ss:$16 sps:$4 sm:$0xff]   ;;  %v10415_v58 = vld [vmem:[%s11623_s1 + $0xb88] ss:$16 sps:$4 sm:$0xff]  }
 0x3bd   : > { %7454 = vmatpush1.bf16.msra.mxu0 %v10322_v59  ;;  %8222 = vmatpush1.bf16.msra.mxu1 %v10325_v34  ;;  %v10416_v59 = vld [vmem:[%s11623_s1 + $0xba4] ss:$16 sps:$4 sm:$0xff]   ;;  %v10419_v34 = vld [vmem:[%s11623_s1 + $0xbac] ss:$16 sps:$4 sm:$0xff]  }
 0x3be   : > { %7456 = vmatprep.subr.bf16.mxu0 %v10326_v35  ;;  %8224 = vmatprep.subr.bf16.mxu1 %v10329_v36  ;;  %v10418_v35 = vld [vmem:[%s11623_s1 + $0xba0] ss:$16 sps:$4 sm:$0xff]   ;;  %v10421_v36 = vld [vmem:[%s11623_s1 + $0xba8] ss:$16 sps:$4 sm:$0xff]  }
 0x3c1   : > { %7458 = vmatpush1.bf16.msra.mxu0 %v10328_v37  ;;  %8226 = vmatpush1.bf16.msra.mxu1 %v10331_v60  ;;  %v10422_v37 = vld [vmem:[%s11623_s1 + $0xbc4] ss:$16 sps:$4 sm:$0xff]   ;;  %v10425_v60 = vld [vmem:[%s11623_s1 + $0xbcc] ss:$16 sps:$4 sm:$0xff]  }
 0x3c2   : > { %7460 = vmatprep.subr.bf16.mxu0 %v10332_v61  ;;  %8228 = vmatprep.subr.bf16.mxu1 %v10335_v62  ;;  %v10424_v61 = vld [vmem:[%s11623_s1 + $0xbc0] ss:$16 sps:$4 sm:$0xff]   ;;  %v10427_v62 = vld [vmem:[%s11623_s1 + $0xbc8] ss:$16 sps:$4 sm:$0xff]  }
 0x3c5   : > { %7462 = vmatpush1.bf16.msra.mxu0 %v10334_v63  ;;  %8230 = vmatpush1.bf16.msra.mxu1 %v10337_v0  ;;  %v10428_v63 = vld [vmem:[%s11623_s1 + $0xbe4] ss:$16 sps:$4 sm:$0xff]   ;;  %v10431_v0 = vld [vmem:[%s11623_s1 + $0xbec] ss:$16 sps:$4 sm:$0xff]  }
 0x3c6   : > { %7464 = vmatprep.subr.bf16.mxu0 %v10338_v1  ;;  %8232 = vmatprep.subr.bf16.mxu1 %v10341_v2  ;;  %v10430_v1 = vld [vmem:[%s11623_s1 + $0xbe0] ss:$16 sps:$4 sm:$0xff]   ;;  %v10433_v2 = vld [vmem:[%s11623_s1 + $0xbe8] ss:$16 sps:$4 sm:$0xff]  }
 0x3c8   : > { %4729 = vmatmul.mubr.f32.vlgmr.msra.gmra.mrb[0].mxu0 %v2038_v5  ;;  %5581 = vmatmul.mubr.f32.vlgmr.msra.gmra.mrb[0].mxu1 %v2038_v5  ;;  %v10436_v5 = vld [vmem:[%s11623_s1 + $0xc00] ss:$16 sps:$4 sm:$0xff]  }
 0x3c9   : > { %7466 = vmatpush1.bf16.msra.mxu0 %v10340_v3  ;;  %8234 = vmatpush1.bf16.msra.mxu1 %v10343_v4  ;;  %v10434_v3 = vld [vmem:[%s11623_s1 + $0xc04] ss:$16 sps:$4 sm:$0xff]   ;;  %v10437_v4 = vld [vmem:[%s11623_s1 + $0xc0c] ss:$16 sps:$4 sm:$0xff]  }
 0x3ca   : > { %7468 = vmatprep.subr.bf16.mxu0 %v10344_v6  ;;  %8236 = vmatprep.subr.bf16.mxu1 %v10347_v7  ;;  %v10439_v6 = vld [vmem:[%s11623_s1 + $0xc08] ss:$16 sps:$4 sm:$0xff]   ;;  %v2040_v7 = vld [vmem:[#allocation2 + $0x50] sm:$0xff] }
 0x3cb   : > { %4799 = vmatprep.mubr.f32.mxu0 %v2041_v10  ;;  %5651 = vmatprep.mubr.f32.mxu1 %v2041_v10  ;;  %v10443_v10 = vld [vmem:[%s11623_s1 + $0xc2c] ss:$16 sps:$4 sm:$0xff]  }
 0x3cd   : > { %7470 = vmatpush1.bf16.msra.mxu0 %v10346_v9  ;;  %8238 = vmatpush1.bf16.msra.mxu1 %v10349_v11  ;;  %v10440_v9 = vld [vmem:[%s11623_s1 + $0xc24] ss:$16 sps:$4 sm:$0xff]   ;;  %v10442_v11 = vld [vmem:[%s11623_s1 + $0xc20] ss:$16 sps:$4 sm:$0xff]  }
 0x3ce   : > { %7472 = vmatprep.subr.bf16.mxu0 %v10350_v13  ;;  %8240 = vmatprep.subr.bf16.mxu1 %v10353_v15  ;;  %v2043_v13 = vld [vmem:[#allocation2 + $0x68] sm:$0xff] }
 0x3cf   : > { %v10445_v15 = vld [vmem:[%s11623_s1 + $0xc28] ss:$16 sps:$4 sm:$0xff]  }
 0x3d1   : > { %7474 = vmatpush1.bf16.msra.mxu0 %v10352_v19  ;;  %8242 = vmatpush1.bf16.msra.mxu1 %v10355_v20  ;;  %v10446_v19 = vld [vmem:[%s11623_s1 + $0xc44] ss:$16 sps:$4 sm:$0xff]   ;;  %v10449_v20 = vld [vmem:[%s11623_s1 + $0xc4c] ss:$16 sps:$4 sm:$0xff]  }
 0x3d2   : > { %7476 = vmatprep.subr.bf16.mxu0 %v10356_v21  ;;  %8244 = vmatprep.subr.bf16.mxu1 %v10359_v22  ;;  %v10448_v21 = vld [vmem:[%s11623_s1 + $0xc40] ss:$16 sps:$4 sm:$0xff]   ;;  %v10451_v22 = vld [vmem:[%s11623_s1 + $0xc48] ss:$16 sps:$4 sm:$0xff]  }
 0x3d5   : > { %7478 = vmatpush1.bf16.msra.mxu0 %v10358_v12  ;;  %8246 = vmatpush1.bf16.msra.mxu1 %v10361_v23  ;;  %v10452_v12 = vld [vmem:[%s11623_s1 + $0xc64] ss:$16 sps:$4 sm:$0xff]   ;;  %v10455_v23 = vld [vmem:[%s11623_s1 + $0xc6c] ss:$16 sps:$4 sm:$0xff]  }
 0x3d6   : > { %7480 = vmatprep.subr.bf16.mxu0 %v10362_v24  ;;  %8248 = vmatprep.subr.bf16.mxu1 %v10365_v25  ;;  %v10454_v24 = vld [vmem:[%s11623_s1 + $0xc60] ss:$16 sps:$4 sm:$0xff]   ;;  %v10457_v25 = vld [vmem:[%s11623_s1 + $0xc68] ss:$16 sps:$4 sm:$0xff]  }
 0x3d9   : > { %7482 = vmatpush1.bf16.msra.mxu0 %v10364_v26  ;;  %8250 = vmatpush1.bf16.msra.mxu1 %v10367_v27  ;;  %v10458_v26 = vld [vmem:[%s11623_s1 + $0xc84] ss:$16 sps:$4 sm:$0xff]   ;;  %v10461_v27 = vld [vmem:[%s11623_s1 + $0xc8c] ss:$16 sps:$4 sm:$0xff]  }
 0x3da   : > { %7484 = vmatprep.subr.bf16.mxu0 %v10368_v28  ;;  %8252 = vmatprep.subr.bf16.mxu1 %v10371_v29  ;;  %v10460_v28 = vld [vmem:[%s11623_s1 + $0xc80] ss:$16 sps:$4 sm:$0xff]   ;;  %v10463_v29 = vld [vmem:[%s11623_s1 + $0xc88] ss:$16 sps:$4 sm:$0xff]  }
 0x3dd   : > { %7486 = vmatpush1.bf16.msra.mxu0 %v10370_v30  ;;  %8254 = vmatpush1.bf16.msra.mxu1 %v10373_v31  ;;  %v10464_v30 = vld [vmem:[%s11623_s1 + $0xca4] ss:$16 sps:$4 sm:$0xff]   ;;  %v10467_v31 = vld [vmem:[%s11623_s1 + $0xcac] ss:$16 sps:$4 sm:$0xff]  }
 0x3de   : > { %7488 = vmatprep.subr.bf16.mxu0 %v10374_v32  ;;  %8256 = vmatprep.subr.bf16.mxu1 %v10377_v33  ;;  %v10466_v32 = vld [vmem:[%s11623_s1 + $0xca0] ss:$16 sps:$4 sm:$0xff]   ;;  %v10469_v33 = vld [vmem:[%s11623_s1 + $0xca8] ss:$16 sps:$4 sm:$0xff]  }
 0x3e1   : > { %7490 = vmatpush1.bf16.msra.mxu0 %v10376_v38  ;;  %8258 = vmatpush1.bf16.msra.mxu1 %v10379_v39  ;;  %v10470_v38 = vld [vmem:[%s11623_s1 + $0xcc4] ss:$16 sps:$4 sm:$0xff]   ;;  %v10473_v39 = vld [vmem:[%s11623_s1 + $0xccc] ss:$16 sps:$4 sm:$0xff]  }
 0x3e2   : > { %7492 = vmatprep.subr.bf16.mxu0 %v10380_v40  ;;  %8260 = vmatprep.subr.bf16.mxu1 %v10383_v41  ;;  %v10472_v40 = vld [vmem:[%s11623_s1 + $0xcc0] ss:$16 sps:$4 sm:$0xff]   ;;  %v10475_v41 = vld [vmem:[%s11623_s1 + $0xcc8] ss:$16 sps:$4 sm:$0xff]  }
 0x3e5   : > { %7494 = vmatpush1.bf16.msra.mxu0 %v10382_v42  ;;  %8262 = vmatpush1.bf16.msra.mxu1 %v10385_v43  ;;  %v10476_v42 = vld [vmem:[%s11623_s1 + $0xce4] ss:$16 sps:$4 sm:$0xff]   ;;  %v10479_v43 = vld [vmem:[%s11623_s1 + $0xcec] ss:$16 sps:$4 sm:$0xff]  }
 0x3e6   : > { %7496 = vmatprep.subr.bf16.mxu0 %v10386_v44  ;;  %8264 = vmatprep.subr.bf16.mxu1 %v10389_v45  ;;  %v10478_v44 = vld [vmem:[%s11623_s1 + $0xce0] ss:$16 sps:$4 sm:$0xff]   ;;  %v10481_v45 = vld [vmem:[%s11623_s1 + $0xce8] ss:$16 sps:$4 sm:$0xff]  }
 0x3e9   : > { %7498 = vmatpush1.bf16.msra.mxu0 %v10388_v46  ;;  %8266 = vmatpush1.bf16.msra.mxu1 %v10391_v47  ;;  %v10482_v46 = vld [vmem:[%s11623_s1 + $0xd04] ss:$16 sps:$4 sm:$0xff]   ;;  %v10485_v47 = vld [vmem:[%s11623_s1 + $0xd0c] ss:$16 sps:$4 sm:$0xff]  }
 0x3ea   : > { %7500 = vmatprep.subr.bf16.mxu0 %v10392_v8  ;;  %8268 = vmatprep.subr.bf16.mxu1 %v10395_v14  ;;  %v10484_v8 = vld [vmem:[%s11623_s1 + $0xd00] ss:$16 sps:$4 sm:$0xff]   ;;  %v10487_v14 = vld [vmem:[%s11623_s1 + $0xd08] ss:$16 sps:$4 sm:$0xff]  }
 0x3ed   : > { %7502 = vmatpush1.bf16.msra.mxu0 %v10394_v16  ;;  %8270 = vmatpush1.bf16.msra.mxu1 %v10397_v17  ;;  %v10488_v16 = vld [vmem:[%s11623_s1 + $0xd24] ss:$16 sps:$4 sm:$0xff]   ;;  %v10491_v17 = vld [vmem:[%s11623_s1 + $0xd2c] ss:$16 sps:$4 sm:$0xff]  }
 0x3ee   : > { %7504 = vmatprep.subr.bf16.mxu0 %v10398_v18  ;;  %8272 = vmatprep.subr.bf16.mxu1 %v10401_v48  ;;  %v10490_v18 = vld [vmem:[%s11623_s1 + $0xd20] ss:$16 sps:$4 sm:$0xff]   ;;  %v10493_v48 = vld [vmem:[%s11623_s1 + $0xd28] ss:$16 sps:$4 sm:$0xff]  }
 0x3f1   : > { %7506 = vmatpush1.bf16.msra.mxu0 %v10400_v49  ;;  %8274 = vmatpush1.bf16.msra.mxu1 %v10403_v50  ;;  %v10494_v49 = vld [vmem:[%s11623_s1 + $0xd44] ss:$16 sps:$4 sm:$0xff]   ;;  %v10497_v50 = vld [vmem:[%s11623_s1 + $0xd4c] ss:$16 sps:$4 sm:$0xff]  }
 0x3f2   : > { %7508 = vmatprep.subr.bf16.mxu0 %v10404_v51  ;;  %8276 = vmatprep.subr.bf16.mxu1 %v10407_v52  ;;  %v10496_v51 = vld [vmem:[%s11623_s1 + $0xd40] ss:$16 sps:$4 sm:$0xff]   ;;  %v10499_v52 = vld [vmem:[%s11623_s1 + $0xd48] ss:$16 sps:$4 sm:$0xff]  }
 0x3f5   : > { %7510 = vmatpush1.bf16.msra.mxu0 %v10406_v53  ;;  %8278 = vmatpush1.bf16.msra.mxu1 %v10409_v54  ;;  %v10500_v53 = vld [vmem:[%s11623_s1 + $0xd64] ss:$16 sps:$4 sm:$0xff]   ;;  %v10503_v54 = vld [vmem:[%s11623_s1 + $0xd6c] ss:$16 sps:$4 sm:$0xff]  }
 0x3f6   : > { %7512 = vmatprep.subr.bf16.mxu0 %v10410_v55  ;;  %8280 = vmatprep.subr.bf16.mxu1 %v10413_v56  ;;  %v10502_v55 = vld [vmem:[%s11623_s1 + $0xd60] ss:$16 sps:$4 sm:$0xff]   ;;  %v10505_v56 = vld [vmem:[%s11623_s1 + $0xd68] ss:$16 sps:$4 sm:$0xff]  }
 0x3f9   : > { %7514 = vmatpush1.bf16.msra.mxu0 %v10412_v57  ;;  %8282 = vmatpush1.bf16.msra.mxu1 %v10415_v58  ;;  %v10506_v57 = vld [vmem:[%s11623_s1 + $0xd84] ss:$16 sps:$4 sm:$0xff]   ;;  %v10509_v58 = vld [vmem:[%s11623_s1 + $0xd8c] ss:$16 sps:$4 sm:$0xff]  }
 0x3fa   : > { %7516 = vmatprep.subr.bf16.mxu0 %v10416_v59  ;;  %8284 = vmatprep.subr.bf16.mxu1 %v10419_v34  ;;  %v10508_v59 = vld [vmem:[%s11623_s1 + $0xd80] ss:$16 sps:$4 sm:$0xff]   ;;  %v10511_v34 = vld [vmem:[%s11623_s1 + $0xd88] ss:$16 sps:$4 sm:$0xff]  }
 0x3fd   : > { %7518 = vmatpush1.bf16.msra.mxu0 %v10418_v35  ;;  %8286 = vmatpush1.bf16.msra.mxu1 %v10421_v36  ;;  %v10512_v35 = vld [vmem:[%s11623_s1 + $0xda4] ss:$16 sps:$4 sm:$0xff]   ;;  %v10515_v36 = vld [vmem:[%s11623_s1 + $0xdac] ss:$16 sps:$4 sm:$0xff]  }
 0x3fe   : > { %7520 = vmatprep.subr.bf16.mxu0 %v10422_v37  ;;  %8288 = vmatprep.subr.bf16.mxu1 %v10425_v60  ;;  %v10514_v37 = vld [vmem:[%s11623_s1 + $0xda0] ss:$16 sps:$4 sm:$0xff]   ;;  %v10517_v60 = vld [vmem:[%s11623_s1 + $0xda8] ss:$16 sps:$4 sm:$0xff]  }
 0x401   : > { %7522 = vmatpush1.bf16.msra.mxu0 %v10424_v61  ;;  %8290 = vmatpush1.bf16.msra.mxu1 %v10427_v62  ;;  %v10518_v61 = vld [vmem:[%s11623_s1 + $0xdc4] ss:$16 sps:$4 sm:$0xff]   ;;  %v10521_v62 = vld [vmem:[%s11623_s1 + $0xdcc] ss:$16 sps:$4 sm:$0xff]  }
 0x402   : > { %7524 = vmatprep.subr.bf16.mxu0 %v10428_v63  ;;  %8292 = vmatprep.subr.bf16.mxu1 %v10431_v0  ;;  %v10520_v63 = vld [vmem:[%s11623_s1 + $0xdc0] ss:$16 sps:$4 sm:$0xff]   ;;  %v10523_v0 = vld [vmem:[%s11623_s1 + $0xdc8] ss:$16 sps:$4 sm:$0xff]  }
 0x405   : > { %7526 = vmatpush1.bf16.msra.mxu0 %v10430_v1  ;;  %8294 = vmatpush1.bf16.msra.mxu1 %v10433_v2  ;;  %v10524_v1 = vld [vmem:[%s11623_s1 + $0xde4] ss:$16 sps:$4 sm:$0xff]   ;;  %v10527_v2 = vld [vmem:[%s11623_s1 + $0xdec] ss:$16 sps:$4 sm:$0xff]  }
 0x406   : > { %7528 = vmatprep.subr.bf16.mxu0 %v10434_v3  ;;  %8296 = vmatprep.subr.bf16.mxu1 %v10437_v4  ;;  %v10526_v3 = vld [vmem:[%s11623_s1 + $0xde0] ss:$16 sps:$4 sm:$0xff]   ;;  %v10529_v4 = vld [vmem:[%s11623_s1 + $0xde8] ss:$16 sps:$4 sm:$0xff]  }
 0x408   : > { %4800 = vmatmul.mubr.f32.vlgmr.msra.gmra.mrb[0].mxu0 %v2040_v7  ;;  %5652 = vmatmul.mubr.f32.vlgmr.msra.gmra.mrb[0].mxu1 %v2040_v7  ;;  %v10532_v7 = vld [vmem:[%s11623_s1 + $0xe00] ss:$16 sps:$4 sm:$0xff]  }
 0x409   : > { %7530 = vmatpush1.bf16.msra.mxu0 %v10436_v5  ;;  %8298 = vmatpush1.bf16.msra.mxu1 %v10439_v6  ;;  %v10530_v5 = vld [vmem:[%s11623_s1 + $0xe04] ss:$16 sps:$4 sm:$0xff]   ;;  %v10533_v6 = vld [vmem:[%s11623_s1 + $0xe0c] ss:$16 sps:$4 sm:$0xff]  }
 0x40a   : > { %7532 = vmatprep.subr.bf16.mxu0 %v10440_v9  ;;  %8300 = vmatprep.subr.bf16.mxu1 %v10443_v10  ;;  %v10535_v9 = vld [vmem:[%s11623_s1 + $0xe08] ss:$16 sps:$4 sm:$0xff]   ;;  %v2042_v10 = vld [vmem:[#allocation2 + $0x60] sm:$0xff] }
 0x40b   : > { %4870 = vmatprep.mubr.f32.mxu0 %v2043_v13  ;;  %5722 = vmatprep.mubr.f32.mxu1 %v2043_v13  ;;  %v10539_v13 = vld [vmem:[%s11623_s1 + $0xe2c] ss:$16 sps:$4 sm:$0xff]  }
 0x40d   : > { %7534 = vmatpush1.bf16.msra.mxu0 %v10442_v11  ;;  %8302 = vmatpush1.bf16.msra.mxu1 %v10445_v15  ;;  %v10536_v11 = vld [vmem:[%s11623_s1 + $0xe24] ss:$16 sps:$4 sm:$0xff]   ;;  %v10538_v15 = vld [vmem:[%s11623_s1 + $0xe20] ss:$16 sps:$4 sm:$0xff]  }
 0x40e   : > { %7536 = vmatprep.subr.bf16.mxu0 %v10446_v19  ;;  %8304 = vmatprep.subr.bf16.mxu1 %v10449_v20  ;;  %v2045_v19 = vld [vmem:[#allocation2 + $0x78] sm:$0xff] }
 0x40f   : > { %v10541_v20 = vld [vmem:[%s11623_s1 + $0xe28] ss:$16 sps:$4 sm:$0xff]  }
 0x411   : > { %7538 = vmatpush1.bf16.msra.mxu0 %v10448_v21  ;;  %8306 = vmatpush1.bf16.msra.mxu1 %v10451_v22  ;;  %v10542_v21 = vld [vmem:[%s11623_s1 + $0xe44] ss:$16 sps:$4 sm:$0xff]   ;;  %v10545_v22 = vld [vmem:[%s11623_s1 + $0xe4c] ss:$16 sps:$4 sm:$0xff]  }
 0x412   : > { %7540 = vmatprep.subr.bf16.mxu0 %v10452_v12  ;;  %8308 = vmatprep.subr.bf16.mxu1 %v10455_v23  ;;  %v10544_v12 = vld [vmem:[%s11623_s1 + $0xe40] ss:$16 sps:$4 sm:$0xff]   ;;  %v10547_v23 = vld [vmem:[%s11623_s1 + $0xe48] ss:$16 sps:$4 sm:$0xff]  }
 0x415   : > { %7542 = vmatpush1.bf16.msra.mxu0 %v10454_v24  ;;  %8310 = vmatpush1.bf16.msra.mxu1 %v10457_v25  ;;  %v10548_v24 = vld [vmem:[%s11623_s1 + $0xe64] ss:$16 sps:$4 sm:$0xff]   ;;  %v10551_v25 = vld [vmem:[%s11623_s1 + $0xe6c] ss:$16 sps:$4 sm:$0xff]  }
 0x416   : > { %7544 = vmatprep.subr.bf16.mxu0 %v10458_v26  ;;  %8312 = vmatprep.subr.bf16.mxu1 %v10461_v27  ;;  %v10550_v26 = vld [vmem:[%s11623_s1 + $0xe60] ss:$16 sps:$4 sm:$0xff]   ;;  %v10553_v27 = vld [vmem:[%s11623_s1 + $0xe68] ss:$16 sps:$4 sm:$0xff]  }
 0x419   : > { %7546 = vmatpush1.bf16.msra.mxu0 %v10460_v28  ;;  %8314 = vmatpush1.bf16.msra.mxu1 %v10463_v29  ;;  %v10554_v28 = vld [vmem:[%s11623_s1 + $0xe84] ss:$16 sps:$4 sm:$0xff]   ;;  %v10557_v29 = vld [vmem:[%s11623_s1 + $0xe8c] ss:$16 sps:$4 sm:$0xff]  }
 0x41a   : > { %7548 = vmatprep.subr.bf16.mxu0 %v10464_v30  ;;  %8316 = vmatprep.subr.bf16.mxu1 %v10467_v31  ;;  %v10556_v30 = vld [vmem:[%s11623_s1 + $0xe80] ss:$16 sps:$4 sm:$0xff]   ;;  %v10559_v31 = vld [vmem:[%s11623_s1 + $0xe88] ss:$16 sps:$4 sm:$0xff]  }
 0x41d   : > { %7550 = vmatpush1.bf16.msra.mxu0 %v10466_v32  ;;  %8318 = vmatpush1.bf16.msra.mxu1 %v10469_v33  ;;  %v10560_v32 = vld [vmem:[%s11623_s1 + $0xea4] ss:$16 sps:$4 sm:$0xff]   ;;  %v10563_v33 = vld [vmem:[%s11623_s1 + $0xeac] ss:$16 sps:$4 sm:$0xff]  }
 0x41e   : > { %7552 = vmatprep.subr.bf16.mxu0 %v10470_v38  ;;  %8320 = vmatprep.subr.bf16.mxu1 %v10473_v39  ;;  %v10562_v38 = vld [vmem:[%s11623_s1 + $0xea0] ss:$16 sps:$4 sm:$0xff]   ;;  %v10565_v39 = vld [vmem:[%s11623_s1 + $0xea8] ss:$16 sps:$4 sm:$0xff]  }
 0x421   : > { %7554 = vmatpush1.bf16.msra.mxu0 %v10472_v40  ;;  %8322 = vmatpush1.bf16.msra.mxu1 %v10475_v41  ;;  %v10566_v40 = vld [vmem:[%s11623_s1 + $0xec4] ss:$16 sps:$4 sm:$0xff]   ;;  %v10569_v41 = vld [vmem:[%s11623_s1 + $0xecc] ss:$16 sps:$4 sm:$0xff]  }
 0x422   : > { %7556 = vmatprep.subr.bf16.mxu0 %v10476_v42  ;;  %8324 = vmatprep.subr.bf16.mxu1 %v10479_v43  ;;  %v10568_v42 = vld [vmem:[%s11623_s1 + $0xec0] ss:$16 sps:$4 sm:$0xff]   ;;  %v10571_v43 = vld [vmem:[%s11623_s1 + $0xec8] ss:$16 sps:$4 sm:$0xff]  }
 0x425   : > { %7558 = vmatpush1.bf16.msra.mxu0 %v10478_v44  ;;  %8326 = vmatpush1.bf16.msra.mxu1 %v10481_v45  ;;  %v10572_v44 = vld [vmem:[%s11623_s1 + $0xee4] ss:$16 sps:$4 sm:$0xff]   ;;  %v10575_v45 = vld [vmem:[%s11623_s1 + $0xeec] ss:$16 sps:$4 sm:$0xff]  }
 0x426   : > { %7560 = vmatprep.subr.bf16.mxu0 %v10482_v46  ;;  %8328 = vmatprep.subr.bf16.mxu1 %v10485_v47  ;;  %v10574_v46 = vld [vmem:[%s11623_s1 + $0xee0] ss:$16 sps:$4 sm:$0xff]   ;;  %v10577_v47 = vld [vmem:[%s11623_s1 + $0xee8] ss:$16 sps:$4 sm:$0xff]  }
 0x429   : > { %7562 = vmatpush1.bf16.msra.mxu0 %v10484_v8  ;;  %8330 = vmatpush1.bf16.msra.mxu1 %v10487_v14  ;;  %v10578_v8 = vld [vmem:[%s11623_s1 + $0xf04] ss:$16 sps:$4 sm:$0xff]   ;;  %v10581_v14 = vld [vmem:[%s11623_s1 + $0xf0c] ss:$16 sps:$4 sm:$0xff]  }
 0x42a   : > { %7564 = vmatprep.subr.bf16.mxu0 %v10488_v16  ;;  %8332 = vmatprep.subr.bf16.mxu1 %v10491_v17  ;;  %v10580_v16 = vld [vmem:[%s11623_s1 + $0xf00] ss:$16 sps:$4 sm:$0xff]   ;;  %v10583_v17 = vld [vmem:[%s11623_s1 + $0xf08] ss:$16 sps:$4 sm:$0xff]  }
 0x42d   : > { %7566 = vmatpush1.bf16.msra.mxu0 %v10490_v18  ;;  %8334 = vmatpush1.bf16.msra.mxu1 %v10493_v48  ;;  %v10584_v18 = vld [vmem:[%s11623_s1 + $0xf24] ss:$16 sps:$4 sm:$0xff]   ;;  %v10587_v48 = vld [vmem:[%s11623_s1 + $0xf2c] ss:$16 sps:$4 sm:$0xff]  }
 0x42e   : > { %7568 = vmatprep.subr.bf16.mxu0 %v10494_v49  ;;  %8336 = vmatprep.subr.bf16.mxu1 %v10497_v50  ;;  %v10586_v49 = vld [vmem:[%s11623_s1 + $0xf20] ss:$16 sps:$4 sm:$0xff]   ;;  %v10589_v50 = vld [vmem:[%s11623_s1 + $0xf28] ss:$16 sps:$4 sm:$0xff]  }
 0x431   : > { %7570 = vmatpush1.bf16.msra.mxu0 %v10496_v51  ;;  %8338 = vmatpush1.bf16.msra.mxu1 %v10499_v52  ;;  %v10590_v51 = vld [vmem:[%s11623_s1 + $0xf44] ss:$16 sps:$4 sm:$0xff]   ;;  %v10593_v52 = vld [vmem:[%s11623_s1 + $0xf4c] ss:$16 sps:$4 sm:$0xff]  }
 0x432   : > { %7572 = vmatprep.subr.bf16.mxu0 %v10500_v53  ;;  %8340 = vmatprep.subr.bf16.mxu1 %v10503_v54  ;;  %v10592_v53 = vld [vmem:[%s11623_s1 + $0xf40] ss:$16 sps:$4 sm:$0xff]   ;;  %v10595_v54 = vld [vmem:[%s11623_s1 + $0xf48] ss:$16 sps:$4 sm:$0xff]  }
 0x435   : > { %7574 = vmatpush1.bf16.msra.mxu0 %v10502_v55  ;;  %8342 = vmatpush1.bf16.msra.mxu1 %v10505_v56  ;;  %v10596_v55 = vld [vmem:[%s11623_s1 + $0xf64] ss:$16 sps:$4 sm:$0xff]   ;;  %v10599_v56 = vld [vmem:[%s11623_s1 + $0xf6c] ss:$16 sps:$4 sm:$0xff]  }
 0x436   : > { %7576 = vmatprep.subr.bf16.mxu0 %v10506_v57  ;;  %8344 = vmatprep.subr.bf16.mxu1 %v10509_v58  ;;  %v10598_v57 = vld [vmem:[%s11623_s1 + $0xf60] ss:$16 sps:$4 sm:$0xff]   ;;  %v10601_v58 = vld [vmem:[%s11623_s1 + $0xf68] ss:$16 sps:$4 sm:$0xff]  }
 0x439   : > { %7578 = vmatpush1.bf16.msra.mxu0 %v10508_v59  ;;  %8346 = vmatpush1.bf16.msra.mxu1 %v10511_v34  ;;  %v10602_v59 = vld [vmem:[%s11623_s1 + $0xf84] ss:$16 sps:$4 sm:$0xff]   ;;  %v10605_v34 = vld [vmem:[%s11623_s1 + $0xf8c] ss:$16 sps:$4 sm:$0xff]  }
 0x43a   : > { %7580 = vmatprep.subr.bf16.mxu0 %v10512_v35  ;;  %8348 = vmatprep.subr.bf16.mxu1 %v10515_v36  ;;  %v10604_v35 = vld [vmem:[%s11623_s1 + $0xf80] ss:$16 sps:$4 sm:$0xff]   ;;  %v10607_v36 = vld [vmem:[%s11623_s1 + $0xf88] ss:$16 sps:$4 sm:$0xff]  }
 0x43d   : > { %7582 = vmatpush1.bf16.msra.mxu0 %v10514_v37  ;;  %8350 = vmatpush1.bf16.msra.mxu1 %v10517_v60  ;;  %v10608_v37 = vld [vmem:[%s11623_s1 + $0xfa4] ss:$16 sps:$4 sm:$0xff]   ;;  %v10611_v60 = vld [vmem:[%s11623_s1 + $0xfac] ss:$16 sps:$4 sm:$0xff]  }
 0x43e   : > { %7584 = vmatprep.subr.bf16.mxu0 %v10518_v61  ;;  %8352 = vmatprep.subr.bf16.mxu1 %v10521_v62  ;;  %v10610_v61 = vld [vmem:[%s11623_s1 + $0xfa0] ss:$16 sps:$4 sm:$0xff]   ;;  %v10613_v62 = vld [vmem:[%s11623_s1 + $0xfa8] ss:$16 sps:$4 sm:$0xff]  }
 0x441   : > { %7586 = vmatpush1.bf16.msra.mxu0 %v10520_v63  ;;  %8354 = vmatpush1.bf16.msra.mxu1 %v10523_v0  ;;  %v10614_v63 = vld [vmem:[%s11623_s1 + $0xfc4] ss:$16 sps:$4 sm:$0xff]   ;;  %v10617_v0 = vld [vmem:[%s11623_s1 + $0xfcc] ss:$16 sps:$4 sm:$0xff]  }
 0x442   : > { %7588 = vmatprep.subr.bf16.mxu0 %v10524_v1  ;;  %8356 = vmatprep.subr.bf16.mxu1 %v10527_v2  ;;  %v10616_v1 = vld [vmem:[%s11623_s1 + $0xfc0] ss:$16 sps:$4 sm:$0xff]   ;;  %v10619_v2 = vld [vmem:[%s11623_s1 + $0xfc8] ss:$16 sps:$4 sm:$0xff]  }
 0x445   : > { %7590 = vmatpush1.bf16.msra.mxu0 %v10526_v3  ;;  %8358 = vmatpush1.bf16.msra.mxu1 %v10529_v4  ;;  %v10620_v3 = vld [vmem:[%s11623_s1 + $0xfe4] ss:$16 sps:$4 sm:$0xff]   ;;  %v10623_v4 = vld [vmem:[%s11623_s1 + $0xfec] ss:$16 sps:$4 sm:$0xff]  }
 0x446   : > { %7592 = vmatprep.subr.bf16.mxu0 %v10530_v5  ;;  %8360 = vmatprep.subr.bf16.mxu1 %v10533_v6  ;;  %v10622_v5 = vld [vmem:[%s11623_s1 + $0xfe0] ss:$16 sps:$4 sm:$0xff]   ;;  %v10625_v6 = vld [vmem:[%s11623_s1 + $0xfe8] ss:$16 sps:$4 sm:$0xff]  }
 0x448   : > { %4871 = vmatmul.mubr.f32.vlgmr.msra.gmra.mrb[0].mxu0 %v2042_v10  ;;  %5723 = vmatmul.mubr.f32.vlgmr.msra.gmra.mrb[0].mxu1 %v2042_v10  ;;  %v10628_v10 = vld [vmem:[%s11623_s1 + $0x1000] ss:$16 sps:$4 sm:$0xff]  }
 0x449   : > { %7594 = vmatpush1.bf16.msra.mxu0 %v10532_v7  ;;  %8362 = vmatpush1.bf16.msra.mxu1 %v10535_v9  ;;  %v10626_v7 = vld [vmem:[%s11623_s1 + $0x1004] ss:$16 sps:$4 sm:$0xff]   ;;  %v10629_v9 = vld [vmem:[%s11623_s1 + $0x100c] ss:$16 sps:$4 sm:$0xff]  }
 0x44a   : > { %7596 = vmatprep.subr.bf16.mxu0 %v10536_v11  ;;  %8364 = vmatprep.subr.bf16.mxu1 %v10539_v13  ;;  %v10631_v11 = vld [vmem:[%s11623_s1 + $0x1008] ss:$16 sps:$4 sm:$0xff]   ;;  %v2044_v13 = vld [vmem:[#allocation2 + $0x70] sm:$0xff] }
 0x44b   : > { %4941 = vmatprep.mubr.f32.mxu0 %v2045_v19  ;;  %5793 = vmatprep.mubr.f32.mxu1 %v2045_v19  ;;  %v10635_v19 = vld [vmem:[%s11623_s1 + $0x102c] ss:$16 sps:$4 sm:$0xff]  }
 0x44d   : > { %7598 = vmatpush1.bf16.msra.mxu0 %v10538_v15  ;;  %8366 = vmatpush1.bf16.msra.mxu1 %v10541_v20  ;;  %v10632_v15 = vld [vmem:[%s11623_s1 + $0x1024] ss:$16 sps:$4 sm:$0xff]   ;;  %v2047_v20 = vld [vmem:[#allocation2 + $0x88] sm:$0xff] }
 0x44e   : > { %7600 = vmatprep.subr.bf16.mxu0 %v10542_v21  ;;  %8368 = vmatprep.subr.bf16.mxu1 %v10545_v22  ;;  %v10634_v21 = vld [vmem:[%s11623_s1 + $0x1020] ss:$16 sps:$4 sm:$0xff]   ;;  %v10637_v22 = vld [vmem:[%s11623_s1 + $0x1028] ss:$16 sps:$4 sm:$0xff]  }
 0x451   : > { %7602 = vmatpush1.bf16.msra.mxu0 %v10544_v12  ;;  %8370 = vmatpush1.bf16.msra.mxu1 %v10547_v23  ;;  %v10638_v12 = vld [vmem:[%s11623_s1 + $0x1044] ss:$16 sps:$4 sm:$0xff]   ;;  %v10641_v23 = vld [vmem:[%s11623_s1 + $0x104c] ss:$16 sps:$4 sm:$0xff]  }
 0x452   : > { %7604 = vmatprep.subr.bf16.mxu0 %v10548_v24  ;;  %8372 = vmatprep.subr.bf16.mxu1 %v10551_v25  ;;  %v10640_v24 = vld [vmem:[%s11623_s1 + $0x1040] ss:$16 sps:$4 sm:$0xff]   ;;  %v10643_v25 = vld [vmem:[%s11623_s1 + $0x1048] ss:$16 sps:$4 sm:$0xff]  }
 0x455   : > { %7606 = vmatpush1.bf16.msra.mxu0 %v10550_v26  ;;  %8374 = vmatpush1.bf16.msra.mxu1 %v10553_v27  ;;  %v10644_v26 = vld [vmem:[%s11623_s1 + $0x1064] ss:$16 sps:$4 sm:$0xff]   ;;  %v10647_v27 = vld [vmem:[%s11623_s1 + $0x106c] ss:$16 sps:$4 sm:$0xff]  }
 0x456   : > { %7608 = vmatprep.subr.bf16.mxu0 %v10554_v28  ;;  %8376 = vmatprep.subr.bf16.mxu1 %v10557_v29  ;;  %v10646_v28 = vld [vmem:[%s11623_s1 + $0x1060] ss:$16 sps:$4 sm:$0xff]   ;;  %v10649_v29 = vld [vmem:[%s11623_s1 + $0x1068] ss:$16 sps:$4 sm:$0xff]  }
 0x459   : > { %7610 = vmatpush1.bf16.msra.mxu0 %v10556_v30  ;;  %8378 = vmatpush1.bf16.msra.mxu1 %v10559_v31  ;;  %v10650_v30 = vld [vmem:[%s11623_s1 + $0x1084] ss:$16 sps:$4 sm:$0xff]   ;;  %v10653_v31 = vld [vmem:[%s11623_s1 + $0x108c] ss:$16 sps:$4 sm:$0xff]  }
 0x45a   : > { %7612 = vmatprep.subr.bf16.mxu0 %v10560_v32  ;;  %8380 = vmatprep.subr.bf16.mxu1 %v10563_v33  ;;  %v10652_v32 = vld [vmem:[%s11623_s1 + $0x1080] ss:$16 sps:$4 sm:$0xff]   ;;  %v10655_v33 = vld [vmem:[%s11623_s1 + $0x1088] ss:$16 sps:$4 sm:$0xff]  }
 0x45d   : > { %7614 = vmatpush1.bf16.msra.mxu0 %v10562_v38  ;;  %8382 = vmatpush1.bf16.msra.mxu1 %v10565_v39  ;;  %v10656_v38 = vld [vmem:[%s11623_s1 + $0x10a4] ss:$16 sps:$4 sm:$0xff]   ;;  %v10659_v39 = vld [vmem:[%s11623_s1 + $0x10ac] ss:$16 sps:$4 sm:$0xff]  }
 0x45e   : > { %7616 = vmatprep.subr.bf16.mxu0 %v10566_v40  ;;  %8384 = vmatprep.subr.bf16.mxu1 %v10569_v41  ;;  %v10658_v40 = vld [vmem:[%s11623_s1 + $0x10a0] ss:$16 sps:$4 sm:$0xff]   ;;  %v10661_v41 = vld [vmem:[%s11623_s1 + $0x10a8] ss:$16 sps:$4 sm:$0xff]  }
 0x461   : > { %7618 = vmatpush1.bf16.msra.mxu0 %v10568_v42  ;;  %8386 = vmatpush1.bf16.msra.mxu1 %v10571_v43  ;;  %v10662_v42 = vld [vmem:[%s11623_s1 + $0x10c4] ss:$16 sps:$4 sm:$0xff]   ;;  %v10665_v43 = vld [vmem:[%s11623_s1 + $0x10cc] ss:$16 sps:$4 sm:$0xff]  }
 0x462   : > { %7620 = vmatprep.subr.bf16.mxu0 %v10572_v44  ;;  %8388 = vmatprep.subr.bf16.mxu1 %v10575_v45  ;;  %v10664_v44 = vld [vmem:[%s11623_s1 + $0x10c0] ss:$16 sps:$4 sm:$0xff]   ;;  %v10667_v45 = vld [vmem:[%s11623_s1 + $0x10c8] ss:$16 sps:$4 sm:$0xff]  }
 0x465   : > { %7622 = vmatpush1.bf16.msra.mxu0 %v10574_v46  ;;  %8390 = vmatpush1.bf16.msra.mxu1 %v10577_v47  ;;  %v10668_v46 = vld [vmem:[%s11623_s1 + $0x10e4] ss:$16 sps:$4 sm:$0xff]   ;;  %v10671_v47 = vld [vmem:[%s11623_s1 + $0x10ec] ss:$16 sps:$4 sm:$0xff]  }
 0x466   : > { %7624 = vmatprep.subr.bf16.mxu0 %v10578_v8  ;;  %8392 = vmatprep.subr.bf16.mxu1 %v10581_v14  ;;  %v10670_v8 = vld [vmem:[%s11623_s1 + $0x10e0] ss:$16 sps:$4 sm:$0xff]   ;;  %v10673_v14 = vld [vmem:[%s11623_s1 + $0x10e8] ss:$16 sps:$4 sm:$0xff]  }
 0x469   : > { %7626 = vmatpush1.bf16.msra.mxu0 %v10580_v16  ;;  %8394 = vmatpush1.bf16.msra.mxu1 %v10583_v17  ;;  %v10674_v16 = vld [vmem:[%s11623_s1 + $0x1104] ss:$16 sps:$4 sm:$0xff]   ;;  %v10677_v17 = vld [vmem:[%s11623_s1 + $0x110c] ss:$16 sps:$4 sm:$0xff]  }
 0x46a   : > { %7628 = vmatprep.subr.bf16.mxu0 %v10584_v18  ;;  %8396 = vmatprep.subr.bf16.mxu1 %v10587_v48  ;;  %v10676_v18 = vld [vmem:[%s11623_s1 + $0x1100] ss:$16 sps:$4 sm:$0xff]   ;;  %v10679_v48 = vld [vmem:[%s11623_s1 + $0x1108] ss:$16 sps:$4 sm:$0xff]  }
 0x46d   : > { %7630 = vmatpush1.bf16.msra.mxu0 %v10586_v49  ;;  %8398 = vmatpush1.bf16.msra.mxu1 %v10589_v50  ;;  %v10680_v49 = vld [vmem:[%s11623_s1 + $0x1124] ss:$16 sps:$4 sm:$0xff]   ;;  %v10683_v50 = vld [vmem:[%s11623_s1 + $0x112c] ss:$16 sps:$4 sm:$0xff]  }
 0x46e   : > { %7632 = vmatprep.subr.bf16.mxu0 %v10590_v51  ;;  %8400 = vmatprep.subr.bf16.mxu1 %v10593_v52  ;;  %v10682_v51 = vld [vmem:[%s11623_s1 + $0x1120] ss:$16 sps:$4 sm:$0xff]   ;;  %v10685_v52 = vld [vmem:[%s11623_s1 + $0x1128] ss:$16 sps:$4 sm:$0xff]  }
 0x471   : > { %7634 = vmatpush1.bf16.msra.mxu0 %v10592_v53  ;;  %8402 = vmatpush1.bf16.msra.mxu1 %v10595_v54  ;;  %v10686_v53 = vld [vmem:[%s11623_s1 + $0x1144] ss:$16 sps:$4 sm:$0xff]   ;;  %v10689_v54 = vld [vmem:[%s11623_s1 + $0x114c] ss:$16 sps:$4 sm:$0xff]  }
 0x472   : > { %7636 = vmatprep.subr.bf16.mxu0 %v10596_v55  ;;  %8404 = vmatprep.subr.bf16.mxu1 %v10599_v56  ;;  %v10688_v55 = vld [vmem:[%s11623_s1 + $0x1140] ss:$16 sps:$4 sm:$0xff]   ;;  %v10691_v56 = vld [vmem:[%s11623_s1 + $0x1148] ss:$16 sps:$4 sm:$0xff]  }
 0x475   : > { %7638 = vmatpush1.bf16.msra.mxu0 %v10598_v57  ;;  %8406 = vmatpush1.bf16.msra.mxu1 %v10601_v58  ;;  %v10692_v57 = vld [vmem:[%s11623_s1 + $0x1164] ss:$16 sps:$4 sm:$0xff]   ;;  %v10695_v58 = vld [vmem:[%s11623_s1 + $0x116c] ss:$16 sps:$4 sm:$0xff]  }
 0x476   : > { %7640 = vmatprep.subr.bf16.mxu0 %v10602_v59  ;;  %8408 = vmatprep.subr.bf16.mxu1 %v10605_v34  ;;  %v10694_v59 = vld [vmem:[%s11623_s1 + $0x1160] ss:$16 sps:$4 sm:$0xff]   ;;  %v10697_v34 = vld [vmem:[%s11623_s1 + $0x1168] ss:$16 sps:$4 sm:$0xff]  }
 0x479   : > { %7642 = vmatpush1.bf16.msra.mxu0 %v10604_v35  ;;  %8410 = vmatpush1.bf16.msra.mxu1 %v10607_v36  ;;  %v10698_v35 = vld [vmem:[%s11623_s1 + $0x1184] ss:$16 sps:$4 sm:$0xff]   ;;  %v10701_v36 = vld [vmem:[%s11623_s1 + $0x118c] ss:$16 sps:$4 sm:$0xff]  }
 0x47a   : > { %7644 = vmatprep.subr.bf16.mxu0 %v10608_v37  ;;  %8412 = vmatprep.subr.bf16.mxu1 %v10611_v60  ;;  %v10700_v37 = vld [vmem:[%s11623_s1 + $0x1180] ss:$16 sps:$4 sm:$0xff]   ;;  %v10703_v60 = vld [vmem:[%s11623_s1 + $0x1188] ss:$16 sps:$4 sm:$0xff]  }
 0x47d   : > { %7646 = vmatpush1.bf16.msra.mxu0 %v10610_v61  ;;  %8414 = vmatpush1.bf16.msra.mxu1 %v10613_v62  ;;  %v10704_v61 = vld [vmem:[%s11623_s1 + $0x11a4] ss:$16 sps:$4 sm:$0xff]   ;;  %v10707_v62 = vld [vmem:[%s11623_s1 + $0x11ac] ss:$16 sps:$4 sm:$0xff]  }
 0x47e   : > { %7648 = vmatprep.subr.bf16.mxu0 %v10614_v63  ;;  %8416 = vmatprep.subr.bf16.mxu1 %v10617_v0  ;;  %v10706_v63 = vld [vmem:[%s11623_s1 + $0x11a0] ss:$16 sps:$4 sm:$0xff]   ;;  %v10709_v0 = vld [vmem:[%s11623_s1 + $0x11a8] ss:$16 sps:$4 sm:$0xff]  }
 0x481   : > { %7650 = vmatpush1.bf16.msra.mxu0 %v10616_v1  ;;  %8418 = vmatpush1.bf16.msra.mxu1 %v10619_v2  ;;  %v10710_v1 = vld [vmem:[%s11623_s1 + $0x11c4] ss:$16 sps:$4 sm:$0xff]   ;;  %v10713_v2 = vld [vmem:[%s11623_s1 + $0x11cc] ss:$16 sps:$4 sm:$0xff]  }
 0x482   : > { %7652 = vmatprep.subr.bf16.mxu0 %v10620_v3  ;;  %8420 = vmatprep.subr.bf16.mxu1 %v10623_v4  ;;  %v10712_v3 = vld [vmem:[%s11623_s1 + $0x11c0] ss:$16 sps:$4 sm:$0xff]   ;;  %v10715_v4 = vld [vmem:[%s11623_s1 + $0x11c8] ss:$16 sps:$4 sm:$0xff]  }
 0x485   : > { %7654 = vmatpush1.bf16.msra.mxu0 %v10622_v5  ;;  %8422 = vmatpush1.bf16.msra.mxu1 %v10625_v6  ;;  %v10716_v5 = vld [vmem:[%s11623_s1 + $0x11e4] ss:$16 sps:$4 sm:$0xff]   ;;  %v10719_v6 = vld [vmem:[%s11623_s1 + $0x11ec] ss:$16 sps:$4 sm:$0xff]  }
 0x486   : > { %7656 = vmatprep.subr.bf16.mxu0 %v10626_v7  ;;  %8424 = vmatprep.subr.bf16.mxu1 %v10629_v9  ;;  %v10718_v7 = vld [vmem:[%s11623_s1 + $0x11e0] ss:$16 sps:$4 sm:$0xff]   ;;  %v10721_v9 = vld [vmem:[%s11623_s1 + $0x11e8] ss:$16 sps:$4 sm:$0xff]  }
 0x488   : > { %4942 = vmatmul.mubr.f32.vlgmr.msra.gmra.mrb[0].mxu0 %v2044_v13  ;;  %5794 = vmatmul.mubr.f32.vlgmr.msra.gmra.mrb[0].mxu1 %v2044_v13  ;;  %v10724_v13 = vld [vmem:[%s11623_s1 + $0x1200] ss:$16 sps:$4 sm:$0xff]  }
 0x489   : > { %7658 = vmatpush1.bf16.msra.mxu0 %v10628_v10  ;;  %8426 = vmatpush1.bf16.msra.mxu1 %v10631_v11  ;;  %v10722_v10 = vld [vmem:[%s11623_s1 + $0x1204] ss:$16 sps:$4 sm:$0xff]   ;;  %v10725_v11 = vld [vmem:[%s11623_s1 + $0x120c] ss:$16 sps:$4 sm:$0xff]  }
 0x48a   : > { %7660 = vmatprep.subr.bf16.mxu0 %v10632_v15  ;;  %8428 = vmatprep.subr.bf16.mxu1 %v10635_v19  ;;  %v10727_v15 = vld [vmem:[%s11623_s1 + $0x1208] ss:$16 sps:$4 sm:$0xff]   ;;  %v2046_v19 = vld [vmem:[#allocation2 + $0x80] sm:$0xff] }
 0x48b   : > { %5012 = vmatprep.mubr.f32.mxu0 %v2047_v20  ;;  %5864 = vmatprep.mubr.f32.mxu1 %v2047_v20  ;;  %v10728_v20 = vld [vmem:[%s11623_s1 + $0x1224] ss:$16 sps:$4 sm:$0xff]  }
 0x48d   : > { %7662 = vmatpush1.bf16.msra.mxu0 %v10634_v21  ;;  %8430 = vmatpush1.bf16.msra.mxu1 %v10637_v22  ;;  %v10731_v21 = vld [vmem:[%s11623_s1 + $0x122c] ss:$16 sps:$4 sm:$0xff]  }
 0x48e   : > { %7664 = vmatprep.subr.bf16.mxu0 %v10638_v12  ;;  %8432 = vmatprep.subr.bf16.mxu1 %v10641_v23  ;;  %v2049_v22 = vld [vmem:[#allocation2 + $0x98] sm:$0xff]  ;;  %v10730_v12 = vld [vmem:[%s11623_s1 + $0x1220] ss:$16 sps:$4 sm:$0xff]  }
 0x48f   : > { %v10733_v23 = vld [vmem:[%s11623_s1 + $0x1228] ss:$16 sps:$4 sm:$0xff]  }
 0x491   : > { %7666 = vmatpush1.bf16.msra.mxu0 %v10640_v24  ;;  %8434 = vmatpush1.bf16.msra.mxu1 %v10643_v25  ;;  %v10734_v24 = vld [vmem:[%s11623_s1 + $0x1244] ss:$16 sps:$4 sm:$0xff]   ;;  %v10737_v25 = vld [vmem:[%s11623_s1 + $0x124c] ss:$16 sps:$4 sm:$0xff]  }
 0x492   : > { %7668 = vmatprep.subr.bf16.mxu0 %v10644_v26  ;;  %8436 = vmatprep.subr.bf16.mxu1 %v10647_v27  ;;  %v10736_v26 = vld [vmem:[%s11623_s1 + $0x1240] ss:$16 sps:$4 sm:$0xff]   ;;  %v10739_v27 = vld [vmem:[%s11623_s1 + $0x1248] ss:$16 sps:$4 sm:$0xff]  }
 0x495   : > { %7670 = vmatpush1.bf16.msra.mxu0 %v10646_v28  ;;  %8438 = vmatpush1.bf16.msra.mxu1 %v10649_v29  ;;  %v10740_v28 = vld [vmem:[%s11623_s1 + $0x1264] ss:$16 sps:$4 sm:$0xff]   ;;  %v10743_v29 = vld [vmem:[%s11623_s1 + $0x126c] ss:$16 sps:$4 sm:$0xff]  }
 0x496   : > { %7672 = vmatprep.subr.bf16.mxu0 %v10650_v30  ;;  %8440 = vmatprep.subr.bf16.mxu1 %v10653_v31  ;;  %v10742_v30 = vld [vmem:[%s11623_s1 + $0x1260] ss:$16 sps:$4 sm:$0xff]   ;;  %v10745_v31 = vld [vmem:[%s11623_s1 + $0x1268] ss:$16 sps:$4 sm:$0xff]  }
 0x499   : > { %7674 = vmatpush1.bf16.msra.mxu0 %v10652_v32  ;;  %8442 = vmatpush1.bf16.msra.mxu1 %v10655_v33  ;;  %v10746_v32 = vld [vmem:[%s11623_s1 + $0x1284] ss:$16 sps:$4 sm:$0xff]   ;;  %v10749_v33 = vld [vmem:[%s11623_s1 + $0x128c] ss:$16 sps:$4 sm:$0xff]  }
 0x49a   : > { %7676 = vmatprep.subr.bf16.mxu0 %v10656_v38  ;;  %8444 = vmatprep.subr.bf16.mxu1 %v10659_v39  ;;  %v10748_v38 = vld [vmem:[%s11623_s1 + $0x1280] ss:$16 sps:$4 sm:$0xff]   ;;  %v10751_v39 = vld [vmem:[%s11623_s1 + $0x1288] ss:$16 sps:$4 sm:$0xff]  }
 0x49d   : > { %7678 = vmatpush1.bf16.msra.mxu0 %v10658_v40  ;;  %8446 = vmatpush1.bf16.msra.mxu1 %v10661_v41  ;;  %v10752_v40 = vld [vmem:[%s11623_s1 + $0x12a4] ss:$16 sps:$4 sm:$0xff]   ;;  %v10755_v41 = vld [vmem:[%s11623_s1 + $0x12ac] ss:$16 sps:$4 sm:$0xff]  }
 0x49e   : > { %7680 = vmatprep.subr.bf16.mxu0 %v10662_v42  ;;  %8448 = vmatprep.subr.bf16.mxu1 %v10665_v43  ;;  %v10754_v42 = vld [vmem:[%s11623_s1 + $0x12a0] ss:$16 sps:$4 sm:$0xff]   ;;  %v10757_v43 = vld [vmem:[%s11623_s1 + $0x12a8] ss:$16 sps:$4 sm:$0xff]  }
 0x4a1   : > { %7682 = vmatpush1.bf16.msra.mxu0 %v10664_v44  ;;  %8450 = vmatpush1.bf16.msra.mxu1 %v10667_v45  ;;  %v10758_v44 = vld [vmem:[%s11623_s1 + $0x12c4] ss:$16 sps:$4 sm:$0xff]   ;;  %v10761_v45 = vld [vmem:[%s11623_s1 + $0x12cc] ss:$16 sps:$4 sm:$0xff]  }
 0x4a2   : > { %7684 = vmatprep.subr.bf16.mxu0 %v10668_v46  ;;  %8452 = vmatprep.subr.bf16.mxu1 %v10671_v47  ;;  %v10760_v46 = vld [vmem:[%s11623_s1 + $0x12c0] ss:$16 sps:$4 sm:$0xff]   ;;  %v10763_v47 = vld [vmem:[%s11623_s1 + $0x12c8] ss:$16 sps:$4 sm:$0xff]  }
 0x4a5   : > { %7686 = vmatpush1.bf16.msra.mxu0 %v10670_v8  ;;  %8454 = vmatpush1.bf16.msra.mxu1 %v10673_v14  ;;  %v10764_v8 = vld [vmem:[%s11623_s1 + $0x12e4] ss:$16 sps:$4 sm:$0xff]   ;;  %v10767_v14 = vld [vmem:[%s11623_s1 + $0x12ec] ss:$16 sps:$4 sm:$0xff]  }
 0x4a6   : > { %7688 = vmatprep.subr.bf16.mxu0 %v10674_v16  ;;  %8456 = vmatprep.subr.bf16.mxu1 %v10677_v17  ;;  %v10766_v16 = vld [vmem:[%s11623_s1 + $0x12e0] ss:$16 sps:$4 sm:$0xff]   ;;  %v10769_v17 = vld [vmem:[%s11623_s1 + $0x12e8] ss:$16 sps:$4 sm:$0xff]  }
 0x4a9   : > { %7690 = vmatpush1.bf16.msra.mxu0 %v10676_v18  ;;  %8458 = vmatpush1.bf16.msra.mxu1 %v10679_v48  ;;  %v10770_v18 = vld [vmem:[%s11623_s1 + $0x1304] ss:$16 sps:$4 sm:$0xff]   ;;  %v10773_v48 = vld [vmem:[%s11623_s1 + $0x130c] ss:$16 sps:$4 sm:$0xff]  }
 0x4aa   : > { %7692 = vmatprep.subr.bf16.mxu0 %v10680_v49  ;;  %8460 = vmatprep.subr.bf16.mxu1 %v10683_v50  ;;  %v10772_v49 = vld [vmem:[%s11623_s1 + $0x1300] ss:$16 sps:$4 sm:$0xff]   ;;  %v10775_v50 = vld [vmem:[%s11623_s1 + $0x1308] ss:$16 sps:$4 sm:$0xff]  }
 0x4ad   : > { %7694 = vmatpush1.bf16.msra.mxu0 %v10682_v51  ;;  %8462 = vmatpush1.bf16.msra.mxu1 %v10685_v52  ;;  %v10776_v51 = vld [vmem:[%s11623_s1 + $0x1324] ss:$16 sps:$4 sm:$0xff]   ;;  %v10779_v52 = vld [vmem:[%s11623_s1 + $0x132c] ss:$16 sps:$4 sm:$0xff]  }
 0x4ae   : > { %7696 = vmatprep.subr.bf16.mxu0 %v10686_v53  ;;  %8464 = vmatprep.subr.bf16.mxu1 %v10689_v54  ;;  %v10778_v53 = vld [vmem:[%s11623_s1 + $0x1320] ss:$16 sps:$4 sm:$0xff]   ;;  %v10781_v54 = vld [vmem:[%s11623_s1 + $0x1328] ss:$16 sps:$4 sm:$0xff]  }
 0x4b1   : > { %7698 = vmatpush1.bf16.msra.mxu0 %v10688_v55  ;;  %8466 = vmatpush1.bf16.msra.mxu1 %v10691_v56  ;;  %v10782_v55 = vld [vmem:[%s11623_s1 + $0x1344] ss:$16 sps:$4 sm:$0xff]   ;;  %v10785_v56 = vld [vmem:[%s11623_s1 + $0x134c] ss:$16 sps:$4 sm:$0xff]  }
 0x4b2   : > { %7700 = vmatprep.subr.bf16.mxu0 %v10692_v57  ;;  %8468 = vmatprep.subr.bf16.mxu1 %v10695_v58  ;;  %v10784_v57 = vld [vmem:[%s11623_s1 + $0x1340] ss:$16 sps:$4 sm:$0xff]   ;;  %v10787_v58 = vld [vmem:[%s11623_s1 + $0x1348] ss:$16 sps:$4 sm:$0xff]  }
 0x4b5   : > { %7702 = vmatpush1.bf16.msra.mxu0 %v10694_v59  ;;  %8470 = vmatpush1.bf16.msra.mxu1 %v10697_v34  ;;  %v10788_v59 = vld [vmem:[%s11623_s1 + $0x1364] ss:$16 sps:$4 sm:$0xff]   ;;  %v10791_v34 = vld [vmem:[%s11623_s1 + $0x136c] ss:$16 sps:$4 sm:$0xff]  }
 0x4b6   : > { %7704 = vmatprep.subr.bf16.mxu0 %v10698_v35  ;;  %8472 = vmatprep.subr.bf16.mxu1 %v10701_v36  ;;  %v10790_v35 = vld [vmem:[%s11623_s1 + $0x1360] ss:$16 sps:$4 sm:$0xff]   ;;  %v10793_v36 = vld [vmem:[%s11623_s1 + $0x1368] ss:$16 sps:$4 sm:$0xff]  }
 0x4b9   : > { %7706 = vmatpush1.bf16.msra.mxu0 %v10700_v37  ;;  %8474 = vmatpush1.bf16.msra.mxu1 %v10703_v60  ;;  %v10794_v37 = vld [vmem:[%s11623_s1 + $0x1384] ss:$16 sps:$4 sm:$0xff]   ;;  %v10797_v60 = vld [vmem:[%s11623_s1 + $0x138c] ss:$16 sps:$4 sm:$0xff]  }
 0x4ba   : > { %7708 = vmatprep.subr.bf16.mxu0 %v10704_v61  ;;  %8476 = vmatprep.subr.bf16.mxu1 %v10707_v62  ;;  %v10796_v61 = vld [vmem:[%s11623_s1 + $0x1380] ss:$16 sps:$4 sm:$0xff]   ;;  %v10799_v62 = vld [vmem:[%s11623_s1 + $0x1388] ss:$16 sps:$4 sm:$0xff]  }
 0x4bd   : > { %7710 = vmatpush1.bf16.msra.mxu0 %v10706_v63  ;;  %8478 = vmatpush1.bf16.msra.mxu1 %v10709_v0  ;;  %v10800_v63 = vld [vmem:[%s11623_s1 + $0x13a4] ss:$16 sps:$4 sm:$0xff]   ;;  %v10803_v0 = vld [vmem:[%s11623_s1 + $0x13ac] ss:$16 sps:$4 sm:$0xff]  }
 0x4be   : > { %7712 = vmatprep.subr.bf16.mxu0 %v10710_v1  ;;  %8480 = vmatprep.subr.bf16.mxu1 %v10713_v2  ;;  %v10802_v1 = vld [vmem:[%s11623_s1 + $0x13a0] ss:$16 sps:$4 sm:$0xff]   ;;  %v10805_v2 = vld [vmem:[%s11623_s1 + $0x13a8] ss:$16 sps:$4 sm:$0xff]  }
 0x4c1   : > { %7714 = vmatpush1.bf16.msra.mxu0 %v10712_v3  ;;  %8482 = vmatpush1.bf16.msra.mxu1 %v10715_v4  ;;  %v10806_v3 = vld [vmem:[%s11623_s1 + $0x13c4] ss:$16 sps:$4 sm:$0xff]   ;;  %v10809_v4 = vld [vmem:[%s11623_s1 + $0x13cc] ss:$16 sps:$4 sm:$0xff]  }
 0x4c2   : > { %7716 = vmatprep.subr.bf16.mxu0 %v10716_v5  ;;  %8484 = vmatprep.subr.bf16.mxu1 %v10719_v6  ;;  %v10808_v5 = vld [vmem:[%s11623_s1 + $0x13c0] ss:$16 sps:$4 sm:$0xff]   ;;  %v10811_v6 = vld [vmem:[%s11623_s1 + $0x13c8] ss:$16 sps:$4 sm:$0xff]  }
 0x4c5   : > { %7718 = vmatpush1.bf16.msra.mxu0 %v10718_v7  ;;  %8486 = vmatpush1.bf16.msra.mxu1 %v10721_v9  ;;  %v10812_v7 = vld [vmem:[%s11623_s1 + $0x13e4] ss:$16 sps:$4 sm:$0xff]   ;;  %v10815_v9 = vld [vmem:[%s11623_s1 + $0x13ec] ss:$16 sps:$4 sm:$0xff]  }
 0x4c6   : > { %7720 = vmatprep.subr.bf16.mxu0 %v10722_v10  ;;  %8488 = vmatprep.subr.bf16.mxu1 %v10725_v11  ;;  %v10814_v10 = vld [vmem:[%s11623_s1 + $0x13e0] ss:$16 sps:$4 sm:$0xff]   ;;  %v10817_v11 = vld [vmem:[%s11623_s1 + $0x13e8] ss:$16 sps:$4 sm:$0xff]  }
 0x4c8   : > { %5013 = vmatmul.mubr.f32.vlgmr.msra.gmra.mrb[0].mxu0 %v2046_v19  ;;  %5865 = vmatmul.mubr.f32.vlgmr.msra.gmra.mrb[0].mxu1 %v2046_v19  ;;  %v10820_v19 = vld [vmem:[%s11623_s1 + $0x1400] ss:$16 sps:$4 sm:$0xff]  }
 0x4c9   : > { %7722 = vmatpush1.bf16.msra.mxu0 %v10724_v13  ;;  %8490 = vmatpush1.bf16.msra.mxu1 %v10727_v15  ;;  %v10818_v13 = vld [vmem:[%s11623_s1 + $0x1404] ss:$16 sps:$4 sm:$0xff]   ;;  %v10821_v15 = vld [vmem:[%s11623_s1 + $0x140c] ss:$16 sps:$4 sm:$0xff]  }
 0x4ca   : > { %7724 = vmatprep.subr.bf16.mxu0 %v10728_v20  ;;  %8492 = vmatprep.subr.bf16.mxu1 %v10731_v21  ;;  %v10823_v20 = vld [vmem:[%s11623_s1 + $0x1408] ss:$16 sps:$4 sm:$0xff]   ;;  %v2048_v21 = vld [vmem:[#allocation2 + $0x90] sm:$0xff] }
 0x4cb   : > { %5083 = vmatprep.mubr.f32.mxu0 %v2049_v22  ;;  %5935 = vmatprep.mubr.f32.mxu1 %v2049_v22  ;;  %v10824_v22 = vld [vmem:[%s11623_s1 + $0x1424] ss:$16 sps:$4 sm:$0xff]  }
 0x4cd   : > { %7726 = vmatpush1.bf16.msra.mxu0 %v10730_v12  ;;  %8494 = vmatpush1.bf16.msra.mxu1 %v10733_v23  ;;  %v10827_v12 = vld [vmem:[%s11623_s1 + $0x142c] ss:$16 sps:$4 sm:$0xff]  }
 0x4ce   : > { %7728 = vmatprep.subr.bf16.mxu0 %v10734_v24  ;;  %8496 = vmatprep.subr.bf16.mxu1 %v10737_v25  ;;  %v2051_v23 = vld [vmem:[#allocation2 + $0xa8] sm:$0xff]  ;;  %v10826_v24 = vld [vmem:[%s11623_s1 + $0x1420] ss:$16 sps:$4 sm:$0xff]  }
 0x4cf   : > { %v10829_v25 = vld [vmem:[%s11623_s1 + $0x1428] ss:$16 sps:$4 sm:$0xff]  }
 0x4d1   : > { %7730 = vmatpush1.bf16.msra.mxu0 %v10736_v26  ;;  %8498 = vmatpush1.bf16.msra.mxu1 %v10739_v27  ;;  %v10830_v26 = vld [vmem:[%s11623_s1 + $0x1444] ss:$16 sps:$4 sm:$0xff]   ;;  %v10833_v27 = vld [vmem:[%s11623_s1 + $0x144c] ss:$16 sps:$4 sm:$0xff]  }
 0x4d2   : > { %7732 = vmatprep.subr.bf16.mxu0 %v10740_v28  ;;  %8500 = vmatprep.subr.bf16.mxu1 %v10743_v29  ;;  %v10832_v28 = vld [vmem:[%s11623_s1 + $0x1440] ss:$16 sps:$4 sm:$0xff]   ;;  %v10835_v29 = vld [vmem:[%s11623_s1 + $0x1448] ss:$16 sps:$4 sm:$0xff]  }
 0x4d5   : > { %7734 = vmatpush1.bf16.msra.mxu0 %v10742_v30  ;;  %8502 = vmatpush1.bf16.msra.mxu1 %v10745_v31  ;;  %v10836_v30 = vld [vmem:[%s11623_s1 + $0x1464] ss:$16 sps:$4 sm:$0xff]   ;;  %v10839_v31 = vld [vmem:[%s11623_s1 + $0x146c] ss:$16 sps:$4 sm:$0xff]  }
 0x4d6   : > { %7736 = vmatprep.subr.bf16.mxu0 %v10746_v32  ;;  %8504 = vmatprep.subr.bf16.mxu1 %v10749_v33  ;;  %v10838_v32 = vld [vmem:[%s11623_s1 + $0x1460] ss:$16 sps:$4 sm:$0xff]   ;;  %v10841_v33 = vld [vmem:[%s11623_s1 + $0x1468] ss:$16 sps:$4 sm:$0xff]  }
 0x4d9   : > { %7738 = vmatpush1.bf16.msra.mxu0 %v10748_v38  ;;  %8506 = vmatpush1.bf16.msra.mxu1 %v10751_v39  ;;  %v10842_v38 = vld [vmem:[%s11623_s1 + $0x1484] ss:$16 sps:$4 sm:$0xff]   ;;  %v10845_v39 = vld [vmem:[%s11623_s1 + $0x148c] ss:$16 sps:$4 sm:$0xff]  }
 0x4da   : > { %7740 = vmatprep.subr.bf16.mxu0 %v10752_v40  ;;  %8508 = vmatprep.subr.bf16.mxu1 %v10755_v41  ;;  %v10844_v40 = vld [vmem:[%s11623_s1 + $0x1480] ss:$16 sps:$4 sm:$0xff]   ;;  %v10847_v41 = vld [vmem:[%s11623_s1 + $0x1488] ss:$16 sps:$4 sm:$0xff]  }
 0x4dd   : > { %7742 = vmatpush1.bf16.msra.mxu0 %v10754_v42  ;;  %8510 = vmatpush1.bf16.msra.mxu1 %v10757_v43  ;;  %v10848_v42 = vld [vmem:[%s11623_s1 + $0x14a4] ss:$16 sps:$4 sm:$0xff]   ;;  %v10851_v43 = vld [vmem:[%s11623_s1 + $0x14ac] ss:$16 sps:$4 sm:$0xff]  }
 0x4de   : > { %7744 = vmatprep.subr.bf16.mxu0 %v10758_v44  ;;  %8512 = vmatprep.subr.bf16.mxu1 %v10761_v45  ;;  %v10850_v44 = vld [vmem:[%s11623_s1 + $0x14a0] ss:$16 sps:$4 sm:$0xff]   ;;  %v10853_v45 = vld [vmem:[%s11623_s1 + $0x14a8] ss:$16 sps:$4 sm:$0xff]  }
 0x4e1   : > { %7746 = vmatpush1.bf16.msra.mxu0 %v10760_v46  ;;  %8514 = vmatpush1.bf16.msra.mxu1 %v10763_v47  ;;  %v10854_v46 = vld [vmem:[%s11623_s1 + $0x14c4] ss:$16 sps:$4 sm:$0xff]   ;;  %v10857_v47 = vld [vmem:[%s11623_s1 + $0x14cc] ss:$16 sps:$4 sm:$0xff]  }
 0x4e2   : > { %7748 = vmatprep.subr.bf16.mxu0 %v10764_v8  ;;  %8516 = vmatprep.subr.bf16.mxu1 %v10767_v14  ;;  %v10856_v8 = vld [vmem:[%s11623_s1 + $0x14c0] ss:$16 sps:$4 sm:$0xff]   ;;  %v10859_v14 = vld [vmem:[%s11623_s1 + $0x14c8] ss:$16 sps:$4 sm:$0xff]  }
 0x4e5   : > { %7750 = vmatpush1.bf16.msra.mxu0 %v10766_v16  ;;  %8518 = vmatpush1.bf16.msra.mxu1 %v10769_v17  ;;  %v10860_v16 = vld [vmem:[%s11623_s1 + $0x14e4] ss:$16 sps:$4 sm:$0xff]   ;;  %v10863_v17 = vld [vmem:[%s11623_s1 + $0x14ec] ss:$16 sps:$4 sm:$0xff]  }
 0x4e6   : > { %7752 = vmatprep.subr.bf16.mxu0 %v10770_v18  ;;  %8520 = vmatprep.subr.bf16.mxu1 %v10773_v48  ;;  %v10862_v18 = vld [vmem:[%s11623_s1 + $0x14e0] ss:$16 sps:$4 sm:$0xff]   ;;  %v10865_v48 = vld [vmem:[%s11623_s1 + $0x14e8] ss:$16 sps:$4 sm:$0xff]  }
 0x4e9   : > { %7754 = vmatpush1.bf16.msra.mxu0 %v10772_v49  ;;  %8522 = vmatpush1.bf16.msra.mxu1 %v10775_v50  ;;  %v10866_v49 = vld [vmem:[%s11623_s1 + $0x1504] ss:$16 sps:$4 sm:$0xff]   ;;  %v10869_v50 = vld [vmem:[%s11623_s1 + $0x150c] ss:$16 sps:$4 sm:$0xff]  }
 0x4ea   : > { %7756 = vmatprep.subr.bf16.mxu0 %v10776_v51  ;;  %8524 = vmatprep.subr.bf16.mxu1 %v10779_v52  ;;  %v10868_v51 = vld [vmem:[%s11623_s1 + $0x1500] ss:$16 sps:$4 sm:$0xff]   ;;  %v10871_v52 = vld [vmem:[%s11623_s1 + $0x1508] ss:$16 sps:$4 sm:$0xff]  }
 0x4ed   : > { %7758 = vmatpush1.bf16.msra.mxu0 %v10778_v53  ;;  %8526 = vmatpush1.bf16.msra.mxu1 %v10781_v54  ;;  %v10872_v53 = vld [vmem:[%s11623_s1 + $0x1524] ss:$16 sps:$4 sm:$0xff]   ;;  %v10875_v54 = vld [vmem:[%s11623_s1 + $0x152c] ss:$16 sps:$4 sm:$0xff]  }
 0x4ee   : > { %7760 = vmatprep.subr.bf16.mxu0 %v10782_v55  ;;  %8528 = vmatprep.subr.bf16.mxu1 %v10785_v56  ;;  %v10874_v55 = vld [vmem:[%s11623_s1 + $0x1520] ss:$16 sps:$4 sm:$0xff]   ;;  %v10877_v56 = vld [vmem:[%s11623_s1 + $0x1528] ss:$16 sps:$4 sm:$0xff]  }
 0x4f1   : > { %7762 = vmatpush1.bf16.msra.mxu0 %v10784_v57  ;;  %8530 = vmatpush1.bf16.msra.mxu1 %v10787_v58  ;;  %v10878_v57 = vld [vmem:[%s11623_s1 + $0x1544] ss:$16 sps:$4 sm:$0xff]   ;;  %v10881_v58 = vld [vmem:[%s11623_s1 + $0x154c] ss:$16 sps:$4 sm:$0xff]  }
 0x4f2   : > { %7764 = vmatprep.subr.bf16.mxu0 %v10788_v59  ;;  %8532 = vmatprep.subr.bf16.mxu1 %v10791_v34  ;;  %v10880_v59 = vld [vmem:[%s11623_s1 + $0x1540] ss:$16 sps:$4 sm:$0xff]   ;;  %v10883_v34 = vld [vmem:[%s11623_s1 + $0x1548] ss:$16 sps:$4 sm:$0xff]  }
 0x4f5   : > { %7766 = vmatpush1.bf16.msra.mxu0 %v10790_v35  ;;  %8534 = vmatpush1.bf16.msra.mxu1 %v10793_v36  ;;  %v10884_v35 = vld [vmem:[%s11623_s1 + $0x1564] ss:$16 sps:$4 sm:$0xff]   ;;  %v10887_v36 = vld [vmem:[%s11623_s1 + $0x156c] ss:$16 sps:$4 sm:$0xff]  }
 0x4f6   : > { %7768 = vmatprep.subr.bf16.mxu0 %v10794_v37  ;;  %8536 = vmatprep.subr.bf16.mxu1 %v10797_v60  ;;  %v10886_v37 = vld [vmem:[%s11623_s1 + $0x1560] ss:$16 sps:$4 sm:$0xff]   ;;  %v10889_v60 = vld [vmem:[%s11623_s1 + $0x1568] ss:$16 sps:$4 sm:$0xff]  }
 0x4f9   : > { %7770 = vmatpush1.bf16.msra.mxu0 %v10796_v61  ;;  %8538 = vmatpush1.bf16.msra.mxu1 %v10799_v62  ;;  %v10890_v61 = vld [vmem:[%s11623_s1 + $0x1584] ss:$16 sps:$4 sm:$0xff]   ;;  %v10893_v62 = vld [vmem:[%s11623_s1 + $0x158c] ss:$16 sps:$4 sm:$0xff]  }
 0x4fa   : > { %7772 = vmatprep.subr.bf16.mxu0 %v10800_v63  ;;  %8540 = vmatprep.subr.bf16.mxu1 %v10803_v0  ;;  %v10892_v63 = vld [vmem:[%s11623_s1 + $0x1580] ss:$16 sps:$4 sm:$0xff]   ;;  %v10895_v0 = vld [vmem:[%s11623_s1 + $0x1588] ss:$16 sps:$4 sm:$0xff]  }
 0x4fd   : > { %7774 = vmatpush1.bf16.msra.mxu0 %v10802_v1  ;;  %8542 = vmatpush1.bf16.msra.mxu1 %v10805_v2  ;;  %v10896_v1 = vld [vmem:[%s11623_s1 + $0x15a4] ss:$16 sps:$4 sm:$0xff]   ;;  %v10899_v2 = vld [vmem:[%s11623_s1 + $0x15ac] ss:$16 sps:$4 sm:$0xff]  }
 0x4fe   : > { %7776 = vmatprep.subr.bf16.mxu0 %v10806_v3  ;;  %8544 = vmatprep.subr.bf16.mxu1 %v10809_v4  ;;  %v10898_v3 = vld [vmem:[%s11623_s1 + $0x15a0] ss:$16 sps:$4 sm:$0xff]   ;;  %v10901_v4 = vld [vmem:[%s11623_s1 + $0x15a8] ss:$16 sps:$4 sm:$0xff]  }
 0x501   : > { %7778 = vmatpush1.bf16.msra.mxu0 %v10808_v5  ;;  %8546 = vmatpush1.bf16.msra.mxu1 %v10811_v6  ;;  %v10902_v5 = vld [vmem:[%s11623_s1 + $0x15c4] ss:$16 sps:$4 sm:$0xff]   ;;  %v10905_v6 = vld [vmem:[%s11623_s1 + $0x15cc] ss:$16 sps:$4 sm:$0xff]  }
 0x502   : > { %7780 = vmatprep.subr.bf16.mxu0 %v10812_v7  ;;  %8548 = vmatprep.subr.bf16.mxu1 %v10815_v9  ;;  %v10904_v7 = vld [vmem:[%s11623_s1 + $0x15c0] ss:$16 sps:$4 sm:$0xff]   ;;  %v10907_v9 = vld [vmem:[%s11623_s1 + $0x15c8] ss:$16 sps:$4 sm:$0xff]  }
 0x505   : > { %7782 = vmatpush1.bf16.msra.mxu0 %v10814_v10  ;;  %8550 = vmatpush1.bf16.msra.mxu1 %v10817_v11  ;;  %v10908_v10 = vld [vmem:[%s11623_s1 + $0x15e4] ss:$16 sps:$4 sm:$0xff]   ;;  %v10911_v11 = vld [vmem:[%s11623_s1 + $0x15ec] ss:$16 sps:$4 sm:$0xff]  }
 0x506   : > { %7784 = vmatprep.subr.bf16.mxu0 %v10818_v13  ;;  %8552 = vmatprep.subr.bf16.mxu1 %v10821_v15  ;;  %v10910_v13 = vld [vmem:[%s11623_s1 + $0x15e0] ss:$16 sps:$4 sm:$0xff]   ;;  %v10913_v15 = vld [vmem:[%s11623_s1 + $0x15e8] ss:$16 sps:$4 sm:$0xff]  }
 0x508   : > { %5084 = vmatmul.mubr.f32.vlgmr.msra.gmra.mrb[0].mxu0 %v2048_v21  ;;  %5936 = vmatmul.mubr.f32.vlgmr.msra.gmra.mrb[0].mxu1 %v2048_v21  ;;  %v10916_v21 = vld [vmem:[%s11623_s1 + $0x1600] ss:$16 sps:$4 sm:$0xff]  }
 0x509   : > { %7786 = vmatpush1.bf16.msra.mxu0 %v10820_v19  ;;  %8554 = vmatpush1.bf16.msra.mxu1 %v10823_v20  ;;  %v10914_v19 = vld [vmem:[%s11623_s1 + $0x1604] ss:$16 sps:$4 sm:$0xff]   ;;  %v10917_v20 = vld [vmem:[%s11623_s1 + $0x160c] ss:$16 sps:$4 sm:$0xff]  }
 0x50a   : > { %7788 = vmatprep.subr.bf16.mxu0 %v10824_v22  ;;  %8556 = vmatprep.subr.bf16.mxu1 %v10827_v12  ;;  %v10919_v22 = vld [vmem:[%s11623_s1 + $0x1608] ss:$16 sps:$4 sm:$0xff]   ;;  %v2050_v12 = vld [vmem:[#allocation2 + $0xa0] sm:$0xff] }
 0x50b   : > { %5154 = vmatprep.mubr.f32.mxu0 %v2051_v23  ;;  %6006 = vmatprep.mubr.f32.mxu1 %v2051_v23  ;;  %v10920_v23 = vld [vmem:[%s11623_s1 + $0x1624] ss:$16 sps:$4 sm:$0xff]  }
 0x50d   : > { %7790 = vmatpush1.bf16.msra.mxu0 %v10826_v24  ;;  %8558 = vmatpush1.bf16.msra.mxu1 %v10829_v25  ;;  %v10923_v24 = vld [vmem:[%s11623_s1 + $0x162c] ss:$16 sps:$4 sm:$0xff]  }
 0x50e   : > { %7792 = vmatprep.subr.bf16.mxu0 %v10830_v26  ;;  %8560 = vmatprep.subr.bf16.mxu1 %v10833_v27  ;;  %v2053_v25 = vld [vmem:[#allocation2 + $0xb8] sm:$0xff]  ;;  %v10922_v26 = vld [vmem:[%s11623_s1 + $0x1620] ss:$16 sps:$4 sm:$0xff]  }
 0x50f   : > { %v10925_v27 = vld [vmem:[%s11623_s1 + $0x1628] ss:$16 sps:$4 sm:$0xff]  }
 0x511   : > { %7794 = vmatpush1.bf16.msra.mxu0 %v10832_v28  ;;  %8562 = vmatpush1.bf16.msra.mxu1 %v10835_v29  ;;  %v10926_v28 = vld [vmem:[%s11623_s1 + $0x1644] ss:$16 sps:$4 sm:$0xff]   ;;  %v10929_v29 = vld [vmem:[%s11623_s1 + $0x164c] ss:$16 sps:$4 sm:$0xff]  }
 0x512   : > { %7796 = vmatprep.subr.bf16.mxu0 %v10836_v30  ;;  %8564 = vmatprep.subr.bf16.mxu1 %v10839_v31  ;;  %v10928_v30 = vld [vmem:[%s11623_s1 + $0x1640] ss:$16 sps:$4 sm:$0xff]   ;;  %v10931_v31 = vld [vmem:[%s11623_s1 + $0x1648] ss:$16 sps:$4 sm:$0xff]  }
 0x515   : > { %7798 = vmatpush1.bf16.msra.mxu0 %v10838_v32  ;;  %8566 = vmatpush1.bf16.msra.mxu1 %v10841_v33  ;;  %v10932_v32 = vld [vmem:[%s11623_s1 + $0x1664] ss:$16 sps:$4 sm:$0xff]   ;;  %v10935_v33 = vld [vmem:[%s11623_s1 + $0x166c] ss:$16 sps:$4 sm:$0xff]  }
 0x516   : > { %7800 = vmatprep.subr.bf16.mxu0 %v10842_v38  ;;  %8568 = vmatprep.subr.bf16.mxu1 %v10845_v39  ;;  %v10934_v38 = vld [vmem:[%s11623_s1 + $0x1660] ss:$16 sps:$4 sm:$0xff]   ;;  %v10937_v39 = vld [vmem:[%s11623_s1 + $0x1668] ss:$16 sps:$4 sm:$0xff]  }
 0x519   : > { %7802 = vmatpush1.bf16.msra.mxu0 %v10844_v40  ;;  %8570 = vmatpush1.bf16.msra.mxu1 %v10847_v41  ;;  %v10938_v40 = vld [vmem:[%s11623_s1 + $0x1684] ss:$16 sps:$4 sm:$0xff]   ;;  %v10941_v41 = vld [vmem:[%s11623_s1 + $0x168c] ss:$16 sps:$4 sm:$0xff]  }
 0x51a   : > { %7804 = vmatprep.subr.bf16.mxu0 %v10848_v42  ;;  %8572 = vmatprep.subr.bf16.mxu1 %v10851_v43  ;;  %v10940_v42 = vld [vmem:[%s11623_s1 + $0x1680] ss:$16 sps:$4 sm:$0xff]   ;;  %v10943_v43 = vld [vmem:[%s11623_s1 + $0x1688] ss:$16 sps:$4 sm:$0xff]  }
 0x51d   : > { %7806 = vmatpush1.bf16.msra.mxu0 %v10850_v44  ;;  %8574 = vmatpush1.bf16.msra.mxu1 %v10853_v45  ;;  %v10944_v44 = vld [vmem:[%s11623_s1 + $0x16a4] ss:$16 sps:$4 sm:$0xff]   ;;  %v10947_v45 = vld [vmem:[%s11623_s1 + $0x16ac] ss:$16 sps:$4 sm:$0xff]  }
 0x51e   : > { %7808 = vmatprep.subr.bf16.mxu0 %v10854_v46  ;;  %8576 = vmatprep.subr.bf16.mxu1 %v10857_v47  ;;  %v10946_v46 = vld [vmem:[%s11623_s1 + $0x16a0] ss:$16 sps:$4 sm:$0xff]   ;;  %v10949_v47 = vld [vmem:[%s11623_s1 + $0x16a8] ss:$16 sps:$4 sm:$0xff]  }
 0x521   : > { %7810 = vmatpush1.bf16.msra.mxu0 %v10856_v8  ;;  %8578 = vmatpush1.bf16.msra.mxu1 %v10859_v14  ;;  %v10950_v8 = vld [vmem:[%s11623_s1 + $0x16c4] ss:$16 sps:$4 sm:$0xff]   ;;  %v10953_v14 = vld [vmem:[%s11623_s1 + $0x16cc] ss:$16 sps:$4 sm:$0xff]  }
 0x522   : > { %7812 = vmatprep.subr.bf16.mxu0 %v10860_v16  ;;  %8580 = vmatprep.subr.bf16.mxu1 %v10863_v17  ;;  %v10952_v16 = vld [vmem:[%s11623_s1 + $0x16c0] ss:$16 sps:$4 sm:$0xff]   ;;  %v10955_v17 = vld [vmem:[%s11623_s1 + $0x16c8] ss:$16 sps:$4 sm:$0xff]  }
 0x525   : > { %7814 = vmatpush1.bf16.msra.mxu0 %v10862_v18  ;;  %8582 = vmatpush1.bf16.msra.mxu1 %v10865_v48  ;;  %v10956_v18 = vld [vmem:[%s11623_s1 + $0x16e4] ss:$16 sps:$4 sm:$0xff]   ;;  %v10959_v48 = vld [vmem:[%s11623_s1 + $0x16ec] ss:$16 sps:$4 sm:$0xff]  }
 0x526   : > { %7816 = vmatprep.subr.bf16.mxu0 %v10866_v49  ;;  %8584 = vmatprep.subr.bf16.mxu1 %v10869_v50  ;;  %v10958_v49 = vld [vmem:[%s11623_s1 + $0x16e0] ss:$16 sps:$4 sm:$0xff]   ;;  %v10961_v50 = vld [vmem:[%s11623_s1 + $0x16e8] ss:$16 sps:$4 sm:$0xff]  }
 0x529   : > { %7818 = vmatpush1.bf16.msra.mxu0 %v10868_v51  ;;  %8586 = vmatpush1.bf16.msra.mxu1 %v10871_v52  ;;  %v10962_v51 = vld [vmem:[%s11623_s1 + $0x1704] ss:$16 sps:$4 sm:$0xff]   ;;  %v10965_v52 = vld [vmem:[%s11623_s1 + $0x170c] ss:$16 sps:$4 sm:$0xff]  }
 0x52a   : > { %7820 = vmatprep.subr.bf16.mxu0 %v10872_v53  ;;  %8588 = vmatprep.subr.bf16.mxu1 %v10875_v54  ;;  %v10964_v53 = vld [vmem:[%s11623_s1 + $0x1700] ss:$16 sps:$4 sm:$0xff]   ;;  %v10967_v54 = vld [vmem:[%s11623_s1 + $0x1708] ss:$16 sps:$4 sm:$0xff]  }
 0x52d   : > { %7822 = vmatpush1.bf16.msra.mxu0 %v10874_v55  ;;  %8590 = vmatpush1.bf16.msra.mxu1 %v10877_v56  ;;  %v10968_v55 = vld [vmem:[%s11623_s1 + $0x1724] ss:$16 sps:$4 sm:$0xff]   ;;  %v10971_v56 = vld [vmem:[%s11623_s1 + $0x172c] ss:$16 sps:$4 sm:$0xff]  }
 0x52e   : > { %7824 = vmatprep.subr.bf16.mxu0 %v10878_v57  ;;  %8592 = vmatprep.subr.bf16.mxu1 %v10881_v58  ;;  %v10970_v57 = vld [vmem:[%s11623_s1 + $0x1720] ss:$16 sps:$4 sm:$0xff]   ;;  %v10973_v58 = vld [vmem:[%s11623_s1 + $0x1728] ss:$16 sps:$4 sm:$0xff]  }
 0x531   : > { %7826 = vmatpush1.bf16.msra.mxu0 %v10880_v59  ;;  %8594 = vmatpush1.bf16.msra.mxu1 %v10883_v34  ;;  %v10974_v59 = vld [vmem:[%s11623_s1 + $0x1744] ss:$16 sps:$4 sm:$0xff]   ;;  %v10977_v34 = vld [vmem:[%s11623_s1 + $0x174c] ss:$16 sps:$4 sm:$0xff]  }
 0x532   : > { %7828 = vmatprep.subr.bf16.mxu0 %v10884_v35  ;;  %8596 = vmatprep.subr.bf16.mxu1 %v10887_v36  ;;  %v10976_v35 = vld [vmem:[%s11623_s1 + $0x1740] ss:$16 sps:$4 sm:$0xff]   ;;  %v10979_v36 = vld [vmem:[%s11623_s1 + $0x1748] ss:$16 sps:$4 sm:$0xff]  }
 0x535   : > { %7830 = vmatpush1.bf16.msra.mxu0 %v10886_v37  ;;  %8598 = vmatpush1.bf16.msra.mxu1 %v10889_v60  ;;  %v10980_v37 = vld [vmem:[%s11623_s1 + $0x1764] ss:$16 sps:$4 sm:$0xff]   ;;  %v10983_v60 = vld [vmem:[%s11623_s1 + $0x176c] ss:$16 sps:$4 sm:$0xff]  }
 0x536   : > { %7832 = vmatprep.subr.bf16.mxu0 %v10890_v61  ;;  %8600 = vmatprep.subr.bf16.mxu1 %v10893_v62  ;;  %v10982_v61 = vld [vmem:[%s11623_s1 + $0x1760] ss:$16 sps:$4 sm:$0xff]   ;;  %v10985_v62 = vld [vmem:[%s11623_s1 + $0x1768] ss:$16 sps:$4 sm:$0xff]  }
 0x539   : > { %7834 = vmatpush1.bf16.msra.mxu0 %v10892_v63  ;;  %8602 = vmatpush1.bf16.msra.mxu1 %v10895_v0  ;;  %v10986_v63 = vld [vmem:[%s11623_s1 + $0x1784] ss:$16 sps:$4 sm:$0xff]   ;;  %v10989_v0 = vld [vmem:[%s11623_s1 + $0x178c] ss:$16 sps:$4 sm:$0xff]  }
 0x53a   : > { %7836 = vmatprep.subr.bf16.mxu0 %v10896_v1  ;;  %8604 = vmatprep.subr.bf16.mxu1 %v10899_v2  ;;  %v10988_v1 = vld [vmem:[%s11623_s1 + $0x1780] ss:$16 sps:$4 sm:$0xff]   ;;  %v10991_v2 = vld [vmem:[%s11623_s1 + $0x1788] ss:$16 sps:$4 sm:$0xff]  }
 0x53d   : > { %7838 = vmatpush1.bf16.msra.mxu0 %v10898_v3  ;;  %8606 = vmatpush1.bf16.msra.mxu1 %v10901_v4  ;;  %v10992_v3 = vld [vmem:[%s11623_s1 + $0x17a4] ss:$16 sps:$4 sm:$0xff]   ;;  %v10995_v4 = vld [vmem:[%s11623_s1 + $0x17ac] ss:$16 sps:$4 sm:$0xff]  }
 0x53e   : > { %7840 = vmatprep.subr.bf16.mxu0 %v10902_v5  ;;  %8608 = vmatprep.subr.bf16.mxu1 %v10905_v6  ;;  %v10994_v5 = vld [vmem:[%s11623_s1 + $0x17a0] ss:$16 sps:$4 sm:$0xff]   ;;  %v10997_v6 = vld [vmem:[%s11623_s1 + $0x17a8] ss:$16 sps:$4 sm:$0xff]  }
 0x541   : > { %7842 = vmatpush1.bf16.msra.mxu0 %v10904_v7  ;;  %8610 = vmatpush1.bf16.msra.mxu1 %v10907_v9  ;;  %v10998_v7 = vld [vmem:[%s11623_s1 + $0x17c4] ss:$16 sps:$4 sm:$0xff]   ;;  %v11001_v9 = vld [vmem:[%s11623_s1 + $0x17cc] ss:$16 sps:$4 sm:$0xff]  }
 0x542   : > { %7844 = vmatprep.subr.bf16.mxu0 %v10908_v10  ;;  %8612 = vmatprep.subr.bf16.mxu1 %v10911_v11  ;;  %v11000_v10 = vld [vmem:[%s11623_s1 + $0x17c0] ss:$16 sps:$4 sm:$0xff]   ;;  %v11003_v11 = vld [vmem:[%s11623_s1 + $0x17c8] ss:$16 sps:$4 sm:$0xff]  }
 0x545   : > { %7846 = vmatpush1.bf16.msra.mxu0 %v10910_v13  ;;  %8614 = vmatpush1.bf16.msra.mxu1 %v10913_v15  ;;  %v11004_v13 = vld [vmem:[%s11623_s1 + $0x17e4] ss:$16 sps:$4 sm:$0xff]   ;;  %v11007_v15 = vld [vmem:[%s11623_s1 + $0x17ec] ss:$16 sps:$4 sm:$0xff]  }
 0x546   : > { %7848 = vmatprep.subr.bf16.mxu0 %v10914_v19  ;;  %8616 = vmatprep.subr.bf16.mxu1 %v10917_v20  ;;  %v11006_v19 = vld [vmem:[%s11623_s1 + $0x17e0] ss:$16 sps:$4 sm:$0xff]   ;;  %v11009_v20 = vld [vmem:[%s11623_s1 + $0x17e8] ss:$16 sps:$4 sm:$0xff]  }
 0x548   : > { %5155 = vmatmul.mubr.f32.vlgmr.msra.gmra.mrb[0].mxu0 %v2050_v12  ;;  %6007 = vmatmul.mubr.f32.vlgmr.msra.gmra.mrb[0].mxu1 %v2050_v12  ;;  %v2052_v12 = vld [vmem:[#allocation2 + $0xb0] sm:$0xff] }
 0x549   : > { %7850 = vmatpush1.bf16.msra.mxu0 %v10916_v21  ;;  %8618 = vmatpush1.bf16.msra.mxu1 %v10919_v22  ;;  %v6665_v21 = vld [vmem:[%s11631_s16 + $0x40] sm:$0xff]  }
 0x54a   : > { %7852 = vmatprep.subr.bf16.mxu0 %v10920_v23  ;;  %8620 = vmatprep.subr.bf16.mxu1 %v10923_v24  ;;  %v6681_v22 = vld [vmem:[%s11631_s16 + $0xc0] sm:$0xff]  }
 0x54b   : > { %5225 = vmatprep.mubr.f32.mxu0 %v2053_v25  ;;  %6077 = vmatprep.mubr.f32.mxu1 %v2053_v25  ;;  %v6531_v23 = vld [vmem:[%s11631_s16] sm:$0xff]   ;;  %v6666_v25 = vld [vmem:[%s11631_s16 + $0x48] sm:$0xff]  }
 0x54c   : > { %v6673_v24 = vld [vmem:[%s11631_s16 + $0x80] sm:$0xff]  }
 0x54d   : > { %7854 = vmatpush1.bf16.msra.mxu0 %v10922_v26  ;;  %8622 = vmatpush1.bf16.msra.mxu1 %v10925_v27  ;;  %v6682_v26 = vld [vmem:[%s11631_s16 + $0xc8] sm:$0xff]  }
 0x54e   : > { %7856 = vmatprep.subr.bf16.mxu0 %v10926_v28  ;;  %8624 = vmatprep.subr.bf16.mxu1 %v10929_v29  ;;  %v6658_v27 = vld [vmem:[%s11631_s16 + $0x8] sm:$0xff]   ;;  %v6667_v29 = vld [vmem:[%s11631_s16 + $0x50] sm:$0xff]  }
 0x54f   : > { %v6674_v28 = vld [vmem:[%s11631_s16 + $0x88] sm:$0xff]  }
 0x551   : > { %7858 = vmatpush1.bf16.msra.mxu0 %v10928_v30  ;;  %8626 = vmatpush1.bf16.msra.mxu1 %v10931_v31  ;;  %v6683_v30 = vld [vmem:[%s11631_s16 + $0xd0] sm:$0xff]  }
 0x552   : > { %7860 = vmatprep.subr.bf16.mxu0 %v10932_v32  ;;  %8628 = vmatprep.subr.bf16.mxu1 %v10935_v33  ;;  %v6659_v31 = vld [vmem:[%s11631_s16 + $0x10] sm:$0xff]   ;;  %v6668_v33 = vld [vmem:[%s11631_s16 + $0x58] sm:$0xff]  }
 0x553   : > { %v6675_v32 = vld [vmem:[%s11631_s16 + $0x90] sm:$0xff]  }
 0x555   : > { %7862 = vmatpush1.bf16.msra.mxu0 %v10934_v38  ;;  %8630 = vmatpush1.bf16.msra.mxu1 %v10937_v39  ;;  %v6684_v38 = vld [vmem:[%s11631_s16 + $0xd8] sm:$0xff]  }
 0x556   : > { %7864 = vmatprep.subr.bf16.mxu0 %v10938_v40  ;;  %8632 = vmatprep.subr.bf16.mxu1 %v10941_v41  ;;  %v6660_v39 = vld [vmem:[%s11631_s16 + $0x18] sm:$0xff]   ;;  %v6669_v41 = vld [vmem:[%s11631_s16 + $0x60] sm:$0xff]  }
 0x557   : > { %v6676_v40 = vld [vmem:[%s11631_s16 + $0x98] sm:$0xff]  }
 0x559   : > { %7866 = vmatpush1.bf16.msra.mxu0 %v10940_v42  ;;  %8634 = vmatpush1.bf16.msra.mxu1 %v10943_v43  ;;  %v6685_v42 = vld [vmem:[%s11631_s16 + $0xe0] sm:$0xff]  }
 0x55a   : > { %7868 = vmatprep.subr.bf16.mxu0 %v10944_v44  ;;  %8636 = vmatprep.subr.bf16.mxu1 %v10947_v45  ;;  %v6661_v43 = vld [vmem:[%s11631_s16 + $0x20] sm:$0xff]   ;;  %v6670_v45 = vld [vmem:[%s11631_s16 + $0x68] sm:$0xff]  }
 0x55b   : > { %v6677_v44 = vld [vmem:[%s11631_s16 + $0xa0] sm:$0xff]  }
 0x55d   : > { %7870 = vmatpush1.bf16.msra.mxu0 %v10946_v46  ;;  %8638 = vmatpush1.bf16.msra.mxu1 %v10949_v47  ;;  %v6686_v46 = vld [vmem:[%s11631_s16 + $0xe8] sm:$0xff]  }
 0x55e   : > { %7872 = vmatprep.subr.bf16.mxu0 %v10950_v8  ;;  %8640 = vmatprep.subr.bf16.mxu1 %v10953_v14  ;;  %v6662_v47 = vld [vmem:[%s11631_s16 + $0x28] sm:$0xff]   ;;  %v6671_v14 = vld [vmem:[%s11631_s16 + $0x70] sm:$0xff]  }
 0x55f   : > { %v6678_v8 = vld [vmem:[%s11631_s16 + $0xa8] sm:$0xff]  }
 0x561   : > { %7874 = vmatpush1.bf16.msra.mxu0 %v10952_v16  ;;  %8642 = vmatpush1.bf16.msra.mxu1 %v10955_v17  ;;  %v6687_v16 = vld [vmem:[%s11631_s16 + $0xf0] sm:$0xff]  }
 0x562   : > { %7876 = vmatprep.subr.bf16.mxu0 %v10956_v18  ;;  %8644 = vmatprep.subr.bf16.mxu1 %v10959_v48  ;;  %v6663_v17 = vld [vmem:[%s11631_s16 + $0x30] sm:$0xff]   ;;  %v6672_v48 = vld [vmem:[%s11631_s16 + $0x78] sm:$0xff]  }
 0x563   : > { %v6679_v18 = vld [vmem:[%s11631_s16 + $0xb0] sm:$0xff]  }
 0x565   : > { %7878 = vmatpush1.bf16.msra.mxu0 %v10958_v49  ;;  %8646 = vmatpush1.bf16.msra.mxu1 %v10961_v50  ;;  %v6688_v49 = vld [vmem:[%s11631_s16 + $0xf8] sm:$0xff]  }
 0x566   : > { %7880 = vmatprep.subr.bf16.mxu0 %v10962_v51  ;;  %8648 = vmatprep.subr.bf16.mxu1 %v10965_v52  ;;  %v6664_v50 = vld [vmem:[%s11631_s16 + $0x38] sm:$0xff]   ;;  %v4360_v52 = vlaneseq }
 0x567   : > { %v6680_v51 = vld [vmem:[%s11631_s16 + $0xb8] sm:$0xff]  }
 0x569   : > { %7882 = vmatpush1.bf16.msra.mxu0 %v10964_v53  ;;  %8650 = vmatpush1.bf16.msra.mxu1 %v10967_v54  ;;  %v4361_v53 = vshrl.u32 %v4360_v52, 7 }
 0x56a   : > { %7884 = vmatprep.subr.bf16.mxu0 %v10968_v55  ;;  %8652 = vmatprep.subr.bf16.mxu1 %v10971_v56  ;;  %v4358_v56 = vld [vmem:[%s11629_s24] sm:$0xf] }
 0x56b   : > { %v4362_v54 = vsub.s32 0, %v4361_v53  ;;  %v4370_v55 = vsub.s32 2, %v4361_v53 }
 0x56d   : > { %7886 = vmatpush1.bf16.msra.mxu0 %v10970_v57  ;;  %8654 = vmatpush1.bf16.msra.mxu1 %v10973_v58  ;;  %v4366_v57 = vsub.s32 1, %v4361_v53  ;;  %v4374_v58 = vsub.s32 3, %v4361_v53 }
 0x56e   : > { %7888 = vmatprep.subr.bf16.mxu0 %v10974_v59  ;;  %8656 = vmatprep.subr.bf16.mxu1 %v10977_v34  ;;  %v4363_v59 = vrot.slane %v4358_v56, %v4362_v54  ;;  %v4371_v34 = vrot.slane %v4358_v56, %v4370_v55 }
 0x571   : > { %7890 = vmatpush1.bf16.msra.mxu0 %v10976_v35  ;;  %8658 = vmatpush1.bf16.msra.mxu1 %v10979_v36  ;;  %v4367_v35 = vrot.slane %v4358_v56, %v4366_v57  ;;  %v4375_v36 = vrot.slane %v4358_v56, %v4374_v58 }
 0x572   : > { %7892 = vmatprep.subr.bf16.mxu0 %v10980_v37  ;;  %8660 = vmatprep.subr.bf16.mxu1 %v10983_v60 }
 0x575   : > { %7894 = vmatpush1.bf16.msra.mxu0 %v10982_v61  ;;  %8662 = vmatpush1.bf16.msra.mxu1 %v10985_v62 }
 0x576   : > { %7896 = vmatprep.subr.bf16.mxu0 %v10986_v63  ;;  %8664 = vmatprep.subr.bf16.mxu1 %v10989_v0 }
 0x579   : > { %7898 = vmatpush1.bf16.msra.mxu0 %v10988_v1  ;;  %8666 = vmatpush1.bf16.msra.mxu1 %v10991_v2 }
 0x57a   : > { %7900 = vmatprep.subr.bf16.mxu0 %v10992_v3  ;;  %8668 = vmatprep.subr.bf16.mxu1 %v10995_v4 }
 0x57d   : > { %7902 = vmatpush1.bf16.msra.mxu0 %v10994_v5  ;;  %8670 = vmatpush1.bf16.msra.mxu1 %v10997_v6 }
 0x57e   : > { %7904 = vmatprep.subr.bf16.mxu0 %v10998_v7  ;;  %8672 = vmatprep.subr.bf16.mxu1 %v11001_v9 }
 0x581   : > { %7906 = vmatpush1.bf16.msra.mxu0 %v11000_v10  ;;  %8674 = vmatpush1.bf16.msra.mxu1 %v11003_v11 }
 0x582   : > { %7908 = vmatprep.subr.bf16.mxu0 %v11004_v13  ;;  %8676 = vmatprep.subr.bf16.mxu1 %v11007_v15 }
 0x585   : > { %7910 = vmatpush1.bf16.msra.mxu0 %v11006_v19  ;;  %8678 = vmatpush1.bf16.msra.mxu1 %v11009_v20  ;;  %v6088_v19 = vld [vmem:[#allocation15] sm:$0xff] }
 0x586   : > { %8680 = vmatprep.subr.bf16.mxu0 %v6665_v21  ;;  %8712 = vmatprep.subr.bf16.mxu1 %v6681_v22 }
 0x588   : > { %5226 = vmatmul.mubr.f32.vlgmr.msra.gmra.mrb[0].mxu0 %v2052_v12  ;;  %6078 = vmatmul.mubr.f32.vlgmr.msra.gmra.mrb[0].mxu1 %v2052_v12 }
 0x589   : > { %8682 = vmatpush3.bf16.msra.mxu0 %v6531_v23  ;;  %8714 = vmatpush3.bf16.msra.mxu1 %v6673_v24 }
 0x58a   : > { %8684 = vmatprep.subr.bf16.mxu0 %v6666_v25  ;;  %8716 = vmatprep.subr.bf16.mxu1 %v6682_v26 }
 0x58d   : > { %8686 = vmatpush3.bf16.msra.mxu0 %v6658_v27  ;;  %8718 = vmatpush3.bf16.msra.mxu1 %v6674_v28 }
 0x58e   : > { %8688 = vmatprep.subr.bf16.mxu0 %v6667_v29  ;;  %8720 = vmatprep.subr.bf16.mxu1 %v6683_v30 }
 0x591   : > { %8690 = vmatpush3.bf16.msra.mxu0 %v6659_v31  ;;  %8722 = vmatpush3.bf16.msra.mxu1 %v6675_v32 }
 0x592   : > { %8692 = vmatprep.subr.bf16.mxu0 %v6668_v33  ;;  %8724 = vmatprep.subr.bf16.mxu1 %v6684_v38 }
 0x595   : > { %8694 = vmatpush3.bf16.msra.mxu0 %v6660_v39  ;;  %8726 = vmatpush3.bf16.msra.mxu1 %v6676_v40 }
 0x596   : > { %8696 = vmatprep.subr.bf16.mxu0 %v6669_v41  ;;  %8728 = vmatprep.subr.bf16.mxu1 %v6685_v42 }
 0x599   : > { %8698 = vmatpush3.bf16.msra.mxu0 %v6661_v43  ;;  %8730 = vmatpush3.bf16.msra.mxu1 %v6677_v44 }
 0x59a   : > { %8700 = vmatprep.subr.bf16.mxu0 %v6670_v45  ;;  %8732 = vmatprep.subr.bf16.mxu1 %v6686_v46 }
 0x59d   : > { %8702 = vmatpush3.bf16.msra.mxu0 %v6662_v47  ;;  %8734 = vmatpush3.bf16.msra.mxu1 %v6678_v8 }
 0x59e   : > { %8704 = vmatprep.subr.bf16.mxu0 %v6671_v14  ;;  %8736 = vmatprep.subr.bf16.mxu1 %v6687_v16 }
 0x5a1   : > { %8706 = vmatpush3.bf16.msra.mxu0 %v6663_v17  ;;  %8738 = vmatpush3.bf16.msra.mxu1 %v6679_v18 }
 0x5a2   : > { %8708 = vmatprep.subr.bf16.mxu0 %v6672_v48  ;;  %8740 = vmatprep.subr.bf16.mxu1 %v6688_v49 }
 0x5a5   : > { %8710 = vmatpush3.bf16.msra.mxu0 %v6664_v50  ;;  %8742 = vmatpush3.bf16.msra.mxu1 %v6680_v51 }
 0x65b   : > { %v5227_v37 = vpop.f32.mrb[0].mxu0  ;;  %v6079_v60 = vpop.f32.mrb[0].mxu1 }
 0x65c   : > { %v8743_v61 = vadd.f32 %v5227_v37, %v4363_v59  ;;  %v8745_v62 = vadd.f32 %v6079_v60, %v4371_v34  ;;  %v5229_v63 = vpop.f32.mrb[1].mxu0  ;;  %v6081_v0 = vpop.f32.mrb[1].mxu1 }
 0x65d   : > { %v8744_v1 = vadd.f32 %v5229_v63, %v4367_v35  ;;  %v8746_v2 = vadd.f32 %v6081_v0, %v4375_v36 }
 0x65e   : > { %v6084_v5 = vmax.f32 %v8743_v61, 0.0  ;;  %v6086_v6 = vmax.f32 %v8745_v62, 0.0 }
 0x65f   : > { %v6085_v3 = vmax.f32 %v8744_v1, 0.0  ;;  %v6087_v4 = vmax.f32 %v8746_v2, 0.0 }
 0x661   : > { %6281 = vmatprep.mubr.f32.mxu0 %v6085_v3  ;;  %6351 = vmatprep.mubr.f32.mxu1 %v6087_v4 }
 0x662   : > { %6282 = vmatmul.mubr.f32.vlgmr.msra.gmra.mrb[2].mxu0 %v6084_v5  ;;  %6352 = vmatmul.mubr.f32.vlgmr.msra.gmra.mrb[2].mxu1 %v6086_v6 }
 0x735   : > { %v6721_v7 = vpop.f32.mrb[2].mxu0  ;;  %v6756_v9 = vpop.f32.mrb[2].mxu1 }
 0x736   : > { %v6722_v10 = vpop.f32.mrb[3].mxu0  ;;  %v6757_v11 = vpop.f32.mrb[3].mxu1 }
 0x737   : > { %v6723_v13 = vadd.f32 %v6722_v10, %v6721_v7  ;;  %v6758_v15 = vadd.f32 %v6757_v11, %v6756_v9 }
 0x739   : > { %v6354_v20 = vadd.f32 %v6758_v15, %v6723_v13 }
 0x73b   : > { %v6357_v21 = vadd.f32 %v6354_v20, %v6088_v19 }
 0x73d   : > { %6358 = vst [vmem:[#allocation15] sm:$0xff] %v6357_v21 }
 0x73e   : > { %11225 = shalt.err (!%p11222_p0)
}
 0x73f   : > { %s11226_s14 = scalar_lea.hbm %s12553_s7, 128 }
 0x740   : > { %p11227_p3 = scmp.ne.s32.totalorder %s12553_s7, %s11226_s14  ;;  %p11232_p2 = scmp.lt.u32.totalorder %s11226_s14, %s12553_s7 }
 0x742   : > { %p11228_p7 = pnand %p11227_p3, %p9811_p1 }
 0x744   : > { %p11229_p11 = pneg %p11228_p7 }
 0x746   : > { %p11234_p10 = pnand %p11232_p2, %p11229_p11 }
 0x748   : > { %11237 = shalt.err (!%p11234_p10)
}
 0x749   : > { %9776 = dma.vmem_to_hbm [thread:$0]  (%p9811_p1), %s6367_s20, 128, %s12553_s7, [#allocation5]  }
 0x74a   : > { %11275 = dma.done.wait (%p9811_p1), [#allocation5], 128  }
 0x74b   : > { %11277 = vsyncadd (%p9811_p1), [#allocation5], 4294967168 }
 0x74c PF: > { %s12595_s27 = sld [smem:[#allocation23_spill]]  ;;  %s12596_s17 = sld [smem:[#allocation22_spill]] }
 0x74d   : > { %s12597_s26 = sld [smem:[#allocation24_spill]]  ;;  %s12598_s24 = smov %s11284_s25 }
 0x752   : > { %p23_p9 = scmp.ge.s32.totalorder %s12595_s27, 6   ;;  %s12599_s25 = smov %s12596_s17 }
 0x754   :  { %25 = sbr.rel (!%p23_p9) target bundleno = 12 (0xc), region = 130 }
 0x75b   :  { %6379 = vsyncpa [#allocation4], 1 }
 0x75c   :  { %6381 = vsyncpa [#allocation4 + $0x1], 1 }
 0x75d   :  { %6382 = vsyncpa [#allocation7], 1 }
 0x75e   :  { %6383 = vsyncpa [#allocation10], 1 }
 0x75f   :  { %6385 = vsyncpa [#allocation10 + $0x1], 1 }
 0x760   :  { %6386 = vsyncpa [#allocation13], 1 }
 0x761   :  { %6388 = vsyncpa [#allocation13 + $0x1], 1 }
 0x762   :  { %6389 = vsyncpa [#allocation5], 1 }
 0x763   :  { %6391 = vsyncpa [#allocation5 + $0x1], 1 }

</bundles_post_ra>
